<compile_context>
chip_gen: v7x
topology: tpu7x:2x2x1
jax: 0.10.0
libtpu: 0.0.40
codegen_flags: <defaults>
</compile_context>

<pallas_src>
import functools

import jax
import jax.numpy as jnp
from jax.experimental import pallas as pl
from jax.experimental.pallas import tpu as pltpu

block_size = 64
dropout = 0.1
head_size = 32
n_embd = 256


def _head_kernel(x_ref, wqkv_ref, o_ref, *, hs):
    # x_ref block: (Bblk, T, C); wqkv: (C, 3H) with scale folded into Q cols;
    # o_ref block: (Bblk, T, H)
    Bb, T, C = x_ref.shape
    H = hs

    # Fused QKV projection: one (Bblk*T, C) x (C, 3H) matmul (wide M on the MXU).
    x2d = x_ref[...].reshape(Bb * T, C)
    qkv = jnp.dot(x2d, wqkv_ref[...],
                  preferred_element_type=jnp.float32)                 # (Bblk*T, 3H)
    qkv = qkv.reshape(Bb, T, 3 * H)

    q = qkv[..., :H]          # already scaled by hs**-0.5 (folded into the weight)
    k = qkv[..., H:2 * H]
    v = qkv[..., 2 * H:]

    # Batched QK^T: contract on the head dim directly (no explicit k transpose).
    wei = jnp.einsum('bqh,bkh->bqk', q, k,
                     preferred_element_type=jnp.float32)              # (Bblk, T, T)

    # Causal mask: one 2-D (T, T) compare broadcast over the batch dim.
    row = jax.lax.broadcasted_iota(jnp.int32, (T, T), 0)
    col = jax.lax.broadcasted_iota(jnp.int32, (T, T), 1)
    causal = (col <= row)[None, :, :]                                  # (1, T, T)
    wei = jnp.where(causal, wei, -jnp.inf)

    # Numerically stable softmax; defer the 1/l normalization until after the PV matmul
    # (mathematically identical by linearity, and it scales the smaller (T, H) tensor).
    wei = wei - jnp.max(wei, axis=-1, keepdims=True)
    p = jnp.exp(wei)
    l = jnp.sum(p, axis=-1, keepdims=True)                             # (Bblk, T, 1)

    # Dropout is identity at inference.
    pv = jnp.einsum('bqk,bkh->bqh', p.astype(v.dtype), v,
                    preferred_element_type=jnp.float32)                # (Bblk, T, H)
    o_ref[...] = (pv / l).astype(o_ref.dtype)                          # exact divide


def _tensorcores_per_chip():
    """Best-effort TC count; defaults to 1 (safe) if the device kind is unknown."""
    try:
        kind = jax.devices()[0].device_kind.lower()
    except Exception:
        return 1
    if "v7" in kind or "tpu7" in kind or "7x" in kind:
        return 2
    return 1


def _pick_bblk(B, num_tc):
    """Batch elements per grid step.

    Single-TC chips (v5e/v6e): take the whole batch in one step (grid=(1,)) -- an extra
    grid step only adds per-step pipeline overhead on this latency-bound kernel.
    Multi-TC chips (v7x): keep one parallel step per TensorCore.
    """
    if B <= 1:
        return 1
    if num_tc <= 1:
        return B
    bblk = max(1, B // num_tc)
    while B % bblk != 0:
        bblk -= 1
    return bblk


def head_forward(x, wq, wk, wv, *, compute_dtype=jnp.float32):
    """x: (B, T, C); wq/wk/wv: (C, H). Returns (B, T, H) float32.

    compute_dtype=jnp.bfloat16 halves the dominant x HBM->VMEM DMA (accumulation stays
    f32); kept f32 by default for tight parity with the f32 PyTorch reference.
    """
    B, T, C = x.shape
    H = wq.shape[1]

    # One-time host-side weight transform: fold the attention scale into Wq, fuse QKV.
    w_qkv = jnp.concatenate([wq * (H ** -0.5), wk, wv], axis=1).astype(compute_dtype)
    x_in = x.astype(compute_dtype)

    bblk = _pick_bblk(B, _tensorcores_per_chip())
    grid_b = B // bblk

    kernel = functools.partial(_head_kernel, hs=H)

    return pl.pallas_call(
        kernel,
        out_shape=jax.ShapeDtypeStruct((B, T, H), jnp.float32),
        grid_spec=pltpu.PrefetchScalarGridSpec(
            num_scalar_prefetch=0,
            grid=(grid_b,),
            in_specs=[
                pl.BlockSpec((bblk, T, C), lambda b: (b, 0, 0)),   # x, Bblk batches / step
                pl.BlockSpec((C, 3 * H), lambda b: (0, 0)),        # fused Wqkv (constant
                                                                   # index -> no re-DMA)
            ],
            out_specs=pl.BlockSpec((bblk, T, H), lambda b: (b, 0, 0)),
        ),
        compiler_params=pltpu.CompilerParams(
            dimension_semantics=("parallel",),
        ),
    )(x_in, w_qkv)


def _reference(x, wq, wk, wv):
    q = x @ wq
    k = x @ wk
    v = x @ wv
    wei = (q @ jnp.swapaxes(k, -2, -1)) * (wq.shape[1] ** -0.5)
    T = x.shape[1]
    mask = jnp.tril(jnp.ones((T, T), dtype=bool))
    wei = jnp.where(mask, wei, -jnp.inf)
    wei = jax.nn.softmax(wei, axis=-1)
    return wei @ v


if __name__ == "__main__":
    key = jax.random.PRNGKey(0)
    kx, kq, kk, kv = jax.random.split(key, 4)

    B, T, C, H = 8, block_size, n_embd, head_size

    x = jax.random.normal(kx, (B, T, C), dtype=jnp.float32)
    # deterministic nn.Linear-style init: U(-1/sqrt(C), 1/sqrt(C)), stored as (C, H)
    bound = 1.0 / (C ** 0.5)
    wq = jax.random.uniform(kq, (C, H), jnp.float32, -bound, bound)
    wk = jax.random.uniform(kk, (C, H), jnp.float32, -bound, bound)
    wv = jax.random.uniform(kv, (C, H), jnp.float32, -bound, bound)

    out = jax.block_until_ready(head_forward(x, wq, wk, wv))

    ref = _reference(x, wq, wk, wv)
    assert out.shape == (B, T, H), out.shape
    # Tolerance covers the TPU MXU's default (bf16-pass) f32 matmul precision, which also
    # affects the on-device reference; in interpret mode / full-f32 the error is ~1e-6.
    err = float(jnp.max(jnp.abs(out - ref)))
    assert jnp.allclose(out, ref, atol=2e-2, rtol=2e-2), err

    print("KERNEL_OK")
</pallas_src>

<mosaic_0001>
module attributes {stable_mosaic.version = 11 : i64} {
  func.func @_head_kernel(%arg0: i32, %arg1: memref<8x64x256xf32, #tpu.memory_space<vmem>>, %arg2: memref<256x96xf32, #tpu.memory_space<vmem>>, %arg3: memref<8x64x32xf32, #tpu.memory_space<vmem>>) attributes {dimension_semantics = [#tpu.dimension_semantics<parallel>], iteration_bounds = array<i64: 1>, scalar_prefetch = 0 : i64, scratch_operands = 0 : i64, tpu.core_type = #tpu.core_type<tc>, window_params = [{transform_indices = @transform_0, window_bounds = array<i64: 8, 64, 256>}, {pipeline_mode = #tpu.pipeline_mode<synchronous>, transform_indices = @transform_1, window_bounds = array<i64: 256, 96>}, {transform_indices = @transform_2, window_bounds = array<i64: 8, 64, 32>}]} {
    %c0 = arith.constant 0 : index
    %c0_0 = arith.constant 0 : index
    %c0_1 = arith.constant 0 : index
    %0 = vector.load %arg1[%c0, %c0_0, %c0_1] : memref<8x64x256xf32, #tpu.memory_space<vmem>>, vector<8x64x256xf32>
    %1 = vector.shape_cast %0 : vector<8x64x256xf32> to vector<512x256xf32>
    %c0_2 = arith.constant 0 : index
    %c0_3 = arith.constant 0 : index
    %2 = vector.load %arg2[%c0_2, %c0_3] : memref<256x96xf32, #tpu.memory_space<vmem>>, vector<256x96xf32>
    %cst = arith.constant dense<0.000000e+00> : vector<512x96xf32>
    %3 = tpu.matmul %1, %2, %cst {dimension_numbers = #tpu.dot_dimension_numbers<[1], [0], [0], [1], [0, 0, 1, 1], [], []>} : vector<512x256xf32>, vector<256x96xf32>, vector<512x96xf32> -> vector<512x96xf32>
    %4 = vector.shape_cast %3 : vector<512x96xf32> to vector<8x64x96xf32>
    %5 = vector.extract_strided_slice %4 {offsets = [0, 0, 0], sizes = [8, 64, 32], strides = [1, 1, 1]} : vector<8x64x96xf32> to vector<8x64x32xf32>
    %6 = vector.extract_strided_slice %4 {offsets = [0, 0, 32], sizes = [8, 64, 32], strides = [1, 1, 1]} : vector<8x64x96xf32> to vector<8x64x32xf32>
    %7 = vector.extract_strided_slice %4 {offsets = [0, 0, 64], sizes = [8, 64, 32], strides = [1, 1, 1]} : vector<8x64x96xf32> to vector<8x64x32xf32>
    "tpu.trace_start"() <{level = 10 : i32, message = "bqh,bkh->bqk"}> : () -> ()
    %cst_4 = arith.constant dense<0.000000e+00> : vector<8x64x64xf32>
    %8 = tpu.matmul %5, %6, %cst_4 {dimension_numbers = #tpu.dot_dimension_numbers<[2], [2], [1], [1], [0, 0, 0, 1, 1, 1], [0], [0]>} : vector<8x64x32xf32>, vector<8x64x32xf32>, vector<8x64x64xf32> -> vector<8x64x64xf32>
    "tpu.trace_stop"() : () -> ()
    %9 = tpu.iota {dimensions = array<i32: 0>} : vector<64x64xi32>
    %10 = tpu.iota {dimensions = array<i32: 1>} : vector<64x64xi32>
    %11 = arith.cmpi sle, %10, %9 : vector<64x64xi32>
    %12 = vector.shape_cast %11 : vector<64x64xi1> to vector<1x64x64xi1>
    %cst_5 = arith.constant 0xFF800000 : f32
    %13 = vector.shape_cast %12 : vector<1x64x64xi1> to vector<1x64x64xi1>
    %14 = vector.broadcast %13 : vector<1x64x64xi1> to vector<8x64x64xi1>
    %15 = vector.broadcast %cst_5 : f32 to vector<8x64x64xf32>
    %16 = arith.select %14, %8, %15 : vector<8x64x64xi1>, vector<8x64x64xf32>
    %cst_6 = arith.constant dense<0xFF800000> : vector<8x64xf32>
    %17 = vector.multi_reduction <maximumf>, %16, %cst_6 [2] : vector<8x64x64xf32> to vector<8x64xf32>
    %18 = vector.shape_cast %17 : vector<8x64xf32> to vector<8x64x1xf32>
    %19 = vector.broadcast %18 : vector<8x64x1xf32> to vector<8x64x64xf32>
    %20 = arith.subf %16, %19 : vector<8x64x64xf32>
    %21 = math.exp %20 : vector<8x64x64xf32>
    %cst_7 = arith.constant dense<0.000000e+00> : vector<8x64xf32>
    %22 = vector.multi_reduction <add>, %21, %cst_7 [2] : vector<8x64x64xf32> to vector<8x64xf32>
    %23 = vector.shape_cast %22 : vector<8x64xf32> to vector<8x64x1xf32>
    "tpu.trace_start"() <{level = 10 : i32, message = "bqk,bkh->bqh"}> : () -> ()
    %cst_8 = arith.constant dense<0.000000e+00> : vector<8x64x32xf32>
    %24 = tpu.matmul %21, %7, %cst_8 {dimension_numbers = #tpu.dot_dimension_numbers<[2], [1], [1], [2], [0, 0, 0, 1, 1, 2], [0], [0]>} : vector<8x64x64xf32>, vector<8x64x32xf32>, vector<8x64x32xf32> -> vector<8x64x32xf32>
    "tpu.trace_stop"() : () -> ()
    %25 = vector.broadcast %23 : vector<8x64x1xf32> to vector<8x64x32xf32>
    %26 = arith.divf %24, %25 : vector<8x64x32xf32>
    %c0_9 = arith.constant 0 : index
    %c0_10 = arith.constant 0 : index
    %c0_11 = arith.constant 0 : index
    %27 = vector.load %arg3[%c0_9, %c0_10, %c0_11] : memref<8x64x32xf32, #tpu.memory_space<vmem>>, vector<8x64x32xf32>
    tpu.vector_store %arg3[%c0_9, %c0_10, %c0_11], %26 {strides = array<i32>} : memref<8x64x32xf32, #tpu.memory_space<vmem>>, vector<8x64x32xf32>,
    return
  }
  func.func @transform_0(%arg0: i32) -> (i32, i32, i32) {
    %c0_i32 = arith.constant 0 : i32
    %c0_i32_0 = arith.constant 0 : i32
    %c0_i32_1 = arith.constant 0 : i32
    return %arg0, %c0_i32, %c0_i32_0 : i32, i32, i32
  }
  func.func @transform_1(%arg0: i32) -> (i32, i32) {
    %c0_i32 = arith.constant 0 : i32
    %c0_i32_0 = arith.constant 0 : i32
    %c0_i32_1 = arith.constant 0 : i32
    return %c0_i32, %c0_i32_0 : i32, i32
  }
  func.func @transform_2(%arg0: i32) -> (i32, i32, i32) {
    %c0_i32 = arith.constant 0 : i32
    %c0_i32_0 = arith.constant 0 : i32
    %c0_i32_1 = arith.constant 0 : i32
    return %arg0, %c0_i32, %c0_i32_0 : i32, i32, i32
  }
}

</mosaic_0001>

<bundles_post_ra>
// kernel: tpu_custom_call.1
= control target key start
LH: loop header
LB: loop body
LE: loop exit
PB: predicated region body
PF: predicated region fallthrough
CT: control target
= control target key end

     0   :  { %7 = vsyncpa [#allocation3], 0  ;;  %s5834_s9 = smov [#allocation2]   ;;  %s7919_s0 = inlined_call_operand.hbm [shape: f32[8,64,256], index: 0, kind: input, shape index: {}]   ;;  %s7920_s1 = inlined_call_operand.vmem [shape: f32[256,96], index: 1, kind: input, shape index: {}]   ;;  %s7921_s2 = inlined_call_operand.vmem [shape: f32[8,64,32], index: 2, kind: output, shape index: {}]  }
   0x1   :  { %s13_s10 = sshll.u32 %s5834_s9, 4  ;;  %s5810_s13 = scalar_lea.hbm %s7919_s0, 16384  ;;  %s14_s10 = int_to_ptr.vmem [resolvable:$true] %s13_s10 }
   0x2   :  { %p5811_p0 = scmp.ne.s32.totalorder %s7919_s0, %s5810_s13  ;;  %p5814_p1 = scmp.lt.u32.totalorder %s5810_s13, %s7919_s0 }
   0x4   :  { %p5816_p2 = pnand %p5814_p1, %p5811_p0 }
   0x6   :  { %5819 = shalt.err (!%p5816_p2)
}
   0x7   :  { %s5820_s18 = scalar_lea.vmem %s14_s10, 16384  ;;  %p5825_p4 = scmp.lt.s32.totalorder %s14_s10, %s14_s10 }
   0x8   :  { %p5821_p3 = scmp.ne.s32.totalorder %s14_s10, %s5820_s18  ;;  %p5826_p5 = scmp.lt.s32.totalorder %s5820_s18, %s5820_s18 }
   0xa   :  { %p5827_p6 = por %p5826_p5, %p5825_p4 }
   0xc   :  { %p5828_p7 = pnand %p5827_p6, %p5821_p3 }
   0xe   :  { %5831 = shalt.err (!%p5828_p7)
}
   0xf   :  { %s5835_s19 = smov 256   ;;  %s5836_s20 = smov 16  }
  0x10   :  { %19 = dma.hbm_to_vmem [thread:$0]  %s7919_s0, 16384, %s14_s10, [#allocation3], %s5835_s19, %s5835_s19, %s5836_s20  }
  0x11   :  { %5832 = dma.done.wait [#allocation3], 16384  }
  0x12   :  { %5833 = vsyncadd [#allocation3], 4294950912  ;;  %v5837_v0 = vmov 0.0|0.0   ;;  %v153_v1 = vld [vmem:[%s7920_s1] sm:$0xff]  ;;  %v154_v2 = vld [vmem:[%s7920_s1 + $0x8] sm:$0xff]  ;;  %vm594_vm0 = vcmask 261120  }
  0x13   :  { %4852 = vmatprep.subr.bf16.mxu0 %v5837_v0  ;;  %v155_v3 = vld [vmem:[%s7920_s1 + $0x10] sm:$0xff]  ;;  %v4853_v4 = vpack.c.bf16 %v154_v2, %v153_v1  ;;  %v156_v5 = vld [vmem:[%s7920_s1 + $0x18] sm:$0xff]  ;;  %v157_v7 = vld [vmem:[%s7920_s1 + $0x20] sm:$0xff]  ;;  %s5839_s29 = smov 64   ;;  %vm1958_vm4 = vcmask 523264  }
  0x14   :  { %v4856_v6 = vpack.c.bf16 %v156_v5, %v155_v3  ;;  %v158_v8 = vld [vmem:[%s7920_s1 + $0x28] sm:$0xff]  ;;  %v159_v10 = vld [vmem:[%s7920_s1 + $0x30] sm:$0xff]  ;;  %v160_v11 = vld [vmem:[%s7920_s1 + $0x38] sm:$0xff] }
  0x15   :  { %4854 = vmatpush1.bf16.msra.mxu0 %v4853_v4  ;;  %v4859_v9 = vpack.c.bf16 %v158_v8, %v157_v7  ;;  %v26_v12 = vld [vmem:[#allocation2 + $0x8] sm:$0xff]  ;;  %v4862_v13 = vpack.c.bf16 %v160_v11, %v159_v10  ;;  %v161_v14 = vld [vmem:[%s7920_s1 + $0x40] sm:$0xff]  ;;  %v163_v17 = vld [vmem:[%s7920_s1 + $0x50] sm:$0xff] }
  0x16   :  { %4855 = vmatprep.subr.bf16.mxu0 %v5837_v0  ;;  %249 = vmatprep.mubr.f32.mxu0 %v26_v12  ;;  %v162_v15 = vld [vmem:[%s7920_s1 + $0x48] sm:$0xff]  ;;  %v164_v18 = vld [vmem:[%s7920_s1 + $0x58] sm:$0xff]  ;;  %v165_v20 = vld [vmem:[%s7920_s1 + $0x60] sm:$0xff] }
  0x17   :  { %v4865_v16 = vpack.c.bf16 %v162_v15, %v161_v14  ;;  %v4868_v19 = vpack.c.bf16 %v164_v18, %v163_v17  ;;  %v166_v21 = vld [vmem:[%s7920_s1 + $0x68] sm:$0xff]  ;;  %v167_v23 = vld [vmem:[%s7920_s1 + $0x70] sm:$0xff]  ;;  %v168_v24 = vld [vmem:[%s7920_s1 + $0x78] sm:$0xff] }
  0x18   :  { %v4871_v22 = vpack.c.bf16 %v166_v21, %v165_v20  ;;  %v4874_v25 = vpack.c.bf16 %v168_v24, %v167_v23  ;;  %v169_v26 = vld [vmem:[%s7920_s1 + $0x80] sm:$0xff]  ;;  %v170_v27 = vld [vmem:[%s7920_s1 + $0x88] sm:$0xff]  ;;  %v171_v29 = vld [vmem:[%s7920_s1 + $0x90] sm:$0xff] }
  0x19   :  { %4857 = vmatpush1.bf16.msra.mxu0 %v4856_v6  ;;  %v4877_v28 = vpack.c.bf16 %v170_v27, %v169_v26  ;;  %v172_v30 = vld [vmem:[%s7920_s1 + $0x98] sm:$0xff]  ;;  %v173_v32 = vld [vmem:[%s7920_s1 + $0xa0] sm:$0xff]  ;;  %v174_v33 = vld [vmem:[%s7920_s1 + $0xa8] sm:$0xff] }
  0x1a   :  { %4858 = vmatprep.subr.bf16.mxu0 %v5837_v0  ;;  %v4880_v31 = vpack.c.bf16 %v172_v30, %v171_v29  ;;  %v4883_v34 = vpack.c.bf16 %v174_v33, %v173_v32  ;;  %v175_v35 = vld [vmem:[%s7920_s1 + $0xb0] sm:$0xff]  ;;  %v176_v36 = vld [vmem:[%s7920_s1 + $0xb8] sm:$0xff]  ;;  %v177_v38 = vld [vmem:[%s7920_s1 + $0xc0] sm:$0xff] }
  0x1b   :  { %v4886_v37 = vpack.c.bf16 %v176_v36, %v175_v35  ;;  %v178_v39 = vld [vmem:[%s7920_s1 + $0xc8] sm:$0xff]  ;;  %v179_v41 = vld [vmem:[%s7920_s1 + $0xd0] sm:$0xff]  ;;  %v180_v42 = vld [vmem:[%s7920_s1 + $0xd8] sm:$0xff] }
  0x1c   :  { %v4889_v40 = vpack.c.bf16 %v178_v39, %v177_v38  ;;  %v4892_v43 = vpack.c.bf16 %v180_v42, %v179_v41  ;;  %v181_v44 = vld [vmem:[%s7920_s1 + $0xe0] sm:$0xff]  ;;  %v182_v45 = vld [vmem:[%s7920_s1 + $0xe8] sm:$0xff]  ;;  %v183_v47 = vld [vmem:[%s7920_s1 + $0xf0] sm:$0xff] }
  0x1d   :  { %4860 = vmatpush1.bf16.msra.mxu0 %v4859_v9  ;;  %v4895_v46 = vpack.c.bf16 %v182_v45, %v181_v44  ;;  %v184_v48 = vld [vmem:[%s7920_s1 + $0xf8] sm:$0xff]  ;;  %v25_v50 = vld [vmem:[#allocation2] sm:$0xff]  ;;  %v27_v52 = vld [vmem:[#allocation2 + $0x10] sm:$0xff]  ;;  %s5838_s1 = smov 96  }
  0x1e   :  { %4861 = vmatprep.subr.bf16.mxu0 %v5837_v0  ;;  %v4898_v49 = vpack.c.bf16 %v184_v48, %v183_v47  ;;  %v28_v51 = vld [vmem:[#allocation2 + $0x18] sm:$0xff]  ;;  %v30_v53 = vld [vmem:[#allocation2 + $0x28] sm:$0xff]  ;;  %v29_v54 = vld [vmem:[#allocation2 + $0x20] sm:$0xff] }
  0x1f   :  { %v32_v55 = vld [vmem:[#allocation2 + $0x38] sm:$0xff]  ;;  %v31_v56 = vld [vmem:[#allocation2 + $0x30] sm:$0xff]  ;;  %v34_v57 = vld [vmem:[#allocation2 + $0x48] sm:$0xff] }
  0x20   :  { %v33_v58 = vld [vmem:[#allocation2 + $0x40] sm:$0xff]  ;;  %v36_v59 = vld [vmem:[#allocation2 + $0x58] sm:$0xff]  ;;  %v35_v60 = vld [vmem:[#allocation2 + $0x50] sm:$0xff] }
  0x21   :  { %4863 = vmatpush1.bf16.msra.mxu0 %v4862_v13  ;;  %v38_v61 = vld [vmem:[#allocation2 + $0x68] sm:$0xff]  ;;  %v37_v62 = vld [vmem:[#allocation2 + $0x60] sm:$0xff]  ;;  %v40_v63 = vld [vmem:[#allocation2 + $0x78] sm:$0xff] }
  0x22   :  { %4864 = vmatprep.subr.bf16.mxu0 %v5837_v0  ;;  %v42_v1 = vld [vmem:[#allocation2 + $0x88] sm:$0xff]  ;;  %v41_v2 = vld [vmem:[#allocation2 + $0x80] sm:$0xff]  ;;  %v44_v3 = vld [vmem:[#allocation2 + $0x98] sm:$0xff] }
  0x23   :  { %v43_v4 = vld [vmem:[#allocation2 + $0x90] sm:$0xff]  ;;  %v46_v5 = vld [vmem:[#allocation2 + $0xa8] sm:$0xff]  ;;  %v45_v6 = vld [vmem:[#allocation2 + $0xa0] sm:$0xff] }
  0x24   :  { %v48_v7 = vld [vmem:[#allocation2 + $0xb8] sm:$0xff]  ;;  %v47_v8 = vld [vmem:[#allocation2 + $0xb0] sm:$0xff]  ;;  %v50_v9 = vld [vmem:[#allocation2 + $0xc8] sm:$0xff] }
  0x25   :  { %4866 = vmatpush1.bf16.msra.mxu0 %v4865_v16  ;;  %v49_v10 = vld [vmem:[#allocation2 + $0xc0] sm:$0xff]  ;;  %v52_v11 = vld [vmem:[#allocation2 + $0xd8] sm:$0xff]  ;;  %v51_v12 = vld [vmem:[#allocation2 + $0xd0] sm:$0xff] }
  0x26   :  { %4867 = vmatprep.subr.bf16.mxu0 %v5837_v0  ;;  %v54_v13 = vld [vmem:[#allocation2 + $0xe8] sm:$0xff]  ;;  %v53_v14 = vld [vmem:[#allocation2 + $0xe0] sm:$0xff]  ;;  %v56_v15 = vld [vmem:[#allocation2 + $0xf8] sm:$0xff] }
  0x27   :  { %v55_v16 = vld [vmem:[#allocation2 + $0xf0] sm:$0xff]  ;;  %v58_v17 = vld [vmem:[#allocation2 + $0x108] sm:$0xff]  ;;  %v57_v18 = vld [vmem:[#allocation2 + $0x100] sm:$0xff] }
  0x28   :  { %v59_v20 = vld [vmem:[#allocation2 + $0x110] sm:$0xff]  ;;  %v62_v21 = vld [vmem:[#allocation2 + $0x128] sm:$0xff]  ;;  %v64_v23 = vld [vmem:[#allocation2 + $0x138] sm:$0xff] }
  0x29   :  { %4869 = vmatpush1.bf16.msra.mxu0 %v4868_v19  ;;  %v60_v19 = vld [vmem:[#allocation2 + $0x118] sm:$0xff]  ;;  %v63_v24 = vld [vmem:[#allocation2 + $0x130] sm:$0xff]  ;;  %v65_v26 = vld [vmem:[#allocation2 + $0x140] sm:$0xff] }
  0x2a   :  { %4870 = vmatprep.subr.bf16.mxu0 %v5837_v0  ;;  %v68_v27 = vld [vmem:[#allocation2 + $0x158] sm:$0xff]  ;;  %v70_v29 = vld [vmem:[#allocation2 + $0x168] sm:$0xff]  ;;  %v69_v30 = vld [vmem:[#allocation2 + $0x160] sm:$0xff] }
  0x2b   :  { %v71_v32 = vld [vmem:[#allocation2 + $0x170] sm:$0xff]  ;;  %v74_v33 = vld [vmem:[#allocation2 + $0x188] sm:$0xff]  ;;  %v76_v35 = vld [vmem:[#allocation2 + $0x198] sm:$0xff] }
  0x2c   :  { %v75_v36 = vld [vmem:[#allocation2 + $0x190] sm:$0xff]  ;;  %v77_v38 = vld [vmem:[#allocation2 + $0x1a0] sm:$0xff]  ;;  %v80_v39 = vld [vmem:[#allocation2 + $0x1b8] sm:$0xff] }
  0x2d   :  { %4872 = vmatpush1.bf16.msra.mxu0 %v4871_v22  ;;  %v61_v22 = vld [vmem:[#allocation2 + $0x120] sm:$0xff]  ;;  %v82_v41 = vld [vmem:[#allocation2 + $0x1c8] sm:$0xff]  ;;  %v83_v44 = vld [vmem:[#allocation2 + $0x1d0] sm:$0xff] }
  0x2e   :  { %4873 = vmatprep.subr.bf16.mxu0 %v5837_v0  ;;  %v81_v42 = vld [vmem:[#allocation2 + $0x1c0] sm:$0xff]  ;;  %v86_v45 = vld [vmem:[#allocation2 + $0x1e8] sm:$0xff]  ;;  %v88_v47 = vld [vmem:[#allocation2 + $0x1f8] sm:$0xff] }
  0x2f   :  { %v87_v48 = vld [vmem:[#allocation2 + $0x1f0] sm:$0xff]  ;;  %vm6131_vm1 = vmpackc.low %vm594_vm0, %vm594_vm0 }
  0x31   :  { %4875 = vmatpush1.bf16.msra.mxu0 %v4874_v25  ;;  %v66_v25 = vld [vmem:[#allocation2 + $0x148] sm:$0xff] }
  0x32   :  { %4876 = vmatprep.subr.bf16.mxu0 %v5837_v0 }
  0x35   :  { %4878 = vmatpush1.bf16.msra.mxu0 %v4877_v28  ;;  %v67_v28 = vld [vmem:[#allocation2 + $0x150] sm:$0xff] }
  0x36   :  { %4879 = vmatprep.subr.bf16.mxu0 %v5837_v0 }
  0x39   :  { %4881 = vmatpush1.bf16.msra.mxu0 %v4880_v31  ;;  %v72_v31 = vld [vmem:[#allocation2 + $0x178] sm:$0xff] }
  0x3a   :  { %4882 = vmatprep.subr.bf16.mxu0 %v5837_v0 }
  0x3d   :  { %4884 = vmatpush1.bf16.msra.mxu0 %v4883_v34  ;;  %v73_v34 = vld [vmem:[#allocation2 + $0x180] sm:$0xff] }
  0x3e   :  { %4885 = vmatprep.subr.bf16.mxu0 %v5837_v0 }
  0x41   :  { %4887 = vmatpush1.bf16.msra.mxu0 %v4886_v37  ;;  %v78_v37 = vld [vmem:[#allocation2 + $0x1a8] sm:$0xff] }
  0x42   :  { %4888 = vmatprep.subr.bf16.mxu0 %v5837_v0 }
  0x45   :  { %4890 = vmatpush1.bf16.msra.mxu0 %v4889_v40  ;;  %v79_v40 = vld [vmem:[#allocation2 + $0x1b0] sm:$0xff] }
  0x46   :  { %4891 = vmatprep.subr.bf16.mxu0 %v5837_v0 }
  0x49   :  { %4893 = vmatpush1.bf16.msra.mxu0 %v4892_v43  ;;  %v84_v43 = vld [vmem:[#allocation2 + $0x1d8] sm:$0xff] }
  0x4a   :  { %4894 = vmatprep.subr.bf16.mxu0 %v5837_v0 }
  0x4d   :  { %4896 = vmatpush1.bf16.msra.mxu0 %v4895_v46  ;;  %v85_v46 = vld [vmem:[#allocation2 + $0x1e0] sm:$0xff] }
  0x4e   :  { %4897 = vmatprep.subr.bf16.mxu0 %v5837_v0  ;;  %v39_v0 = vld [vmem:[#allocation2 + $0x70] sm:$0xff] }
  0x51   :  { %4899 = vmatpush1.bf16.msra.mxu0 %v4898_v49  ;;  %v90_v49 = vld [vmem:[#allocation2 + $0x208] sm:$0xff] }
  0x54   :  { %250 = vmatmul.mubr.f32.vlgmr.msra.gmra.mrb[0].mxu0 %v25_v50  ;;  %v89_v50 = vld [vmem:[#allocation2 + $0x200] sm:$0xff] }
  0x55   :  { %254 = vmatprep.mubr.f32.mxu0 %v28_v51  ;;  %v92_v51 = vld [vmem:[#allocation2 + $0x218] sm:$0xff] }
  0x58   :  { %255 = vmatmul.mubr.f32.gmra.mrb[2].mxu0 %v27_v52  ;;  %v91_v52 = vld [vmem:[#allocation2 + $0x210] sm:$0xff] }
  0x59   :  { %259 = vmatprep.mubr.f32.mxu0 %v30_v53  ;;  %v94_v53 = vld [vmem:[#allocation2 + $0x228] sm:$0xff] }
  0x5c   :  { %260 = vmatmul.mubr.f32.gmra.mrb[4].mxu0 %v29_v54  ;;  %v93_v54 = vld [vmem:[#allocation2 + $0x220] sm:$0xff] }
  0x5d   :  { %264 = vmatprep.mubr.f32.mxu0 %v32_v55  ;;  %v96_v55 = vld [vmem:[#allocation2 + $0x238] sm:$0xff] }
  0x60   :  { %265 = vmatmul.mubr.f32.gmra.mrb[6].mxu0 %v31_v56  ;;  %v95_v56 = vld [vmem:[#allocation2 + $0x230] sm:$0xff] }
  0x61   :  { %269 = vmatprep.mubr.f32.mxu0 %v34_v57  ;;  %v98_v57 = vld [vmem:[#allocation2 + $0x248] sm:$0xff] }
  0x64   :  { %270 = vmatmul.mubr.f32.gmra.mrb[8].mxu0 %v33_v58  ;;  %v97_v58 = vld [vmem:[#allocation2 + $0x240] sm:$0xff] }
  0x65   :  { %274 = vmatprep.mubr.f32.mxu0 %v36_v59  ;;  %v100_v59 = vld [vmem:[#allocation2 + $0x258] sm:$0xff] }
  0x68   :  { %275 = vmatmul.mubr.f32.gmra.mrb[10].mxu0 %v35_v60  ;;  %v99_v60 = vld [vmem:[#allocation2 + $0x250] sm:$0xff] }
  0x69   :  { %279 = vmatprep.mubr.f32.mxu0 %v38_v61  ;;  %v102_v61 = vld [vmem:[#allocation2 + $0x268] sm:$0xff] }
  0x6c   :  { %280 = vmatmul.mubr.f32.gmra.mrb[12].mxu0 %v37_v62  ;;  %v101_v62 = vld [vmem:[#allocation2 + $0x260] sm:$0xff] }
  0x6d   :  { %284 = vmatprep.mubr.f32.mxu0 %v40_v63  ;;  %v104_v63 = vld [vmem:[#allocation2 + $0x278] sm:$0xff] }
  0x70   :  { %285 = vmatmul.mubr.f32.gmra.mrb[14].mxu0 %v39_v0  ;;  %v103_v0 = vld [vmem:[#allocation2 + $0x270] sm:$0xff] }
  0x71   :  { %289 = vmatprep.mubr.f32.mxu0 %v42_v1  ;;  %v106_v1 = vld [vmem:[#allocation2 + $0x288] sm:$0xff] }
  0x74   :  { %290 = vmatmul.mubr.f32.gmra.mrb[16].mxu0 %v41_v2  ;;  %v105_v2 = vld [vmem:[#allocation2 + $0x280] sm:$0xff] }
  0x75   :  { %294 = vmatprep.mubr.f32.mxu0 %v44_v3  ;;  %v108_v3 = vld [vmem:[#allocation2 + $0x298] sm:$0xff] }
  0x78   :  { %295 = vmatmul.mubr.f32.gmra.mrb[18].mxu0 %v43_v4  ;;  %v107_v4 = vld [vmem:[#allocation2 + $0x290] sm:$0xff] }
  0x79   :  { %299 = vmatprep.mubr.f32.mxu0 %v46_v5  ;;  %v110_v5 = vld [vmem:[#allocation2 + $0x2a8] sm:$0xff] }
  0x7c   :  { %300 = vmatmul.mubr.f32.gmra.mrb[20].mxu0 %v45_v6  ;;  %v109_v6 = vld [vmem:[#allocation2 + $0x2a0] sm:$0xff] }
  0x7d   :  { %304 = vmatprep.mubr.f32.mxu0 %v48_v7  ;;  %v112_v7 = vld [vmem:[#allocation2 + $0x2b8] sm:$0xff] }
  0x80   :  { %305 = vmatmul.mubr.f32.gmra.mrb[22].mxu0 %v47_v8  ;;  %v111_v8 = vld [vmem:[#allocation2 + $0x2b0] sm:$0xff] }
  0x81   :  { %309 = vmatprep.mubr.f32.mxu0 %v50_v9  ;;  %v114_v9 = vld [vmem:[#allocation2 + $0x2c8] sm:$0xff] }
  0x84   :  { %310 = vmatmul.mubr.f32.gmra.mrb[24].mxu0 %v49_v10  ;;  %v113_v10 = vld [vmem:[#allocation2 + $0x2c0] sm:$0xff] }
  0x85   :  { %314 = vmatprep.mubr.f32.mxu0 %v52_v11  ;;  %v116_v11 = vld [vmem:[#allocation2 + $0x2d8] sm:$0xff] }
  0x88   :  { %315 = vmatmul.mubr.f32.gmra.mrb[26].mxu0 %v51_v12  ;;  %v115_v12 = vld [vmem:[#allocation2 + $0x2d0] sm:$0xff] }
  0x89   :  { %319 = vmatprep.mubr.f32.mxu0 %v54_v13  ;;  %v118_v13 = vld [vmem:[#allocation2 + $0x2e8] sm:$0xff] }
  0x8c   :  { %320 = vmatmul.mubr.f32.gmra.mrb[28].mxu0 %v53_v14  ;;  %v117_v14 = vld [vmem:[#allocation2 + $0x2e0] sm:$0xff] }
  0x8d   :  { %324 = vmatprep.mubr.f32.mxu0 %v56_v15  ;;  %v120_v15 = vld [vmem:[#allocation2 + $0x2f8] sm:$0xff] }
  0x90   :  { %325 = vmatmul.mubr.f32.gmra.mrb[30].mxu0 %v55_v16  ;;  %v119_v16 = vld [vmem:[#allocation2 + $0x2f0] sm:$0xff] }
  0x91   :  { %329 = vmatprep.mubr.f32.mxu0 %v58_v17  ;;  %v122_v17 = vld [vmem:[#allocation2 + $0x308] sm:$0xff] }
  0x94   :  { %330 = vmatmul.mubr.f32.gmra.mrb[32].mxu0 %v57_v18  ;;  %v121_v18 = vld [vmem:[#allocation2 + $0x300] sm:$0xff] }
  0x95   :  { %334 = vmatprep.mubr.f32.mxu0 %v60_v19  ;;  %v124_v19 = vld [vmem:[#allocation2 + $0x318] sm:$0xff] }
  0x98   :  { %335 = vmatmul.mubr.f32.gmra.mrb[34].mxu0 %v59_v20  ;;  %v123_v20 = vld [vmem:[#allocation2 + $0x310] sm:$0xff] }
  0x99   :  { %339 = vmatprep.mubr.f32.mxu0 %v62_v21  ;;  %v126_v21 = vld [vmem:[#allocation2 + $0x328] sm:$0xff] }
  0x9c   :  { %340 = vmatmul.mubr.f32.gmra.mrb[36].mxu0 %v61_v22  ;;  %v125_v22 = vld [vmem:[#allocation2 + $0x320] sm:$0xff] }
  0x9d   :  { %344 = vmatprep.mubr.f32.mxu0 %v64_v23  ;;  %v128_v23 = vld [vmem:[#allocation2 + $0x338] sm:$0xff] }
  0xa0   :  { %345 = vmatmul.mubr.f32.gmra.mrb[38].mxu0 %v63_v24  ;;  %v127_v24 = vld [vmem:[#allocation2 + $0x330] sm:$0xff] }
  0xa1   :  { %349 = vmatprep.mubr.f32.mxu0 %v66_v25  ;;  %v130_v25 = vld [vmem:[#allocation2 + $0x348] sm:$0xff] }
  0xa4   :  { %350 = vmatmul.mubr.f32.gmra.mrb[40].mxu0 %v65_v26  ;;  %v129_v26 = vld [vmem:[#allocation2 + $0x340] sm:$0xff] }
  0xa5   :  { %354 = vmatprep.mubr.f32.mxu0 %v68_v27  ;;  %v132_v27 = vld [vmem:[#allocation2 + $0x358] sm:$0xff] }
  0xa8   :  { %355 = vmatmul.mubr.f32.gmra.mrb[42].mxu0 %v67_v28  ;;  %v131_v28 = vld [vmem:[#allocation2 + $0x350] sm:$0xff] }
  0xa9   :  { %359 = vmatprep.mubr.f32.mxu0 %v70_v29  ;;  %v134_v29 = vld [vmem:[#allocation2 + $0x368] sm:$0xff] }
  0xac   :  { %360 = vmatmul.mubr.f32.gmra.mrb[44].mxu0 %v69_v30 }
  0xad   :  { %364 = vmatprep.mubr.f32.mxu0 %v72_v31 }
  0xb0   :  { %365 = vmatmul.mubr.f32.gmra.mrb[46].mxu0 %v71_v32  ;;  %v133_v32 = vld [vmem:[#allocation2 + $0x360] sm:$0xff] }
  0xb1   :  { %369 = vmatprep.mubr.f32.mxu0 %v74_v33  ;;  %v136_v33 = vld [vmem:[#allocation2 + $0x378] sm:$0xff] }
  0xb4   :  { %370 = vmatmul.mubr.f32.gmra.mrb[48].mxu0 %v73_v34 }
  0xb5   :  { %374 = vmatprep.mubr.f32.mxu0 %v76_v35 }
  0xb8   :  { %375 = vmatmul.mubr.f32.gmra.mrb[50].mxu0 %v75_v36 }
  0xb9   :  { %379 = vmatprep.mubr.f32.mxu0 %v78_v37  ;;  %v135_v37 = vld [vmem:[#allocation2 + $0x370] sm:$0xff] }
  0xbc   :  { %380 = vmatmul.mubr.f32.gmra.mrb[52].mxu0 %v77_v38  ;;  %v138_v38 = vld [vmem:[#allocation2 + $0x388] sm:$0xff] }
  0xbd   :  { %384 = vmatprep.mubr.f32.mxu0 %v80_v39 }
  0xc0   :  { %385 = vmatmul.mubr.f32.gmra.mrb[54].mxu0 %v79_v40 }
  0xc1   :  { %389 = vmatprep.mubr.f32.mxu0 %v82_v41  ;;  %v137_v41 = vld [vmem:[#allocation2 + $0x380] sm:$0xff] }
  0xc4   :  { %390 = vmatmul.mubr.f32.gmra.mrb[56].mxu0 %v81_v42  ;;  %v140_v42 = vld [vmem:[#allocation2 + $0x398] sm:$0xff] }
  0xc5   :  { %394 = vmatprep.mubr.f32.mxu0 %v84_v43 }
  0xc8   :  { %395 = vmatmul.mubr.f32.gmra.mrb[58].mxu0 %v83_v44 }
  0xc9   :  { %399 = vmatprep.mubr.f32.mxu0 %v86_v45 }
  0xcc   :  { %400 = vmatmul.mubr.f32.gmra.mrb[60].mxu0 %v85_v46  ;;  %v139_v46 = vld [vmem:[#allocation2 + $0x390] sm:$0xff] }
  0xcd   :  { %404 = vmatprep.mubr.f32.mxu0 %v88_v47  ;;  %v142_v47 = vld [vmem:[#allocation2 + $0x3a8] sm:$0xff] }
  0xd0   :  { %405 = vmatmul.mubr.f32.gmra.mrb[62].mxu0 %v87_v48 }
  0xd1   :  { %409 = vmatprep.mubr.f32.mxu0 %v90_v49 }
  0xd4   :  { %410 = vmatmul.mubr.f32.gmra.mrb[64].mxu0 %v89_v50  ;;  %v141_v50 = vld [vmem:[#allocation2 + $0x3a0] sm:$0xff] }
  0xd5   :  { %414 = vmatprep.mubr.f32.mxu0 %v92_v51  ;;  %v144_v51 = vld [vmem:[#allocation2 + $0x3b8] sm:$0xff] }
  0xd8   :  { %415 = vmatmul.mubr.f32.gmra.mrb[66].mxu0 %v91_v52 }
  0xd9   :  { %419 = vmatprep.mubr.f32.mxu0 %v94_v53 }
  0xdc   :  { %420 = vmatmul.mubr.f32.gmra.mrb[68].mxu0 %v93_v54 }
  0xdd   :  { %424 = vmatprep.mubr.f32.mxu0 %v96_v55  ;;  %v143_v55 = vld [vmem:[#allocation2 + $0x3b0] sm:$0xff] }
  0xe0   :  { %425 = vmatmul.mubr.f32.gmra.mrb[70].mxu0 %v95_v56  ;;  %v146_v56 = vld [vmem:[#allocation2 + $0x3c8] sm:$0xff] }
  0xe1   :  { %429 = vmatprep.mubr.f32.mxu0 %v98_v57 }
  0xe4   :  { %430 = vmatmul.mubr.f32.gmra.mrb[72].mxu0 %v97_v58 }
  0xe5   :  { %434 = vmatprep.mubr.f32.mxu0 %v100_v59  ;;  %v145_v59 = vld [vmem:[#allocation2 + $0x3c0] sm:$0xff] }
  0xe8   :  { %435 = vmatmul.mubr.f32.gmra.mrb[74].mxu0 %v99_v60  ;;  %v148_v60 = vld [vmem:[#allocation2 + $0x3d8] sm:$0xff] }
  0xe9   :  { %439 = vmatprep.mubr.f32.mxu0 %v102_v61 }
  0xec   :  { %440 = vmatmul.mubr.f32.gmra.mrb[76].mxu0 %v101_v62 }
  0xed   :  { %444 = vmatprep.mubr.f32.mxu0 %v104_v63 }
  0xf0   :  { %445 = vmatmul.mubr.f32.gmra.mrb[78].mxu0 %v103_v0  ;;  %v147_v0 = vld [vmem:[#allocation2 + $0x3d0] sm:$0xff] }
  0xf1   :  { %449 = vmatprep.mubr.f32.mxu0 %v106_v1  ;;  %v150_v1 = vld [vmem:[#allocation2 + $0x3e8] sm:$0xff] }
  0xf4   :  { %450 = vmatmul.mubr.f32.gmra.mrb[80].mxu0 %v105_v2 }
  0xf5   :  { %454 = vmatprep.mubr.f32.mxu0 %v108_v3 }
  0xf8   :  { %455 = vmatmul.mubr.f32.gmra.mrb[82].mxu0 %v107_v4  ;;  %v149_v4 = vld [vmem:[#allocation2 + $0x3e0] sm:$0xff] }
  0xf9   :  { %459 = vmatprep.mubr.f32.mxu0 %v110_v5  ;;  %v152_v5 = vld [vmem:[#allocation2 + $0x3f8] sm:$0xff] }
  0xfc   :  { %460 = vmatmul.mubr.f32.gmra.mrb[84].mxu0 %v109_v6 }
  0xfd   :  { %464 = vmatprep.mubr.f32.mxu0 %v112_v7 }
 0x100   :  { %465 = vmatmul.mubr.f32.gmra.mrb[86].mxu0 %v111_v8 }
 0x101   :  { %469 = vmatprep.mubr.f32.mxu0 %v114_v9  ;;  %v151_v9 = vld [vmem:[#allocation2 + $0x3f0] sm:$0xff] }
 0x104   :  { %470 = vmatmul.mubr.f32.gmra.mrb[88].mxu0 %v113_v10 }
 0x105   :  { %474 = vmatprep.mubr.f32.mxu0 %v116_v11 }
 0x108   :  { %475 = vmatmul.mubr.f32.gmra.mrb[90].mxu0 %v115_v12 }
 0x109   :  { %479 = vmatprep.mubr.f32.mxu0 %v118_v13 }
 0x10c   :  { %480 = vmatmul.mubr.f32.gmra.mrb[92].mxu0 %v117_v14 }
 0x10d   :  { %484 = vmatprep.mubr.f32.mxu0 %v120_v15 }
 0x110   :  { %485 = vmatmul.mubr.f32.gmra.mrb[94].mxu0 %v119_v16 }
 0x111   :  { %489 = vmatprep.mubr.f32.mxu0 %v122_v17 }
 0x114   :  { %490 = vmatmul.mubr.f32.gmra.mrb[96].mxu0 %v121_v18 }
 0x115   :  { %494 = vmatprep.mubr.f32.mxu0 %v124_v19 }
 0x118   :  { %495 = vmatmul.mubr.f32.gmra.mrb[98].mxu0 %v123_v20 }
 0x119   :  { %499 = vmatprep.mubr.f32.mxu0 %v126_v21 }
 0x11c   :  { %500 = vmatmul.mubr.f32.gmra.mrb[100].mxu0 %v125_v22 }
 0x11d   :  { %504 = vmatprep.mubr.f32.mxu0 %v128_v23 }
 0x120   :  { %505 = vmatmul.mubr.f32.gmra.mrb[102].mxu0 %v127_v24 }
 0x121   :  { %509 = vmatprep.mubr.f32.mxu0 %v130_v25 }
 0x124   :  { %510 = vmatmul.mubr.f32.gmra.mrb[104].mxu0 %v129_v26 }
 0x125   :  { %514 = vmatprep.mubr.f32.mxu0 %v132_v27 }
 0x127   :  { %v251_v30 = vpop.f32.mrb[0].mxu0 }
 0x128   :  { %v253_v31 = vpop.f32.mrb[1].mxu0  ;;  %515 = vmatmul.mubr.f32.gmra.mrb[106].mxu0 %v131_v28  ;;  %4420 = vmatprep.mubr.msk.f32.mxu1 %vm594_vm0, %v251_v30 }
 0x129   :  { %519 = vmatprep.mubr.f32.mxu0 %v134_v29 }
 0x12b   :  { %v5980_v34 = vpop.f32.mrb[2].mxu0 }
 0x12c   :  { %v5983_v35 = vpack.i.bf16 %v5980_v34, %v251_v30  ;;  %v258_v36 = vpop.f32.mrb[3].mxu0  ;;  %520 = vmatmul.mubr.f32.gmra.mrb[108].mxu0 %v133_v32 }
 0x12d   :  { %524 = vmatprep.mubr.f32.mxu0 %v136_v33 }
 0x12e   :  { %5235 = vrot.lane.b32.xlu0 %v5983_v35, %s5838_s1 }
 0x12f   :  { %v5987_v39 = vpop.f32.mrb[4].mxu0 }
 0x130   :  { %v263_v40 = vpop.f32.mrb[5].mxu0  ;;  %525 = vmatmul.mubr.f32.gmra.mrb[110].mxu0 %v135_v37 }
 0x131   :  { %529 = vmatprep.mubr.f32.mxu0 %v138_v38 }
 0x133   :  { %v5989_v43 = vpop.f32.mrb[6].mxu0 }
 0x134   :  { %v5993_v44 = vpack.i.bf16 %v5989_v43, %v5987_v39  ;;  %v268_v45 = vpop.f32.mrb[7].mxu0  ;;  %530 = vmatmul.mubr.f32.gmra.mrb[112].mxu0 %v137_v41 }
 0x135   :  { %534 = vmatprep.mubr.f32.mxu0 %v140_v42 }
 0x136   :  { %5240 = vrot.lane.b32.xlu0 %v5993_v44, %s5838_s1 }
 0x137   :  { %v5997_v48 = vpop.f32.mrb[8].mxu0 }
 0x138   :  { %v273_v49 = vpop.f32.mrb[9].mxu0  ;;  %535 = vmatmul.mubr.f32.gmra.mrb[114].mxu0 %v139_v46 }
 0x139   :  { %539 = vmatprep.mubr.f32.mxu0 %v142_v47 }
 0x13b   :  { %v5999_v52 = vpop.f32.mrb[10].mxu0 }
 0x13c   :  { %v6003_v53 = vpack.i.bf16 %v5999_v52, %v5997_v48  ;;  %v278_v54 = vpop.f32.mrb[11].mxu0  ;;  %540 = vmatmul.mubr.f32.gmra.mrb[116].mxu0 %v141_v50 }
 0x13d   :  { %544 = vmatprep.mubr.f32.mxu0 %v144_v51 }
 0x13e   :  { %5245 = vrot.lane.b32.xlu1 %v6003_v53, %s5838_s1 }
 0x13f   :  { %v6007_v57 = vpop.f32.mrb[12].mxu0 }
 0x140   :  { %v283_v58 = vpop.f32.mrb[13].mxu0  ;;  %545 = vmatmul.mubr.f32.gmra.mrb[118].mxu0 %v143_v55 }
 0x141   :  { %549 = vmatprep.mubr.f32.mxu0 %v146_v56 }
 0x143   :  { %v6009_v61 = vpop.f32.mrb[14].mxu0 }
 0x144   :  { %v6013_v62 = vpack.i.bf16 %v6009_v61, %v6007_v57  ;;  %v288_v63 = vpop.f32.mrb[15].mxu0  ;;  %550 = vmatmul.mubr.f32.gmra.mrb[120].mxu0 %v145_v59 }
 0x145   :  { %554 = vmatprep.mubr.f32.mxu0 %v148_v60 }
 0x146   :  { %5250 = vrot.lane.b32.xlu1 %v6013_v62, %s5838_s1 }
 0x147   :  { %v6017_v2 = vpop.f32.mrb[16].mxu0 }
 0x148   :  { %v293_v3 = vpop.f32.mrb[17].mxu0  ;;  %555 = vmatmul.mubr.f32.gmra.mrb[122].mxu0 %v147_v0 }
 0x149   :  { %559 = vmatprep.mubr.f32.mxu0 %v150_v1 }
 0x14b   :  { %v6019_v6 = vpop.f32.mrb[18].mxu0 }
 0x14c   :  { %v6023_v7 = vpack.i.bf16 %v6019_v6, %v6017_v2  ;;  %v298_v8 = vpop.f32.mrb[19].mxu0  ;;  %560 = vmatmul.mubr.f32.gmra.mrb[124].mxu0 %v149_v4 }
 0x14d   :  { %564 = vmatprep.mubr.f32.mxu0 %v152_v5 }
 0x14e   :  { %5255 = vrot.lane.b32.xlu0 %v6023_v7, %s5838_s1 }
 0x14f   :  { %v6027_v10 = vpop.f32.mrb[20].mxu0 }
 0x150   :  { %v303_v11 = vpop.f32.mrb[21].mxu0  ;;  %565 = vmatmul.mubr.f32.gmra.mrb[126].mxu0 %v151_v9 }
 0x153   :  { %v6029_v12 = vpop.f32.mrb[22].mxu0 }
 0x154   :  { %v6033_v13 = vpack.i.bf16 %v6029_v12, %v6027_v10  ;;  %v308_v14 = vpop.f32.mrb[23].mxu0 }
 0x156   :  { %5260 = vrot.lane.b32.xlu1 %v6033_v13, %s5838_s1 }
 0x157   :  { %v6037_v15 = vpop.f32.mrb[24].mxu0 }
 0x158   :  { %v313_v16 = vpop.f32.mrb[25].mxu0 }
 0x15b   :  { %v6039_v17 = vpop.f32.mrb[26].mxu0 }
 0x15c   :  { %v6043_v18 = vpack.i.bf16 %v6039_v17, %v6037_v15  ;;  %v318_v19 = vpop.f32.mrb[27].mxu0 }
 0x15e   :  { %5265 = vrot.lane.b32.xlu0 %v6043_v18, %s5838_s1 }
 0x15f   :  { %v6047_v20 = vpop.f32.mrb[28].mxu0 }
 0x160   :  { %v323_v21 = vpop.f32.mrb[29].mxu0 }
 0x163   :  { %v6049_v22 = vpop.f32.mrb[30].mxu0 }
 0x164   :  { %v6053_v23 = vpack.i.bf16 %v6049_v22, %v6047_v20  ;;  %v328_v24 = vpop.f32.mrb[31].mxu0 }
 0x166   :  { %5270 = vrot.lane.b32.xlu1 %v6053_v23, %s5838_s1 }
 0x167   :  { %v6057_v25 = vpop.f32.mrb[32].mxu0 }
 0x168   :  { %v333_v26 = vpop.f32.mrb[33].mxu0 }
 0x16b   :  { %v6059_v27 = vpop.f32.mrb[34].mxu0 }
 0x16c   :  { %v6063_v28 = vpack.i.bf16 %v6059_v27, %v6057_v25  ;;  %v338_v29 = vpop.f32.mrb[35].mxu0 }
 0x16e   :  { %5275 = vrot.lane.b32.xlu0 %v6063_v28, %s5838_s1 }
 0x16f   :  { %v6067_v30 = vpop.f32.mrb[36].mxu0 }
 0x170   :  { %v343_v31 = vpop.f32.mrb[37].mxu0 }
 0x173   :  { %v6069_v32 = vpop.f32.mrb[38].mxu0 }
 0x174   :  { %v6073_v33 = vpack.i.bf16 %v6069_v32, %v6067_v30  ;;  %v348_v36 = vpop.f32.mrb[39].mxu0 }
 0x176   :  { %5280 = vrot.lane.b32.xlu1 %v6073_v33, %s5838_s1 }
 0x177   :  { %v6077_v37 = vpop.f32.mrb[40].mxu0 }
 0x178   :  { %v353_v38 = vpop.f32.mrb[41].mxu0 }
 0x17b   :  { %v6079_v40 = vpop.f32.mrb[42].mxu0 }
 0x17c   :  { %v6083_v41 = vpack.i.bf16 %v6079_v40, %v6077_v37  ;;  %v358_v42 = vpop.f32.mrb[43].mxu0 }
 0x17e   :  { %5285 = vrot.lane.b32.xlu0 %v6083_v41, %s5838_s1 }
 0x17f   :  { %v6087_v45 = vpop.f32.mrb[44].mxu0 }
 0x180   :  { %v363_v46 = vpop.f32.mrb[45].mxu0 }
 0x183   :  { %v6089_v47 = vpop.f32.mrb[46].mxu0 }
 0x184   :  { %v6093_v49 = vpack.i.bf16 %v6089_v47, %v6087_v45  ;;  %v368_v50 = vpop.f32.mrb[47].mxu0 }
 0x186   :  { %5290 = vrot.lane.b32.xlu1 %v6093_v49, %s5838_s1 }
 0x187   :  { %v6097_v51 = vpop.f32.mrb[48].mxu0 }
 0x188   :  { %v373_v54 = vpop.f32.mrb[49].mxu0 }
 0x18b   :  { %v6099_v55 = vpop.f32.mrb[50].mxu0 }
 0x18c   :  { %v6103_v56 = vpack.i.bf16 %v6099_v55, %v6097_v51  ;;  %v378_v58 = vpop.f32.mrb[51].mxu0 }
 0x18e   :  { %5295 = vrot.lane.b32.xlu0 %v6103_v56, %s5838_s1 }
 0x18f   :  { %v6107_v59 = vpop.f32.mrb[52].mxu0 }
 0x190   :  { %v383_v60 = vpop.f32.mrb[53].mxu0 }
 0x193   :  { %v6109_v63 = vpop.f32.mrb[54].mxu0 }
 0x194   :  { %v6113_v0 = vpack.i.bf16 %v6109_v63, %v6107_v59  ;;  %v388_v1 = vpop.f32.mrb[55].mxu0 }
 0x196   :  { %5300 = vrot.lane.b32.xlu1 %v6113_v0, %s5838_s1 }
 0x197   :  { %v6117_v3 = vpop.f32.mrb[56].mxu0 }
 0x198   :  { %v393_v4 = vpop.f32.mrb[57].mxu0 }
 0x19b   :  { %v6119_v5 = vpop.f32.mrb[58].mxu0 }
 0x19c   :  { %v6123_v8 = vpack.i.bf16 %v6119_v5, %v6117_v3  ;;  %v398_v9 = vpop.f32.mrb[59].mxu0 }
 0x19e   :  { %5305 = vrot.lane.b32.xlu0 %v6123_v8, %s5838_s1 }
 0x19f   :  { %v6127_v11 = vpop.f32.mrb[60].mxu0 }
 0x1a0   :  { %v5236_v14 = vpop.permute.xlu0 %5235  ;;  %v403_v16 = vpop.f32.mrb[61].mxu0 }
 0x1a1   :  { %v5238_v19 = vunpack.i.h.bf16 %v5236_v14  ;;  %v5237_v21 = vunpack.i.l.bf16 %v5236_v14 }
 0x1a3   :  { %v6135_v26 = vpop.f32.mrb[62].mxu0  ;;  %v4900_v29 = vpack.c.bf16 %v5238_v19, %v5237_v21 }
 0x1a4   :  { %v6139_v31 = vpack.i.bf16 %v6135_v26, %v6127_v11  ;;  %v408_v36 = vpop.f32.mrb[63].mxu0 }
 0x1a5   :  { %4902 = vmatprep.subr.msk.bf16.mxu1 %vm6131_vm1, %v4900_v29 }
 0x1a6   :  { %4905 = vmatpush3.bf16.xpose.msk.msra.mxu1 %vm6131_vm1, %v4900_v29  ;;  %5310 = vrot.lane.b32.xlu1 %v6139_v31, %s5838_s1 }
 0x1a7   :  { %v6147_v38 = vpop.f32.mrb[64].mxu0 }
 0x1a8   :  { %v5241_v42 = vpop.permute.xlu0 %5240  ;;  %v413_v46 = vpop.f32.mrb[65].mxu0 }
 0x1a9   :  { %v5243_v50 = vunpack.i.h.bf16 %v5241_v42  ;;  %v5242_v54 = vunpack.i.l.bf16 %v5241_v42 }
 0x1ab   :  { %v4906_v58 = vpack.c.bf16 %v5243_v50, %v5242_v54  ;;  %v6149_v60 = vpop.f32.mrb[66].mxu0 }
 0x1ac   :  { %v6153_v1 = vpack.i.bf16 %v6149_v60, %v6147_v38  ;;  %v418_v4 = vpop.f32.mrb[67].mxu0 }
 0x1ad   :  { %4908 = vmatprep.subr.msk.bf16.mxu1 %vm6131_vm1, %v4906_v58 }
 0x1ae   :  { %4911 = vmatpush3.bf16.xpose.msk.msra.mxu1 %vm6131_vm1, %v4906_v58  ;;  %5315 = vrot.lane.b32.xlu0 %v6153_v1, %s5838_s1 }
 0x1af   :  { %v6161_v9 = vpop.f32.mrb[68].mxu0 }
 0x1b0   :  { %v5246_v14 = vpop.permute.xlu1 %5245  ;;  %v423_v16 = vpop.f32.mrb[69].mxu0 }
 0x1b1   :  { %v5248_v19 = vunpack.i.h.bf16 %v5246_v14  ;;  %v5247_v21 = vunpack.i.l.bf16 %v5246_v14 }
 0x1b3   :  { %v4912_v29 = vpack.c.bf16 %v5248_v19, %v5247_v21  ;;  %v6163_v36 = vpop.f32.mrb[70].mxu0 }
 0x1b4   :  { %7976 = vst [vmem:[#allocation5_spill] sm:$0xff] %v6163_v36  ;;  %v6167_v42 = vpack.i.bf16 %v6163_v36, %v6161_v9  ;;  %v428_v46 = vpop.f32.mrb[71].mxu0 }
 0x1b5   :  { %4914 = vmatprep.subr.msk.bf16.mxu1 %vm6131_vm1, %v4912_v29 }
 0x1b6   :  { %7977 = vst [vmem:[#allocation6_spill] sm:$0xff] %v6167_v42  ;;  %4917 = vmatpush3.bf16.xpose.msk.msra.mxu1 %vm6131_vm1, %v4912_v29  ;;  %5320 = vrot.lane.b32.xlu1 %v6167_v42, %s5838_s1 }
 0x1b7   :  { %v6175_v50 = vpop.f32.mrb[72].mxu0 }
 0x1b8   :  { %v5251_v54 = vpop.permute.xlu1 %5250  ;;  %v433_v58 = vpop.f32.mrb[73].mxu0 }
 0x1b9   :  { %v5253_v4 = vunpack.i.h.bf16 %v5251_v54  ;;  %v5252_v14 = vunpack.i.l.bf16 %v5251_v54 }
 0x1bb   :  { %v4918_v16 = vpack.c.bf16 %v5253_v4, %v5252_v14  ;;  %v6177_v19 = vpop.f32.mrb[74].mxu0 }
 0x1bc   :  { %7978 = vst [vmem:[#allocation7_spill] sm:$0xff] %v6177_v19  ;;  %v6181_v21 = vpack.i.bf16 %v6177_v19, %v6175_v50  ;;  %v438_v46 = vpop.f32.mrb[75].mxu0 }
 0x1bd   :  { %4920 = vmatprep.subr.msk.bf16.mxu1 %vm6131_vm1, %v4918_v16 }
 0x1be   :  { %4923 = vmatpush3.bf16.xpose.msk.msra.mxu1 %vm6131_vm1, %v4918_v16  ;;  %5325 = vrot.lane.b32.xlu0 %v6181_v21, %s5838_s1 }
 0x1bf   :  { %v6189_v29 = vpop.f32.mrb[76].mxu0 }
 0x1c0   :  { %v5256_v54 = vpop.permute.xlu0 %5255  ;;  %v443_v58 = vpop.f32.mrb[77].mxu0 }
 0x1c1   :  { %v5258_v4 = vunpack.i.h.bf16 %v5256_v54  ;;  %v5257_v14 = vunpack.i.l.bf16 %v5256_v54 }
 0x1c3   :  { %v4924_v36 = vpack.c.bf16 %v5258_v4, %v5257_v14  ;;  %v6191_v42 = vpop.f32.mrb[78].mxu0 }
 0x1c4   :  { %v6195_v46 = vpack.i.bf16 %v6191_v42, %v6189_v29  ;;  %v448_v19 = vpop.f32.mrb[79].mxu0 }
 0x1c5   :  { %4421 = vmatmul.mubr.msk.f32.vlgmr.msra.gmra.mrb[0].mxu1 %vm594_vm0, %v5980_v34  ;;  %4926 = vmatprep.subr.msk.bf16.mxu1 %vm6131_vm1, %v4924_v36 }
 0x1c6   :  { %4423 = vmatprep.mubr.msk.f32.mxu1 %vm594_vm0, %v5987_v39  ;;  %4929 = vmatpush3.bf16.xpose.msk.msra.mxu1 %vm6131_vm1, %v4924_v36 }
 0x1c7   :  { %5330 = vrot.lane.b32.xlu1 %v6195_v46, %s5838_s1  ;;  %v6207_v16 = vpop.f32.mrb[80].mxu0 }
 0x1c8   :  { %v5261_v54 = vpop.permute.xlu1 %5260  ;;  %v453_v58 = vpop.f32.mrb[81].mxu0 }
 0x1c9   :  { %v5263_v19 = vunpack.i.h.bf16 %v5261_v54  ;;  %v5262_v4 = vunpack.i.l.bf16 %v5261_v54  ;;  %4424 = vmatmul.mubr.msk.f32.gmra.mrb[2].mxu1 %vm594_vm0, %v5989_v43 }
 0x1ca   :  { %4426 = vmatprep.mubr.msk.f32.mxu1 %vm594_vm0, %v5997_v48 }
 0x1cb   :  { %v4930_v34 = vpack.c.bf16 %v5263_v19, %v5262_v4  ;;  %v6213_v39 = vpop.f32.mrb[82].mxu0 }
 0x1cc   :  { %7979 = vst [vmem:[#allocation8_spill] sm:$0xff] %v6213_v39  ;;  %v6217_v36 = vpack.i.bf16 %v6213_v39, %v6207_v16  ;;  %v458_v14 = vpop.f32.mrb[83].mxu0 }
 0x1cd   :  { %4427 = vmatmul.mubr.msk.f32.gmra.mrb[4].mxu1 %vm594_vm0, %v5999_v52  ;;  %4932 = vmatprep.subr.msk.bf16.mxu1 %vm6131_vm1, %v4930_v34 }
 0x1ce   :  { %4429 = vmatprep.mubr.msk.f32.mxu1 %vm594_vm0, %v6007_v57  ;;  %4935 = vmatpush3.bf16.xpose.msk.msra.mxu1 %vm6131_vm1, %v4930_v34 }
 0x1cf   :  { %5335 = vrot.lane.b32.xlu0 %v6217_v36, %s5838_s1  ;;  %v6229_v43 = vpop.f32.mrb[84].mxu0 }
 0x1d0   :  { %7980 = vst [vmem:[#allocation9_spill] sm:$0xff] %v6229_v43  ;;  %v5266_v48 = vpop.permute.xlu0 %5265  ;;  %v463_v54 = vpop.f32.mrb[85].mxu0 }
 0x1d1   :  { %v5268_v58 = vunpack.i.h.bf16 %v5266_v48  ;;  %v5267_v19 = vunpack.i.l.bf16 %v5266_v48  ;;  %4430 = vmatmul.mubr.msk.f32.gmra.mrb[6].mxu1 %vm594_vm0, %v6009_v61 }
 0x1d2   :  { %4448 = vmatprep.mubr.msk.f32.mxu1 %vm594_vm0, %v6017_v2 }
 0x1d3   :  { %v4936_v52 = vpack.c.bf16 %v5268_v58, %v5267_v19  ;;  %v6235_v57 = vpop.f32.mrb[86].mxu0 }
 0x1d4   :  { %7981 = vst [vmem:[#allocation10_spill] sm:$0xff] %v6235_v57  ;;  %v6239_v4 = vpack.i.bf16 %v6235_v57, %v6229_v43  ;;  %v468_v34 = vpop.f32.mrb[87].mxu0 }
 0x1d5   :  { %4938 = vmatprep.subr.msk.bf16.mxu1 %vm6131_vm1, %v4936_v52 }
 0x1d6   :  { %4941 = vmatpush3.bf16.xpose.msk.msra.mxu1 %vm6131_vm1, %v4936_v52  ;;  %5340 = vrot.lane.b32.xlu1 %v6239_v4, %s5838_s1 }
 0x1d7   :  { %v6247_v61 = vpop.f32.mrb[88].mxu0 }
 0x1d8   :  { %v5271_v2 = vpop.permute.xlu1 %5270  ;;  %v473_v14 = vpop.f32.mrb[89].mxu0 }
 0x1d9   :  { %v5273_v48 = vunpack.i.h.bf16 %v5271_v2  ;;  %v5272_v54 = vunpack.i.l.bf16 %v5271_v2 }
 0x1db   :  { %v4942_v58 = vpack.c.bf16 %v5273_v48, %v5272_v54  ;;  %v6249_v19 = vpop.f32.mrb[90].mxu0 }
 0x1dc   :  { %7982 = vst [vmem:[#allocation11_spill] sm:$0xff] %v6249_v19  ;;  %v6253_v34 = vpack.i.bf16 %v6249_v19, %v6247_v61  ;;  %v478_v57 = vpop.f32.mrb[91].mxu0 }
 0x1dd   :  { %4944 = vmatprep.subr.msk.bf16.mxu1 %vm6131_vm1, %v4942_v58 }
 0x1de   :  { %4947 = vmatpush3.bf16.xpose.msk.msra.mxu1 %vm6131_vm1, %v4942_v58  ;;  %5345 = vrot.lane.b32.xlu0 %v6253_v34, %s5838_s1 }
 0x1df   :  { %v6261_v52 = vpop.f32.mrb[92].mxu0 }
 0x1e0   :  { %v5276_v2 = vpop.permute.xlu0 %5275  ;;  %v483_v14 = vpop.f32.mrb[93].mxu0 }
 0x1e1   :  { %v5278_v48 = vunpack.i.h.bf16 %v5276_v2  ;;  %v5277_v54 = vunpack.i.l.bf16 %v5276_v2 }
 0x1e3   :  { %v4948_v43 = vpack.c.bf16 %v5278_v48, %v5277_v54  ;;  %v6263_v39 = vpop.f32.mrb[94].mxu0 }
 0x1e4   :  { %v6267_v57 = vpack.i.bf16 %v6263_v39, %v6261_v52  ;;  %v488_v19 = vpop.f32.mrb[95].mxu0 }
 0x1e5   :  { %4449 = vmatmul.mubr.msk.f32.vlgmr.msra.gmra.mrb[8].mxu1 %vm594_vm0, %v6019_v6  ;;  %4950 = vmatprep.subr.msk.bf16.mxu1 %vm6131_vm1, %v4948_v43 }
 0x1e6   :  { %4451 = vmatprep.mubr.msk.f32.mxu1 %vm594_vm0, %v6027_v10  ;;  %4953 = vmatpush3.bf16.xpose.msk.msra.mxu1 %vm6131_vm1, %v4948_v43 }
 0x1e7   :  { %5350 = vrot.lane.b32.xlu1 %v6267_v57, %s5838_s1  ;;  %v6279_v58 = vpop.f32.mrb[96].mxu0 }
 0x1e8   :  { %v5281_v2 = vpop.permute.xlu1 %5280  ;;  %v493_v14 = vpop.f32.mrb[97].mxu0 }
 0x1e9   :  { %v5283_v19 = vunpack.i.h.bf16 %v5281_v2  ;;  %v5282_v48 = vunpack.i.l.bf16 %v5281_v2  ;;  %4452 = vmatmul.mubr.msk.f32.gmra.mrb[10].mxu1 %vm594_vm0, %v6029_v12 }
 0x1ea   :  { %4454 = vmatprep.mubr.msk.f32.mxu1 %vm594_vm0, %v6037_v15 }
 0x1eb   :  { %v4954_v6 = vpack.c.bf16 %v5283_v19, %v5282_v48  ;;  %v6285_v10 = vpop.f32.mrb[98].mxu0 }
 0x1ec   :  { %7983 = vst [vmem:[#allocation12_spill] sm:$0xff] %v6285_v10  ;;  %v6289_v43 = vpack.i.bf16 %v6285_v10, %v6279_v58  ;;  %v498_v54 = vpop.f32.mrb[99].mxu0 }
 0x1ed   :  { %4455 = vmatmul.mubr.msk.f32.gmra.mrb[12].mxu1 %vm594_vm0, %v6039_v17  ;;  %4956 = vmatprep.subr.msk.bf16.mxu1 %vm6131_vm1, %v4954_v6 }
 0x1ee   :  { %4457 = vmatprep.mubr.msk.f32.mxu1 %vm594_vm0, %v6047_v20  ;;  %4959 = vmatpush3.bf16.xpose.msk.msra.mxu1 %vm6131_vm1, %v4954_v6 }
 0x1ef   :  { %5355 = vrot.lane.b32.xlu0 %v6289_v43, %s5838_s1  ;;  %v6301_v12 = vpop.f32.mrb[100].mxu0 }
 0x1f0   :  { %7984 = vst [vmem:[#allocation13_spill] sm:$0xff] %v6301_v12  ;;  %v5286_v15 = vpop.permute.xlu0 %5285  ;;  %v503_v2 = vpop.f32.mrb[101].mxu0 }
 0x1f1   :  { %v5288_v14 = vunpack.i.h.bf16 %v5286_v15  ;;  %v5287_v19 = vunpack.i.l.bf16 %v5286_v15  ;;  %4458 = vmatmul.mubr.msk.f32.gmra.mrb[14].mxu1 %vm594_vm0, %v6049_v22 }
 0x1f2   :  { %4476 = vmatprep.mubr.msk.f32.mxu1 %vm594_vm0, %v6057_v25 }
 0x1f3   :  { %v4960_v17 = vpack.c.bf16 %v5288_v14, %v5287_v19  ;;  %v6307_v20 = vpop.f32.mrb[102].mxu0 }
 0x1f4   :  { %7985 = vst [vmem:[#allocation14_spill] sm:$0xff] %v6307_v20  ;;  %v6311_v48 = vpack.i.bf16 %v6307_v20, %v6301_v12  ;;  %v508_v6 = vpop.f32.mrb[103].mxu0 }
 0x1f5   :  { %4962 = vmatprep.subr.msk.bf16.mxu1 %vm6131_vm1, %v4960_v17 }
 0x1f6   :  { %4965 = vmatpush3.bf16.xpose.msk.msra.mxu1 %vm6131_vm1, %v4960_v17  ;;  %5360 = vrot.lane.b32.xlu1 %v6311_v48, %s5838_s1 }
 0x1f7   :  { %v6319_v22 = vpop.f32.mrb[104].mxu0 }
 0x1f8   :  { %v5291_v25 = vpop.permute.xlu1 %5290  ;;  %v513_v54 = vpop.f32.mrb[105].mxu0 }
 0x1f9   :  { %v5293_v15 = vunpack.i.h.bf16 %v5291_v25  ;;  %v5292_v2 = vunpack.i.l.bf16 %v5291_v25 }
 0x1fb   :  { %v4966_v14 = vpack.c.bf16 %v5293_v15, %v5292_v2  ;;  %v6321_v19 = vpop.f32.mrb[106].mxu0 }
 0x1fc   :  { %7986 = vst [vmem:[#allocation15_spill] sm:$0xff] %v6321_v19  ;;  %v6325_v6 = vpack.i.bf16 %v6321_v19, %v6319_v22  ;;  %v518_v20 = vpop.f32.mrb[107].mxu0 }
 0x1fd   :  { %4968 = vmatprep.subr.msk.bf16.mxu1 %vm6131_vm1, %v4966_v14 }
 0x1fe   :  { %4971 = vmatpush3.bf16.xpose.msk.msra.mxu1 %vm6131_vm1, %v4966_v14  ;;  %5365 = vrot.lane.b32.xlu0 %v6325_v6, %s5838_s1 }
 0x1ff   :  { %v6333_v17 = vpop.f32.mrb[108].mxu0 }
 0x200   :  { %v5296_v25 = vpop.permute.xlu0 %5295  ;;  %v523_v54 = vpop.f32.mrb[109].mxu0 }
 0x201   :  { %v5298_v15 = vunpack.i.h.bf16 %v5296_v25  ;;  %v5297_v2 = vunpack.i.l.bf16 %v5296_v25 }
 0x203   :  { %v4972_v12 = vpack.c.bf16 %v5298_v15, %v5297_v2  ;;  %v6335_v10 = vpop.f32.mrb[110].mxu0 }
 0x204   :  { %v6339_v20 = vpack.i.bf16 %v6335_v10, %v6333_v17  ;;  %v528_v19 = vpop.f32.mrb[111].mxu0 }
 0x205   :  { %4477 = vmatmul.mubr.msk.f32.vlgmr.msra.gmra.mrb[16].mxu1 %vm594_vm0, %v6059_v27  ;;  %4974 = vmatprep.subr.msk.bf16.mxu1 %vm6131_vm1, %v4972_v12 }
 0x206   :  { %4479 = vmatprep.mubr.msk.f32.mxu1 %vm594_vm0, %v6067_v30  ;;  %4977 = vmatpush3.bf16.xpose.msk.msra.mxu1 %vm6131_vm1, %v4972_v12 }
 0x207   :  { %5370 = vrot.lane.b32.xlu1 %v6339_v20, %s5838_s1  ;;  %v6351_v14 = vpop.f32.mrb[112].mxu0 }
 0x208   :  { %v5301_v25 = vpop.permute.xlu1 %5300  ;;  %v533_v54 = vpop.f32.mrb[113].mxu0 }
 0x209   :  { %v5303_v19 = vunpack.i.h.bf16 %v5301_v25  ;;  %v5302_v15 = vunpack.i.l.bf16 %v5301_v25  ;;  %4480 = vmatmul.mubr.msk.f32.gmra.mrb[18].mxu1 %vm594_vm0, %v6069_v32 }
 0x20a   :  { %4482 = vmatprep.mubr.msk.f32.mxu1 %vm594_vm0, %v6077_v37 }
 0x20b   :  { %v4978_v27 = vpack.c.bf16 %v5303_v19, %v5302_v15  ;;  %v6357_v30 = vpop.f32.mrb[114].mxu0 }
 0x20c   :  { %v6361_v12 = vpack.i.bf16 %v6357_v30, %v6351_v14  ;;  %v538_v2 = vpop.f32.mrb[115].mxu0 }
 0x20d   :  { %4483 = vmatmul.mubr.msk.f32.gmra.mrb[20].mxu1 %vm594_vm0, %v6079_v40  ;;  %4980 = vmatprep.subr.msk.bf16.mxu1 %vm6131_vm1, %v4978_v27 }
 0x20e   :  { %4485 = vmatprep.mubr.msk.f32.mxu1 %vm594_vm0, %v6087_v45  ;;  %4983 = vmatpush3.bf16.xpose.msk.msra.mxu1 %vm6131_vm1, %v4978_v27 }
 0x20f   :  { %5375 = vrot.lane.b32.xlu0 %v6361_v12, %s5838_s1  ;;  %v6373_v32 = vpop.f32.mrb[116].mxu0 }
 0x210   :  { %v5306_v37 = vpop.permute.xlu0 %5305  ;;  %v543_v25 = vpop.f32.mrb[117].mxu0 }
 0x211   :  { %v5308_v54 = vunpack.i.h.bf16 %v5306_v37  ;;  %v5307_v19 = vunpack.i.l.bf16 %v5306_v37  ;;  %4486 = vmatmul.mubr.msk.f32.gmra.mrb[22].mxu1 %vm594_vm0, %v6089_v47 }
 0x212   :  { %4504 = vmatprep.mubr.msk.f32.mxu1 %vm594_vm0, %v6097_v51 }
 0x213   :  { %v4984_v40 = vpack.c.bf16 %v5308_v54, %v5307_v19  ;;  %v6379_v45 = vpop.f32.mrb[118].mxu0 }
 0x214   :  { %7987 = vst [vmem:[#allocation16_spill] sm:$0xff] %v6379_v45  ;;  %v6383_v15 = vpack.i.bf16 %v6379_v45, %v6373_v32  ;;  %v548_v27 = vpop.f32.mrb[119].mxu0 }
 0x215   :  { %4986 = vmatprep.subr.msk.bf16.mxu1 %vm6131_vm1, %v4984_v40 }
 0x216   :  { %4989 = vmatpush3.bf16.xpose.msk.msra.mxu1 %vm6131_vm1, %v4984_v40  ;;  %5380 = vrot.lane.b32.xlu1 %v6383_v15, %s5838_s1 }
 0x217   :  { %v6391_v47 = vpop.f32.mrb[120].mxu0 }
 0x218   :  { %7988 = vst [vmem:[#allocation17_spill] sm:$0xff] %v6391_v47  ;;  %v5311_v51 = vpop.permute.xlu1 %5310  ;;  %v553_v2 = vpop.f32.mrb[121].mxu0 }
 0x219   :  { %v5313_v37 = vunpack.i.h.bf16 %v5311_v51  ;;  %v5312_v25 = vunpack.i.l.bf16 %v5311_v51 }
 0x21b   :  { %v4990_v54 = vpack.c.bf16 %v5313_v37, %v5312_v25  ;;  %v6393_v19 = vpop.f32.mrb[122].mxu0 }
 0x21c   :  { %7989 = vst [vmem:[#allocation18_spill] sm:$0xff] %v6393_v19  ;;  %v6397_v27 = vpack.i.bf16 %v6393_v19, %v6391_v47  ;;  %v558_v45 = vpop.f32.mrb[123].mxu0 }
 0x21d   :  { %4992 = vmatprep.subr.msk.bf16.mxu1 %vm6131_vm1, %v4990_v54 }
 0x21e   :  { %7990 = vst [vmem:[#allocation19_spill] sm:$0xff] %v6397_v27  ;;  %4995 = vmatpush3.bf16.xpose.msk.msra.mxu1 %vm6131_vm1, %v4990_v54  ;;  %5385 = vrot.lane.b32.xlu0 %v6397_v27, %s5838_s1 }
 0x21f   :  { %v6405_v40 = vpop.f32.mrb[124].mxu0 }
 0x220   :  { %v5316_v51 = vpop.permute.xlu0 %5315  ;;  %v563_v2 = vpop.f32.mrb[125].mxu0 }
 0x221   :  { %v5318_v37 = vunpack.i.h.bf16 %v5316_v51  ;;  %v5317_v25 = vunpack.i.l.bf16 %v5316_v51 }
 0x222   :  { %5395 = vrot.lane.b32.xlu0 %v5983_v35, %s5839_s29 }
 0x223   :  { %v4996_v45 = vpack.c.bf16 %v5318_v37, %v5317_v25  ;;  %v6409_v19 = vpop.f32.mrb[126].mxu0 }
 0x224   :  { %v6413_v47 = vpack.i.bf16 %v6409_v19, %v6405_v40  ;;  %v568_v54 = vpop.f32.mrb[127].mxu0 }
 0x225   :  { %4505 = vmatmul.mubr.msk.f32.vlgmr.msra.gmra.mrb[24].mxu1 %vm594_vm0, %v6099_v55  ;;  %4998 = vmatprep.subr.msk.bf16.mxu1 %vm6131_vm1, %v4996_v45 }
 0x226   :  { %7991 = vst [vmem:[#allocation20_spill] sm:$0xff] %v6413_v47  ;;  %4507 = vmatprep.mubr.msk.f32.mxu1 %vm594_vm0, %v6107_v59  ;;  %5001 = vmatpush3.bf16.xpose.msk.msra.mxu1 %vm6131_vm1, %v4996_v45 }
 0x227   :  { %5405 = vrot.lane.b32.xlu0 %v6003_v53, %s5839_s29  ;;  %5390 = vrot.lane.b32.xlu1 %v6413_v47, %s5838_s1 }
 0x228   :  { %v5321_v35 = vpop.permute.xlu1 %5320 }
 0x229   :  { %v5323_v51 = vunpack.i.h.bf16 %v5321_v35  ;;  %v5322_v2 = vunpack.i.l.bf16 %v5321_v35  ;;  %4508 = vmatmul.mubr.msk.f32.gmra.mrb[26].mxu1 %vm594_vm0, %v6109_v63 }
 0x22a   :  { %4510 = vmatprep.mubr.msk.f32.mxu1 %vm594_vm0, %v6117_v3 }
 0x22b   :  { %v5002_v55 = vpack.c.bf16 %v5323_v51, %v5322_v2  ;;  %5415 = vrot.lane.b32.xlu0 %v6023_v7, %s5839_s29  ;;  %5400 = vrot.lane.b32.xlu1 %v5993_v44, %s5839_s29  ;;  %v7999_v2 = vld [vmem:[#allocation12_spill] sm:$0xff] }
 0x22d   :  { %4511 = vmatmul.mubr.msk.f32.gmra.mrb[28].mxu1 %vm594_vm0, %v6119_v5  ;;  %5004 = vmatprep.subr.msk.bf16.mxu1 %vm6131_vm1, %v5002_v55  ;;  %v7993_v5 = vld [vmem:[#allocation5_spill] sm:$0xff] }
 0x22e   :  { %4513 = vmatprep.mubr.msk.f32.mxu1 %vm594_vm0, %v6127_v11  ;;  %5007 = vmatpush3.bf16.xpose.msk.msra.mxu1 %vm6131_vm1, %v5002_v55  ;;  %v7994_v11 = vld [vmem:[#allocation7_spill] sm:$0xff]  ;;  %v8000_v55 = vld [vmem:[#allocation13_spill] sm:$0xff] }
 0x22f   :  { %5425 = vrot.lane.b32.xlu0 %v6043_v18, %s5839_s29  ;;  %5410 = vrot.lane.b32.xlu1 %v6013_v62, %s5839_s29 }
 0x230   :  { %v5326_v53 = vpop.permute.xlu0 %5325 }
 0x231   :  { %v5328_v44 = vunpack.i.h.bf16 %v5326_v53  ;;  %v5327_v7 = vunpack.i.l.bf16 %v5326_v53  ;;  %4514 = vmatmul.mubr.msk.f32.gmra.mrb[30].mxu1 %vm594_vm0, %v6135_v26 }
 0x232   :  { %4532 = vmatprep.mubr.msk.f32.mxu1 %vm594_vm0, %v6147_v38 }
 0x233   :  { %v5008_v59 = vpack.c.bf16 %v5328_v44, %v5327_v7  ;;  %5430 = vrot.lane.b32.xlu0 %v6053_v23, %s5839_s29  ;;  %5420 = vrot.lane.b32.xlu1 %v6033_v13, %s5839_s29 }
 0x235   :  { %5010 = vmatprep.subr.msk.bf16.mxu1 %vm6131_vm1, %v5008_v59 }
 0x236   :  { %5013 = vmatpush3.bf16.xpose.msk.msra.mxu1 %vm6131_vm1, %v5008_v59  ;;  %v8001_v59 = vld [vmem:[#allocation14_spill] sm:$0xff] }
 0x237   :  { %5440 = vrot.lane.b32.xlu0 %v6073_v33, %s5839_s29  ;;  %5435 = vrot.lane.b32.xlu1 %v6063_v28, %s5839_s29 }
 0x239   :  { %v5331_v62 = vpop.permute.xlu1 %5330 }
 0x23a   :  { %v5333_v18 = vunpack.i.h.bf16 %v5331_v62  ;;  %v5332_v63 = vunpack.i.l.bf16 %v5331_v62  ;;  %v1859_v62 = vlaneseq }
 0x23b   :  { %5450 = vrot.lane.b32.xlu0 %v6093_v49, %s5839_s29  ;;  %5445 = vrot.lane.b32.xlu1 %v6083_v41, %s5839_s29  ;;  %v7992_v49 = vld [vmem:[#allocation6_spill] sm:$0xff] }
 0x23c   :  { %v5014_v13 = vpack.c.bf16 %v5333_v18, %v5332_v63  ;;  %v8002_v63 = vld [vmem:[#allocation15_spill] sm:$0xff] }
 0x23e   :  { %5016 = vmatprep.subr.msk.bf16.mxu1 %vm6131_vm1, %v5014_v13 }
 0x23f   :  { %5019 = vmatpush3.bf16.xpose.msk.msra.mxu1 %vm6131_vm1, %v5014_v13  ;;  %5465 = vrot.lane.b32.xlu0 %v6113_v0, %s5839_s29  ;;  %v1860_v13 = vshrl.u32 %v1859_v62, 7 }
 0x240   :  { %5455 = vrot.lane.b32.xlu1 %v6103_v56, %s5839_s29 }
 0x241   :  { %v5336_v23 = vpop.permute.xlu0 %5335 }
 0x242   :  { %v5338_v28 = vunpack.i.h.bf16 %v5336_v23  ;;  %v5337_v33 = vunpack.i.l.bf16 %v5336_v23 }
 0x243   :  { %5475 = vrot.lane.b32.xlu0 %v6123_v8, %s5839_s29 }
 0x244   :  { %v5020_v41 = vpack.c.bf16 %v5338_v28, %v5337_v33  ;;  %5460 = vrot.lane.b32.xlu1 %v6153_v1, %s5839_s29 }
 0x246   :  { %4533 = vmatmul.mubr.msk.f32.vlgmr.msra.gmra.mrb[32].mxu1 %vm594_vm0, %v6149_v60  ;;  %5022 = vmatprep.subr.msk.bf16.mxu1 %vm6131_vm1, %v5020_v41 }
 0x247   :  { %4535 = vmatprep.mubr.msk.f32.mxu1 %vm594_vm0, %v6161_v9  ;;  %5025 = vmatpush3.bf16.xpose.msk.msra.mxu1 %vm6131_vm1, %v5020_v41  ;;  %v6593_v41 = vand.u32 127, %v1859_v62 }
 0x248   :  { %5485 = vrot.lane.b32.xlu0 %v6139_v31, %s5839_s29  ;;  %5470 = vrot.lane.b32.xlu1 %v7992_v49, %s5839_s29  ;;  %v5341_v56 = vpop.permute.xlu1 %5340 }
 0x249   :  { %v5343_v0 = vunpack.i.h.bf16 %v5341_v56  ;;  %v5342_v3 = vunpack.i.l.bf16 %v5341_v56  ;;  %vm6607_vm3 = vcmp.le.s32.totalorder %v6593_v41, %v1860_v13 }
 0x24a   :  { %4536 = vmatmul.mubr.msk.f32.gmra.mrb[34].mxu1 %vm594_vm0, %v7993_v5 }
 0x24b   :  { %v5026_v8 = vpack.c.bf16 %v5343_v0, %v5342_v3  ;;  %4538 = vmatprep.mubr.msk.f32.mxu1 %vm594_vm0, %v6175_v50 }
 0x24c   :  { %5500 = vrot.lane.b32.xlu0 %v6289_v43, %s5839_s29  ;;  %5480 = vrot.lane.b32.xlu1 %v6181_v21, %s5839_s29 }
 0x24d   :  { %5028 = vmatprep.subr.msk.bf16.mxu1 %vm6131_vm1, %v5026_v8 }
 0x24e   :  { %4539 = vmatmul.mubr.msk.f32.gmra.mrb[36].mxu1 %vm594_vm0, %v7994_v11 }
 0x24f   :  { %4541 = vmatprep.mubr.msk.f32.mxu1 %vm594_vm0, %v6189_v29  ;;  %5031 = vmatpush3.bf16.xpose.msk.msra.mxu1 %vm6131_vm1, %v5026_v8 }
 0x250   :  { %5510 = vrot.lane.b32.xlu0 %v6311_v48, %s5839_s29  ;;  %5490 = vrot.lane.b32.xlu1 %v6195_v46, %s5839_s29  ;;  %v5346_v26 = vpop.permute.xlu0 %5345  ;;  %v7997_v48 = vld [vmem:[#allocation10_spill] sm:$0xff] }
 0x251   :  { %v5348_v31 = vunpack.i.h.bf16 %v5346_v26  ;;  %v5347_v38 = vunpack.i.l.bf16 %v5346_v26  ;;  %v1862_v26 = vadd.s32 16, %v1860_v13 }
 0x252   :  { %4542 = vmatmul.mubr.msk.f32.gmra.mrb[38].mxu1 %vm594_vm0, %v6191_v42 }
 0x253   :  { %v5032_v60 = vpack.c.bf16 %v5348_v31, %v5347_v38  ;;  %4560 = vmatprep.mubr.msk.f32.mxu1 %vm594_vm0, %v6207_v16  ;;  %vm6637_vm6 = vcmp.le.s32.totalorder %v6593_v41, %v1862_v26 }
 0x254   :  { %5520 = vrot.lane.b32.xlu0 %v6325_v6, %s5839_s29  ;;  %5495 = vrot.lane.b32.xlu1 %v6217_v36, %s5839_s29  ;;  %v7995_v36 = vld [vmem:[#allocation8_spill] sm:$0xff] }
 0x255   :  { %5034 = vmatprep.subr.msk.bf16.mxu1 %vm6131_vm1, %v5032_v60 }
 0x257   :  { %5037 = vmatpush3.bf16.xpose.msk.msra.mxu1 %vm6131_vm1, %v5032_v60 }
 0x258   :  { %5530 = vrot.lane.b32.xlu0 %v6339_v20, %s5839_s29  ;;  %5505 = vrot.lane.b32.xlu1 %v6239_v4, %s5839_s29  ;;  %v7996_v4 = vld [vmem:[#allocation9_spill] sm:$0xff]  ;;  %v7998_v20 = vld [vmem:[#allocation11_spill] sm:$0xff] }
 0x259   :  { %v5351_v1 = vpop.permute.xlu1 %5350 }
 0x25a   :  { %v5353_v9 = vunpack.i.h.bf16 %v5351_v1  ;;  %v5352_v42 = vunpack.i.l.bf16 %v5351_v1 }
 0x25c   :  { %v5038_v50 = vpack.c.bf16 %v5353_v9, %v5352_v42  ;;  %5515 = vrot.lane.b32.xlu1 %v6253_v34, %s5839_s29 }
 0x25e   :  { %5040 = vmatprep.subr.msk.bf16.mxu1 %vm6131_vm1, %v5038_v50 }
 0x25f   :  { %5043 = vmatpush3.bf16.xpose.msk.msra.mxu1 %vm6131_vm1, %v5038_v50 }
 0x260   :  { %5525 = vrot.lane.b32.xlu1 %v6267_v57, %s5839_s29 }
 0x261   :  { %v5356_v21 = vpop.permute.xlu0 %5355 }
 0x262   :  { %v5358_v29 = vunpack.i.h.bf16 %v5356_v21  ;;  %v5357_v46 = vunpack.i.l.bf16 %v5356_v21 }
 0x264   :  { %v5044_v16 = vpack.c.bf16 %v5358_v29, %v5357_v46  ;;  %5535 = vrot.lane.b32.xlu1 %v6361_v12, %s5839_s29 }
 0x266   :  { %4561 = vmatmul.mubr.msk.f32.vlgmr.msra.gmra.mrb[40].mxu1 %vm594_vm0, %v7995_v36  ;;  %5046 = vmatprep.subr.msk.bf16.mxu1 %vm6131_vm1, %v5044_v16 }
 0x267   :  { %4563 = vmatprep.mubr.msk.f32.mxu1 %vm594_vm0, %v7996_v4  ;;  %5049 = vmatpush3.bf16.xpose.msk.msra.mxu1 %vm6131_vm1, %v5044_v16  ;;  %v1864_v16 = vadd.s32 32, %v1860_v13 }
 0x268   :  { %5540 = vrot.lane.b32.xlu1 %v6383_v15, %s5839_s29  ;;  %v5361_v34 = vpop.permute.xlu1 %5360 }
 0x269   :  { %v5363_v57 = vunpack.i.h.bf16 %v5361_v34  ;;  %v5362_v43 = vunpack.i.l.bf16 %v5361_v34  ;;  %vm6648_vm7 = vcmp.le.s32.totalorder %v6593_v41, %v1864_v16 }
 0x26a   :  { %4564 = vmatmul.mubr.msk.f32.gmra.mrb[42].mxu1 %vm594_vm0, %v7997_v48 }
 0x26b   :  { %v5050_v6 = vpack.c.bf16 %v5363_v57, %v5362_v43  ;;  %4566 = vmatprep.mubr.msk.f32.mxu1 %vm594_vm0, %v6247_v61 }
 0x26d   :  { %5052 = vmatprep.subr.msk.bf16.mxu1 %vm6131_vm1, %v5050_v6 }
 0x26e   :  { %4567 = vmatmul.mubr.msk.f32.gmra.mrb[44].mxu1 %vm594_vm0, %v7998_v20 }
 0x26f   :  { %4569 = vmatprep.mubr.msk.f32.mxu1 %vm594_vm0, %v6261_v52  ;;  %5055 = vmatpush3.bf16.xpose.msk.msra.mxu1 %vm6131_vm1, %v5050_v6  ;;  %v1865_v6 = vadd.s32 40, %v1860_v13 }
 0x270   :  { %v5366_v12 = vpop.permute.xlu0 %5365 }
 0x271   :  { %v5368_v15 = vunpack.i.h.bf16 %v5366_v12  ;;  %v5367_v37 = vunpack.i.l.bf16 %v5366_v12  ;;  %vm6659_vm8 = vcmp.le.s32.totalorder %v6593_v41, %v1865_v6 }
 0x272   :  { %4570 = vmatmul.mubr.msk.f32.gmra.mrb[46].mxu1 %vm594_vm0, %v6263_v39 }
 0x273   :  { %v5056_v25 = vpack.c.bf16 %v5368_v15, %v5367_v37  ;;  %4588 = vmatprep.mubr.msk.f32.mxu1 %vm594_vm0, %v6279_v58  ;;  %v1866_v37 = vadd.s32 48, %v1860_v13 }
 0x275   :  { %5058 = vmatprep.subr.msk.bf16.mxu1 %vm6131_vm1, %v5056_v25  ;;  %vm6672_vm9 = vcmp.le.s32.totalorder %v6593_v41, %v1866_v37 }
 0x277   :  { %5061 = vmatpush3.bf16.xpose.msk.msra.mxu1 %vm6131_vm1, %v5056_v25 }
 0x279   :  { %v5371_v61 = vpop.permute.xlu1 %5370 }
 0x27a   :  { %v5373_v52 = vunpack.i.h.bf16 %v5371_v61  ;;  %v5372_v45 = vunpack.i.l.bf16 %v5371_v61 }
 0x27c   :  { %v5062_v54 = vpack.c.bf16 %v5373_v52, %v5372_v45 }
 0x27e   :  { %5064 = vmatprep.subr.msk.bf16.mxu1 %vm6131_vm1, %v5062_v54 }
 0x27f   :  { %5067 = vmatpush3.bf16.xpose.msk.msra.mxu1 %vm6131_vm1, %v5062_v54 }
 0x281   :  { %v5376_v39 = vpop.permute.xlu0 %5375 }
 0x282   :  { %v5378_v35 = vunpack.i.h.bf16 %v5376_v39  ;;  %v5377_v51 = vunpack.i.l.bf16 %v5376_v39 }
 0x284   :  { %v5068_v58 = vpack.c.bf16 %v5378_v35, %v5377_v51  ;;  %v1867_v35 = vadd.s32 56, %v1860_v13 }
 0x286   :  { %4589 = vmatmul.mubr.msk.f32.vlgmr.msra.gmra.mrb[48].mxu1 %vm594_vm0, %v7999_v2  ;;  %5070 = vmatprep.subr.msk.bf16.mxu1 %vm6131_vm1, %v5068_v58  ;;  %vm6687_vm10 = vcmp.le.s32.totalorder %v6593_v41, %v1867_v35 }
 0x287   :  { %4591 = vmatprep.mubr.msk.f32.mxu1 %vm594_vm0, %v8000_v55  ;;  %5073 = vmatpush3.bf16.xpose.msk.msra.mxu1 %vm6131_vm1, %v5068_v58 }
 0x288   :  { %v5381_v53 = vpop.permute.xlu1 %5380 }
 0x289   :  { %v5383_v44 = vunpack.i.h.bf16 %v5381_v53  ;;  %v5382_v7 = vunpack.i.l.bf16 %v5381_v53 }
 0x28a   :  { %4592 = vmatmul.mubr.msk.f32.gmra.mrb[50].mxu1 %vm594_vm0, %v8001_v59 }
 0x28b   :  { %v5074_v18 = vpack.c.bf16 %v5383_v44, %v5382_v7  ;;  %4594 = vmatprep.mubr.msk.f32.mxu1 %vm594_vm0, %v6319_v22  ;;  %v1861_v22 = vadd.s32 8, %v1860_v13 }
 0x28d   :  { %5076 = vmatprep.subr.msk.bf16.mxu1 %vm6131_vm1, %v5074_v18  ;;  %vm6600_vm2 = vcmp.le.s32.totalorder %v6593_v41, %v1861_v22 }
 0x28e   :  { %4595 = vmatmul.mubr.msk.f32.gmra.mrb[52].mxu1 %vm594_vm0, %v8002_v63 }
 0x28f   :  { %4597 = vmatprep.mubr.msk.f32.mxu1 %vm594_vm0, %v6333_v17  ;;  %5079 = vmatpush3.bf16.xpose.msk.msra.mxu1 %vm6131_vm1, %v5074_v18  ;;  %v1863_v17 = vadd.s32 24, %v1860_v13 }
 0x290   :  { %v5386_v23 = vpop.permute.xlu0 %5385 }
 0x291   :  { %v5388_v28 = vunpack.i.h.bf16 %v5386_v23  ;;  %v5387_v33 = vunpack.i.l.bf16 %v5386_v23  ;;  %vm6618_vm5 = vcmp.le.s32.totalorder %v6593_v41, %v1863_v17  ;;  %v8019_v17 = vld [vmem:[#allocation16_spill] sm:$0xff] }
 0x292   :  { %4598 = vmatmul.mubr.msk.f32.gmra.mrb[54].mxu1 %vm594_vm0, %v6335_v10 }
 0x293   :  { %v5080_v49 = vpack.c.bf16 %v5388_v28, %v5387_v33  ;;  %4616 = vmatprep.mubr.msk.f32.mxu1 %vm594_vm0, %v6351_v14 }
 0x294   :  { %v5396_v56 = vpop.permute.xlu0 %5395 }
 0x295   :  { %5082 = vmatprep.subr.msk.bf16.mxu1 %vm6131_vm1, %v5080_v49  ;;  %v5398_v31 = vunpack.i.h.bf16 %v5396_v56  ;;  %v5397_v38 = vunpack.i.l.bf16 %v5396_v56 }
 0x297   :  { %5085 = vmatpush3.bf16.xpose.msk.msra.mxu1 %vm6131_vm1, %v5080_v49  ;;  %v5092_v48 = vpack.c.bf16 %v5398_v31, %v5397_v38 }
 0x298   :  { %v4422_v10 = vpop.f32.mrb[0].mxu1 }
 0x299   :  { %v6613_v14 = vsel %vm6600_vm2, %v4422_v10, -inf  ;;  %v6615_v5 = vpop.permute.xlu0 %5405  ;;  %v5391_v8 = vpop.permute.xlu1 %5390 }
 0x29a   :  { %v5393_v60 = vunpack.i.h.bf16 %v5391_v8  ;;  %v5392_v1 = vunpack.i.l.bf16 %v5391_v8  ;;  %v693_v9 = vpop.f32.mrb[1].mxu1  ;;  %v1962_v50 = vsel %vm1958_vm4, %v6613_v14, -inf  ;;  %v5408_v62 = vunpack.i.h.bf16 %v6615_v5 }
 0x29b   :  { %v6624_v42 = vsel %vm6607_vm3, %v693_v9, -inf  ;;  %1963 = vmax.xlane.f32.xlu1 %v1962_v50  ;;  %v5407_v18 = vunpack.i.l.bf16 %v6615_v5  ;;  %v8020_v5 = vld [vmem:[#allocation17_spill] sm:$0xff] }
 0x29c   :  { %v5086_v21 = vpack.c.bf16 %v5393_v60, %v5392_v1  ;;  %v4425_v29 = vpop.f32.mrb[2].mxu1  ;;  %v1959_v46 = vsel %vm1958_vm4, %v6624_v42, -inf  ;;  %v8021_v1 = vld [vmem:[#allocation18_spill] sm:$0xff] }
 0x29d   :  { %v6632_v36 = vsel %vm6618_vm5, %v4425_v29, -inf  ;;  %1960 = vmax.xlane.f32.xlu0 %v1959_v46  ;;  %v6634_v4 = vpop.permute.xlu0 %5415  ;;  %v5401_v34 = vpop.permute.xlu1 %5400  ;;  %v5100_v10 = vpack.c.bf16 %v5408_v62, %v5407_v18 }
 0x29e   :  { %v703_v57 = vpop.f32.mrb[3].mxu1  ;;  %5088 = vmatprep.subr.msk.bf16.mxu1 %vm6131_vm1, %v5086_v21  ;;  %v1968_v20 = vsel %vm1958_vm4, %v6632_v36, -inf  ;;  %v5403_v52 = vunpack.i.h.bf16 %v5401_v34  ;;  %v5402_v45 = vunpack.i.l.bf16 %v5401_v34  ;;  %v5418_v38 = vunpack.i.h.bf16 %v6634_v4 }
 0x29f   :  { %5091 = vmatpush3.bf16.xpose.msk.msra.mxu1 %vm6131_vm1, %v5086_v21  ;;  %v6654_v25 = vsel %vm6637_vm6, %v703_v57, -inf  ;;  %v5417_v60 = vunpack.i.l.bf16 %v6634_v4 }
 0x2a0   :  { %5093 = vmatprep.subr.bf16.mxu1 %v5092_v48  ;;  %v4428_v12 = vpop.f32.mrb[4].mxu1  ;;  %v1965_v2 = vsel %vm1958_vm4, %v6654_v25, -inf  ;;  %v5096_v23 = vpack.c.bf16 %v5403_v52, %v5402_v45 }
 0x2a1   :  { %1969 = vmax.xlane.f32.xlu0 %v1968_v20  ;;  %v6656_v61 = vpop.permute.xlu0 %5425  ;;  %v5411_v24 = vpop.permute.xlu1 %5410  ;;  %v6678_v44 = vsel %vm6659_vm8, %v4428_v12, -inf  ;;  %v6729_v29 = vpack.c.bf16 %v5418_v38, %v5417_v60 }
 0x2a2   :  { %v713_v39 = vpop.f32.mrb[5].mxu1  ;;  %v1974_v33 = vsel %vm1958_vm4, %v6678_v44, -inf  ;;  %v5413_v56 = vunpack.i.h.bf16 %v5411_v24 }
 0x2a3   :  { %v6665_v51 = vsel %vm6648_vm7, %v713_v39, -inf }
 0x2a4   :  { %v4431_v58 = vpop.f32.mrb[6].mxu1  ;;  %v1971_v55 = vsel %vm1958_vm4, %v6665_v51, -inf }
 0x2a5   :  { %1966 = vmax.xlane.f32.xlu0 %v1965_v2  ;;  %v6680_v7 = vpop.permute.xlu0 %5430  ;;  %1972 = vmax.xlane.f32.xlu1 %v1971_v55  ;;  %v6682_v59 = vpop.permute.xlu1 %5420  ;;  %v6705_v41 = vsel %vm6687_vm10, %v4431_v58, -inf }
 0x2a6   :  { %v723_v13 = vpop.f32.mrb[7].mxu1  ;;  %4617 = vmatmul.mubr.msk.f32.vlgmr.msra.gmra.mrb[56].mxu1 %vm594_vm0, %v6357_v30  ;;  %v1980_v8 = vsel %vm1958_vm4, %v6705_v41, -inf }
 0x2a7   :  { %v6695_v28 = vsel %vm6672_vm9, %v723_v13, -inf  ;;  %4619 = vmatprep.mubr.msk.f32.mxu1 %vm594_vm0, %v6373_v32  ;;  %5095 = vmatpush3.bf16.msra.mxu1 %v5092_v48  ;;  %v5412_v32 = vunpack.i.l.bf16 %v5411_v24 }
 0x2a8   :  { %5097 = vmatprep.subr.bf16.mxu1 %v5096_v23  ;;  %v1977_v22 = vsel %vm1958_vm4, %v6695_v28, -inf }
 0x2a9   :  { %1975 = vmax.xlane.f32.xlu0 %v1974_v33  ;;  %v6707_v30 = vpop.permute.xlu0 %5440  ;;  %1978 = vmax.xlane.f32.xlu1 %v1977_v22  ;;  %v6709_v49 = vpop.permute.xlu1 %5435  ;;  %v5104_v9 = vpack.c.bf16 %v5413_v56, %v5412_v32 }
 0x2aa   :  { %4620 = vmatmul.mubr.msk.f32.gmra.mrb[58].mxu1 %vm594_vm0, %v8019_v17 }
 0x2ab   :  { %4622 = vmatprep.mubr.msk.f32.mxu1 %vm594_vm0, %v8020_v5  ;;  %5099 = vmatpush3.bf16.msra.mxu1 %v5096_v23 }
 0x2ac   :  { %5101 = vmatprep.subr.bf16.mxu1 %v5100_v10 }
 0x2ad   :  { %1981 = vmax.xlane.f32.xlu0 %v1980_v8  ;;  %v6717_v26 = vpop.permute.xlu0 %5450  ;;  %v6719_v31 = vpop.permute.xlu1 %5445 }
 0x2ae   :  { %4623 = vmatmul.mubr.msk.f32.gmra.mrb[60].mxu1 %vm594_vm0, %v8021_v1 }
 0x2af   :  { %4625 = vmatprep.mubr.msk.f32.mxu1 %vm594_vm0, %v6405_v40  ;;  %5103 = vmatpush3.bf16.msra.mxu1 %v5100_v10 }
 0x2b0   :  { %5105 = vmatprep.subr.bf16.mxu1 %v5104_v9 }
 0x2b1   :  { %v5466_v50 = vpop.permute.xlu0 %5465 }
 0x2b2   :  { %v5456_v21 = vpop.permute.xlu1 %5455  ;;  %4626 = vmatmul.mubr.msk.f32.gmra.mrb[62].mxu1 %vm594_vm0, %v6409_v19  ;;  %v5468_v46 = vunpack.i.h.bf16 %v5466_v50  ;;  %v5467_v16 = vunpack.i.l.bf16 %v5466_v50 }
 0x2b3   :  { %v5458_v34 = vunpack.i.h.bf16 %v5456_v21  ;;  %v5457_v4 = vunpack.i.l.bf16 %v5456_v21  ;;  %5107 = vmatpush3.bf16.msra.mxu1 %v5104_v9 }
 0x2b4   :  { %5109 = vmatprep.subr.bf16.mxu1 %v6729_v29  ;;  %v5144_v12 = vpack.c.bf16 %v5468_v46, %v5467_v16 }
 0x2b5   :  { %v5476_v57 = vpop.permute.xlu0 %5475  ;;  %v5140_v48 = vpack.c.bf16 %v5458_v34, %v5457_v4 }
 0x2b6   :  { %v6732_v6 = vpop.permute.xlu1 %5460  ;;  %v5478_v40 = vunpack.i.h.bf16 %v5476_v57  ;;  %v5477_v20 = vunpack.i.l.bf16 %v5476_v57 }
 0x2b7   :  { %5141 = vmatprep.subr.bf16.mxu0 %v5140_v48 }
 0x2b8   :  { %5143 = vmatpush3.bf16.msra.mxu0 %v5140_v48  ;;  %v4450_v37 = vpop.f32.mrb[8].mxu1  ;;  %v5148_v55 = vpack.c.bf16 %v5478_v40, %v5477_v20 }
 0x2b9   :  { %5145 = vmatprep.subr.bf16.mxu0 %v5144_v12  ;;  %v6736_v19 = vsel %vm6600_vm2, %v4450_v37, -inf  ;;  %v854_v24 = vpop.f32.mrb[9].mxu1 }
 0x2ba   :  { %v5486_v52 = vpop.permute.xlu0 %5485  ;;  %v6738_v45 = vpop.permute.xlu1 %5470  ;;  %v1986_v39 = vsel %vm1958_vm4, %v6736_v19, -inf  ;;  %v6744_v2 = vsel %vm6607_vm3, %v854_v24, -inf }
 0x2bb   :  { %v5488_v35 = vunpack.i.h.bf16 %v5486_v52  ;;  %v5487_v58 = vunpack.i.l.bf16 %v5486_v52  ;;  %1987 = vmax.xlane.f32.xlu1 %v1986_v39  ;;  %v1983_v33 = vsel %vm1958_vm4, %v6744_v2, -inf }
 0x2bc   :  { %5147 = vmatpush3.bf16.msra.mxu0 %v5144_v12  ;;  %v4453_v62 = vpop.f32.mrb[10].mxu1 }
 0x2bd   :  { %5149 = vmatprep.subr.bf16.mxu0 %v5148_v55  ;;  %v864_v18 = vpop.f32.mrb[11].mxu1  ;;  %v6756_v22 = vsel %vm6618_vm5, %v4453_v62, -inf  ;;  %v5152_v56 = vpack.c.bf16 %v5488_v35, %v5487_v58 }
 0x2be   :  { %v6746_v13 = vpop.permute.xlu1 %5480  ;;  %v6750_v23 = vsel %vm6637_vm6, %v864_v18, -inf  ;;  %v1992_v38 = vsel %vm1958_vm4, %v6756_v22, -inf }
 0x2bf   :  { %1984 = vmax.xlane.f32.xlu1 %v1983_v33  ;;  %v1989_v17 = vsel %vm1958_vm4, %v6750_v23, -inf }
 0x2c0   :  { %5151 = vmatpush3.bf16.msra.mxu0 %v5148_v55  ;;  %v4456_v32 = vpop.f32.mrb[12].mxu1  ;;  %1990 = vmax.xlane.f32.xlu0 %v1989_v17 }
 0x2c1   :  { %5153 = vmatprep.subr.bf16.mxu0 %v5152_v56  ;;  %v6762_v10 = vsel %vm6659_vm8, %v4456_v32, -inf  ;;  %v874_v5 = vpop.f32.mrb[13].mxu1 }
 0x2c2   :  { %v6764_v8 = vpop.permute.xlu1 %5490  ;;  %v1998_v60 = vsel %vm1958_vm4, %v6762_v10, -inf  ;;  %v6772_v1 = vsel %vm6648_vm7, %v874_v5, -inf }
 0x2c3   :  { %1993 = vmax.xlane.f32.xlu1 %v1992_v38  ;;  %v1995_v46 = vsel %vm1958_vm4, %v6772_v1, -inf }
 0x2c4   :  { %5155 = vmatpush3.bf16.msra.mxu0 %v5152_v56  ;;  %v4459_v9 = vpop.f32.mrb[14].mxu1  ;;  %1999 = vmax.xlane.f32.xlu0 %v1998_v60 }
 0x2c5   :  { %v884_v50 = vpop.f32.mrb[15].mxu1  ;;  %v6778_v16 = vsel %vm6687_vm10, %v4459_v9, -inf }
 0x2c6   :  { %v5496_v21 = vpop.permute.xlu1 %5495  ;;  %v2004_v48 = vsel %vm1958_vm4, %v6778_v16, -inf  ;;  %v6786_v40 = vsel %vm6672_vm9, %v884_v50, -inf }
 0x2c7   :  { %v5498_v34 = vunpack.i.h.bf16 %v5496_v21  ;;  %v5497_v4 = vunpack.i.l.bf16 %v5496_v21  ;;  %1996 = vmax.xlane.f32.xlu1 %v1995_v46  ;;  %v2001_v20 = vsel %vm1958_vm4, %v6786_v40, -inf }
 0x2c9   :  { %v6780_v57 = vpack.c.bf16 %v5498_v34, %v5497_v4 }
 0x2cb   :  { %8022 = vst [vmem:[#allocation6_spill] sm:$0xff] %v6780_v57  ;;  %5173 = vmatprep.subr.bf16.mxu0 %v6780_v57  ;;  %2005 = vmax.xlane.f32.xlu1 %v2004_v48 }
 0x2cf   :  { %2002 = vmax.xlane.f32.xlu1 %v2001_v20 }
 0x2d8   :  { %v4478_v12 = vpop.f32.mrb[16].mxu1 }
 0x2d9   :  { %v6793_v37 = vsel %vm6600_vm2, %v4478_v12, -inf  ;;  %v1015_v24 = vpop.f32.mrb[17].mxu1 }
 0x2da   :  { %v6797_v52 = vsel %vm6607_vm3, %v1015_v24, -inf  ;;  %v2010_v39 = vsel %vm1958_vm4, %v6793_v37, -inf }
 0x2db   :  { %2011 = vmax.xlane.f32.xlu0 %v2010_v39  ;;  %v2007_v35 = vsel %vm1958_vm4, %v6797_v52, -inf }
 0x2dc   :  { %v4481_v58 = vpop.f32.mrb[18].mxu1  ;;  %2008 = vmax.xlane.f32.xlu1 %v2007_v35 }
 0x2dd   :  { %v6805_v55 = vsel %vm6618_vm5, %v4481_v58, -inf  ;;  %v1025_v62 = vpop.f32.mrb[19].mxu1 }
 0x2de   :  { %v2016_v18 = vsel %vm1958_vm4, %v6805_v55, -inf  ;;  %v6811_v33 = vsel %vm6637_vm6, %v1025_v62, -inf }
 0x2df   :  { %v2013_v17 = vsel %vm1958_vm4, %v6811_v33, -inf }
 0x2e0   :  { %v4484_v56 = vpop.f32.mrb[20].mxu1  ;;  %2017 = vmax.xlane.f32.xlu1 %v2016_v18 }
 0x2e1   :  { %v1035_v32 = vpop.f32.mrb[21].mxu1  ;;  %v6817_v5 = vsel %vm6659_vm8, %v4484_v56, -inf }
 0x2e2   :  { %v2022_v21 = vsel %vm1958_vm4, %v6817_v5, -inf  ;;  %v6829_v46 = vsel %vm6648_vm7, %v1035_v32, -inf }
 0x2e3   :  { %v2019_v34 = vsel %vm1958_vm4, %v6829_v46, -inf }
 0x2e4   :  { %v4487_v38 = vpop.f32.mrb[22].mxu1  ;;  %2014 = vmax.xlane.f32.xlu1 %v2013_v17 }
 0x2e5   :  { %v1045_v60 = vpop.f32.mrb[23].mxu1  ;;  %v6835_v4 = vsel %vm6687_vm10, %v4487_v38, -inf }
 0x2e6   :  { %v6821_v9 = vsel %vm6672_vm9, %v1045_v60, -inf  ;;  %v2028_v48 = vsel %vm1958_vm4, %v6835_v4, -inf }
 0x2e7   :  { %v2025_v50 = vsel %vm1958_vm4, %v6821_v9, -inf }
 0x2e8   :  { %2026 = vmax.xlane.f32.xlu0 %v2025_v50  ;;  %2023 = vmax.xlane.f32.xlu1 %v2022_v21 }
 0x2ec   :  { %2020 = vmax.xlane.f32.xlu1 %v2019_v34 }
 0x2f0   :  { %2029 = vmax.xlane.f32.xlu1 %v2028_v48 }
 0x2f8   :  { %v4506_v20 = vpop.f32.mrb[24].mxu1 }
 0x2f9   :  { %v6841_v12 = vsel %vm6600_vm2, %v4506_v20, -inf  ;;  %v1176_v24 = vpop.f32.mrb[25].mxu1 }
 0x2fa   :  { %v6845_v39 = vsel %vm6607_vm3, %v1176_v24, -inf  ;;  %v2034_v35 = vsel %vm1958_vm4, %v6841_v12, -inf }
 0x2fb   :  { %2035 = vmax.xlane.f32.xlu1 %v2034_v35  ;;  %v2031_v58 = vsel %vm1958_vm4, %v6845_v39, -inf }
 0x2fc   :  { %v4509_v62 = vpop.f32.mrb[26].mxu1  ;;  %2032 = vmax.xlane.f32.xlu0 %v2031_v58 }
 0x2fd   :  { %v6853_v18 = vsel %vm6618_vm5, %v4509_v62, -inf  ;;  %v1186_v56 = vpop.f32.mrb[27].mxu1 }
 0x2fe   :  { %v6857_v32 = vsel %vm6637_vm6, %v1186_v56, -inf  ;;  %v2040_v17 = vsel %vm1958_vm4, %v6853_v18, -inf }
 0x2ff   :  { %2041 = vmax.xlane.f32.xlu1 %v2040_v17  ;;  %v2037_v38 = vsel %vm1958_vm4, %v6857_v32, -inf }
 0x300   :  { %v4512_v60 = vpop.f32.mrb[28].mxu1  ;;  %2038 = vmax.xlane.f32.xlu0 %v2037_v38  ;;  %v6887_v38 = vpop.permute.xlu1 %5505 }
 0x301   :  { %v6865_v50 = vsel %vm6659_vm8, %v4512_v60, -inf  ;;  %v1196_v21 = vpop.f32.mrb[29].mxu1  ;;  %8027 = vst [vmem:[#allocation10_spill] sm:$0xff] %v6887_v38 }
 0x302   :  { %8023 = vst [vmem:[#allocation5_spill] sm:$0xff] %v6865_v50  ;;  %v2046_v34 = vsel %vm1958_vm4, %v6865_v50, -inf  ;;  %v6871_v48 = vsel %vm6648_vm7, %v1196_v21, -inf  ;;  %v6891_v21 = vpop.permute.xlu0 %5500 }
 0x303   :  { %8024 = vst [vmem:[#allocation7_spill] sm:$0xff] %v6871_v48  ;;  %2047 = vmax.xlane.f32.xlu1 %v2046_v34  ;;  %v2043_v20 = vsel %vm1958_vm4, %v6871_v48, -inf }
 0x304   :  { %v4515_v24 = vpop.f32.mrb[30].mxu1  ;;  %2044 = vmax.xlane.f32.xlu0 %v2043_v20  ;;  %v6889_v60 = vpop.permute.xlu1 %5515 }
 0x305   :  { %v6877_v35 = vsel %vm6687_vm10, %v4515_v24, -inf  ;;  %v1206_v58 = vpop.f32.mrb[31].mxu1  ;;  %8028 = vst [vmem:[#allocation11_spill] sm:$0xff] %v6889_v60 }
 0x306   :  { %8025 = vst [vmem:[#allocation8_spill] sm:$0xff] %v6877_v35  ;;  %v2052_v62 = vsel %vm1958_vm4, %v6877_v35, -inf  ;;  %v6883_v56 = vsel %vm6672_vm9, %v1206_v58, -inf  ;;  %v6895_v24 = vpop.permute.xlu0 %5510 }
 0x307   :  { %8026 = vst [vmem:[#allocation9_spill] sm:$0xff] %v6883_v56  ;;  %2053 = vmax.xlane.f32.xlu1 %v2052_v62  ;;  %v2049_v17 = vsel %vm1958_vm4, %v6883_v56, -inf  ;;  %8030 = vst [vmem:[#allocation13_spill] sm:$0xff] %v6895_v24 }
 0x308   :  { %2050 = vmax.xlane.f32.xlu0 %v2049_v17  ;;  %v6893_v34 = vpop.permute.xlu1 %5525 }
 0x309   :  { %8029 = vst [vmem:[#allocation12_spill] sm:$0xff] %v6893_v34  ;;  %v8056_v53 = vld [vmem:[#allocation5_spill] sm:$0xff] }
 0x30c   :  { %v6913_v60 = vpop.permute.xlu1 %5535 }
 0x30d   :  { %8034 = vst [vmem:[#allocation17_spill] sm:$0xff] %v6913_v60 }
 0x319   :  { %v4534_v20 = vpop.f32.mrb[32].mxu1 }
 0x31a   :  { %v6899_v58 = vsel %vm6600_vm2, %v4534_v20, -inf  ;;  %v1337_v62 = vpop.f32.mrb[33].mxu1 }
 0x31b   :  { %8031 = vst [vmem:[#allocation14_spill] sm:$0xff] %v6899_v58  ;;  %v2058_v27 = vsel %vm1958_vm4, %v6899_v58, -inf  ;;  %v6905_v17 = vsel %vm6607_vm3, %v1337_v62, -inf }
 0x31c   :  { %8032 = vst [vmem:[#allocation15_spill] sm:$0xff] %v6905_v17  ;;  %2059 = vmax.xlane.f32.xlu1 %v2058_v27  ;;  %v2055_v57 = vsel %vm1958_vm4, %v6905_v17, -inf  ;;  %v6921_v27 = vpop.permute.xlu0 %5520 }
 0x31d   :  { %v4537_v34 = vpop.f32.mrb[34].mxu1  ;;  %2056 = vmax.xlane.f32.xlu0 %v2055_v57  ;;  %8036 = vst [vmem:[#allocation21_spill] sm:$0xff] %v6921_v27 }
 0x31e   :  { %v6911_v24 = vsel %vm6618_vm5, %v4537_v34, -inf  ;;  %v1347_v20 = vpop.f32.mrb[35].mxu1 }
 0x31f   :  { %8033 = vst [vmem:[#allocation16_spill] sm:$0xff] %v6911_v24  ;;  %v6917_v58 = vsel %vm6637_vm6, %v1347_v20, -inf  ;;  %v2064_v62 = vsel %vm1958_vm4, %v6911_v24, -inf  ;;  %v6937_v24 = vpop.permute.xlu1 %5540 }
 0x320   :  { %8035 = vst [vmem:[#allocation18_spill] sm:$0xff] %v6917_v58  ;;  %v2061_v17 = vsel %vm1958_vm4, %v6917_v58, -inf  ;;  %8039 = vst [vmem:[#allocation24_spill] sm:$0xff] %v6937_v24 }
 0x321   :  { %v4540_v57 = vpop.f32.mrb[36].mxu1  ;;  %2065 = vmax.xlane.f32.xlu0 %v2064_v62  ;;  %2062 = vmax.xlane.f32.xlu1 %v2061_v17  ;;  %v6939_v17 = vpop.permute.xlu0 %5530 }
 0x322   :  { %v6927_v34 = vsel %vm6659_vm8, %v4540_v57, -inf  ;;  %v1357_v60 = vpop.f32.mrb[37].mxu1  ;;  %8040 = vst [vmem:[#allocation25_spill] sm:$0xff] %v6939_v17 }
 0x323   :  { %8037 = vst [vmem:[#allocation22_spill] sm:$0xff] %v6927_v34  ;;  %v2070_v20 = vsel %vm1958_vm4, %v6927_v34, -inf  ;;  %v6933_v47 = vsel %vm6648_vm7, %v1357_v60, -inf }
 0x324   :  { %8038 = vst [vmem:[#allocation23_spill] sm:$0xff] %v6933_v47  ;;  %v2067_v27 = vsel %vm1958_vm4, %v6933_v47, -inf }
 0x325   :  { %v4543_v58 = vpop.f32.mrb[38].mxu1  ;;  %2068 = vmax.xlane.f32.xlu0 %v2067_v27  ;;  %2071 = vmax.xlane.f32.xlu1 %v2070_v20 }
 0x326   :  { %v6943_v62 = vsel %vm6687_vm10, %v4543_v58, -inf  ;;  %v1367_v57 = vpop.f32.mrb[39].mxu1 }
 0x327   :  { %8041 = vst [vmem:[#allocation26_spill] sm:$0xff] %v6943_v62  ;;  %v6947_v34 = vsel %vm6672_vm9, %v1367_v57, -inf  ;;  %v2076_v60 = vsel %vm1958_vm4, %v6943_v62, -inf }
 0x328   :  { %8042 = vst [vmem:[#allocation27_spill] sm:$0xff] %v6947_v34  ;;  %v2073_v24 = vsel %vm1958_vm4, %v6947_v34, -inf  ;;  %v1964_v27 = vpop.xlane.xlu1 %1963 }
 0x329   :  { %2077 = vmax.xlane.f32.xlu0 %v2076_v60  ;;  %2074 = vmax.xlane.f32.xlu1 %v2073_v24  ;;  %v2152_v20 = vsub.f32 %v6613_v14, %v1964_v27  ;;  %v5423_v14 = vunpack.i.h.bf16 %v6682_v59 }
 0x32a   :  { %v1961_v17 = vpop.xlane.xlu0 %1960 }
 0x32b   :  { %v2151_v58 = vsub.f32 %v6624_v42, %v1961_v17  ;;  %v2217_v47 = vmul.f32 1.442695, %v2152_v20  ;;  %v5422_v17 = vunpack.i.l.bf16 %v6682_v59 }
 0x32d   :  { %v2215_v56 = vmul.f32 1.442695, %v2151_v58 }
 0x32e   :  { %v1970_v38 = vpop.xlane.xlu0 %1969 }
 0x32f   :  { %5554 = vpow2.f32 %v2215_v56  ;;  %v2154_v57 = vsub.f32 %v6632_v36, %v1970_v38  ;;  %v5427_v38 = vunpack.i.l.bf16 %v6656_v61 }
 0x330   :  { %5556 = vpow2.f32 %v2217_v47 }
 0x331   :  { %v2221_v24 = vmul.f32 1.442695, %v2154_v57 }
 0x332   :  { %v1967_v35 = vpop.xlane.xlu0 %1966  ;;  %v1973_v62 = vpop.xlane.xlu1 %1972 }
 0x333   :  { %v2153_v48 = vsub.f32 %v6654_v25, %v1967_v35  ;;  %v2155_v60 = vsub.f32 %v6665_v51, %v1973_v62  ;;  %v5428_v25 = vunpack.i.h.bf16 %v6656_v61 }
 0x335   :  { %v2219_v34 = vmul.f32 1.442695, %v2153_v48  ;;  %v2223_v27 = vmul.f32 1.442695, %v2155_v60 }
 0x336   :  { %v1976_v50 = vpop.xlane.xlu0 %1975  ;;  %v1979_v42 = vpop.xlane.xlu1 %1978 }
 0x337   :  { %5558 = vpow2.f32 %v2219_v34  ;;  %v2156_v47 = vsub.f32 %v6678_v44, %v1976_v50  ;;  %v2157_v36 = vsub.f32 %v6695_v28, %v1979_v42  ;;  %v5112_v34 = vpack.c.bf16 %v5423_v14, %v5422_v17 }
 0x338   :  { %5560 = vpow2.f32 %v2221_v24  ;;  %v5433_v24 = vunpack.i.h.bf16 %v6680_v7 }
 0x339   :  { %v6962_v56 = vpop.eup %5554  ;;  %v2225_v51 = vmul.f32 1.442695, %v2156_v47  ;;  %v4562_v35 = vpop.f32.mrb[40].mxu1  ;;  %5562 = vpow2.f32 %v2223_v27  ;;  %v2227_v62 = vmul.f32 1.442695, %v2157_v36  ;;  %v5432_v27 = vunpack.i.l.bf16 %v6680_v7 }
 0x33a   :  { %v6965_v48 = vpop.eup %5556  ;;  %v6970_v59 = vsel %vm6600_vm2, %v4562_v35, -inf  ;;  %v1498_v44 = vpop.f32.mrb[41].mxu1  ;;  %4644 = vmatprep.mubr.msk.f32.mxu1 %vm1958_vm4, %v6962_v56  ;;  %v5438_v35 = vunpack.i.h.bf16 %v6709_v49 }
 0x33b   :  { %v1982_v50 = vpop.xlane.xlu0 %1981  ;;  %5564 = vpow2.f32 %v2225_v51  ;;  %4645 = vmatmul.mubr.msk.f32.vlgmr.msra.gmra.mrb[64].mxu1 %vm1958_vm4, %v6965_v48  ;;  %v2082_v61 = vsel %vm1958_vm4, %v6970_v59, -inf  ;;  %v6981_v20 = vsel %vm6607_vm3, %v1498_v44, -inf }
 0x33c   :  { %v2158_v28 = vsub.f32 %v6705_v41, %v1982_v50  ;;  %5111 = vmatpush3.bf16.msra.mxu1 %v6729_v29  ;;  %2083 = vmax.xlane.f32.xlu0 %v2082_v61  ;;  %5566 = vpow2.f32 %v2227_v62  ;;  %v5116_v41 = vpack.c.bf16 %v5428_v25, %v5427_v38  ;;  %v2079_v14 = vsel %vm1958_vm4, %v6981_v20, -inf }
 0x33d   :  { %5113 = vmatprep.subr.bf16.mxu1 %v5112_v34  ;;  %v4565_v57 = vpop.f32.mrb[42].mxu1  ;;  %v5120_v25 = vpack.c.bf16 %v5433_v24, %v5432_v27  ;;  %v5437_v38 = vunpack.i.l.bf16 %v6709_v49 }
 0x33e   :  { %v2229_v58 = vmul.f32 1.442695, %v2158_v28  ;;  %v1508_v60 = vpop.f32.mrb[43].mxu1  ;;  %v6990_v42 = vsel %vm6618_vm5, %v4565_v57, -inf }
 0x33f   :  { %v2088_v7 = vsel %vm1958_vm4, %v6990_v42, -inf  ;;  %v7008_v62 = vsel %vm6637_vm6, %v1508_v60, -inf  ;;  %v7030_v60 = vpack.c.bf16 %v5438_v35, %v5437_v38 }
 0x340   :  { %5568 = vpow2.f32 %v2229_v58  ;;  %5115 = vmatpush3.bf16.msra.mxu1 %v5112_v34  ;;  %2080 = vmax.xlane.f32.xlu0 %v2079_v14  ;;  %v2085_v49 = vsel %vm1958_vm4, %v7008_v62, -inf }
 0x341   :  { %v6992_v29 = vpop.eup %5558  ;;  %5117 = vmatprep.subr.bf16.mxu1 %v5116_v41  ;;  %v4568_v17 = vpop.f32.mrb[44].mxu1 }
 0x342   :  { %v6994_v47 = vpop.eup %5560  ;;  %v1518_v36 = vpop.f32.mrb[45].mxu1  ;;  %4647 = vmatprep.mubr.msk.f32.mxu1 %vm1958_vm4, %v6992_v29  ;;  %v7028_v57 = vsel %vm6659_vm8, %v4568_v17, -inf }
 0x343   :  { %4648 = vmatmul.mubr.msk.f32.gmra.mrb[66].mxu1 %vm1958_vm4, %v6994_v47  ;;  %v7002_v51 = vpop.eup %5562  ;;  %v2094_v14 = vsel %vm1958_vm4, %v7028_v57, -inf  ;;  %v7044_v17 = vsel %vm6648_vm7, %v1518_v36, -inf }
 0x344   :  { %5119 = vmatpush3.bf16.msra.mxu1 %v5116_v41  ;;  %2089 = vmax.xlane.f32.xlu0 %v2088_v7 }
 0x345   :  { %v7010_v44 = vpop.eup %5564  ;;  %4650 = vmatprep.mubr.msk.f32.mxu1 %vm1958_vm4, %v7002_v51  ;;  %5121 = vmatprep.subr.bf16.mxu1 %v5120_v25  ;;  %v4571_v50 = vpop.f32.mrb[46].mxu1 }
 0x346   :  { %v7016_v28 = vsel %vm6687_vm10, %v4571_v50, -inf  ;;  %v1528_v61 = vpop.f32.mrb[47].mxu1  ;;  %v7024_v58 = vpop.eup %5566  ;;  %v2091_v50 = vsel %vm1958_vm4, %v7044_v17, -inf }
 0x347   :  { %v2100_v34 = vsel %vm1958_vm4, %v7016_v28, -inf  ;;  %4651 = vmatmul.mubr.msk.f32.gmra.mrb[68].mxu1 %vm1958_vm4, %v7010_v44 }
 0x348   :  { %5123 = vmatpush3.bf16.msra.mxu1 %v5120_v25  ;;  %2086 = vmax.xlane.f32.xlu0 %v2085_v49  ;;  %v1988_v41 = vpop.xlane.xlu1 %1987 }
 0x349   :  { %2101 = vmax.xlane.f32.xlu1 %v2100_v34  ;;  %4653 = vmatprep.mubr.msk.f32.mxu1 %vm1958_vm4, %v7024_v58  ;;  %v2160_v27 = vsub.f32 %v6736_v19, %v1988_v41  ;;  %v7052_v34 = vsel %vm6672_vm9, %v1528_v61, -inf }
 0x34a   :  { %v7032_v24 = vpop.eup %5568  ;;  %5125 = vmatprep.subr.bf16.mxu1 %v7030_v60 }
 0x34b   :  { %4654 = vmatmul.mubr.msk.f32.gmra.mrb[70].mxu1 %vm1958_vm4, %v7032_v24  ;;  %v2233_v35 = vmul.f32 1.442695, %v2160_v27  ;;  %v2097_v27 = vsel %vm1958_vm4, %v7052_v34, -inf }
 0x34c   :  { %2095 = vmax.xlane.f32.xlu0 %v2094_v14  ;;  %v1985_v7 = vpop.xlane.xlu1 %1984 }
 0x34d   :  { %v2159_v25 = vsub.f32 %v6744_v2, %v1985_v7  ;;  %v1991_v38 = vpop.xlane.xlu0 %1990 }
 0x34e   :  { %v2161_v49 = vsub.f32 %v6750_v23, %v1991_v38 }
 0x34f   :  { %v2231_v19 = vmul.f32 1.442695, %v2159_v25 }
 0x350   :  { %2092 = vmax.xlane.f32.xlu0 %v2091_v50  ;;  %v1994_v41 = vpop.xlane.xlu1 %1993  ;;  %v2235_v36 = vmul.f32 1.442695, %v2161_v49  ;;  %v5443_v49 = vunpack.i.h.bf16 %v6707_v30 }
 0x351   :  { %5570 = vpow2.f32 %v2231_v19  ;;  %v2162_v14 = vsub.f32 %v6756_v22, %v1994_v41  ;;  %v2000_v2 = vpop.xlane.xlu0 %1999  ;;  %v5442_v22 = vunpack.i.l.bf16 %v6707_v30 }
 0x352   :  { %5572 = vpow2.f32 %v2233_v35  ;;  %v2164_v25 = vsub.f32 %v6762_v10, %v2000_v2 }
 0x353   :  { %5574 = vpow2.f32 %v2235_v36  ;;  %v2237_v7 = vmul.f32 1.442695, %v2162_v14 }
 0x354   :  { %2098 = vmax.xlane.f32.xlu0 %v2097_v27  ;;  %v1997_v23 = vpop.xlane.xlu1 %1996  ;;  %v2241_v38 = vmul.f32 1.442695, %v2164_v25  ;;  %v5448_v25 = vunpack.i.h.bf16 %v6719_v31 }
 0x355   :  { %5576 = vpow2.f32 %v2237_v7  ;;  %v2163_v61 = vsub.f32 %v6772_v1, %v1997_v23  ;;  %v5447_v23 = vunpack.i.l.bf16 %v6719_v31 }
 0x357   :  { %v2239_v50 = vmul.f32 1.442695, %v2163_v61 }
 0x358   :  { %v2006_v19 = vpop.xlane.xlu1 %2005 }
 0x359   :  { %5578 = vpow2.f32 %v2239_v50  ;;  %v4590_v35 = vpop.f32.mrb[48].mxu1  ;;  %v2166_v10 = vsub.f32 %v6778_v16, %v2006_v19  ;;  %v5128_v50 = vpack.c.bf16 %v5443_v49, %v5442_v22 }
 0x35a   :  { %5580 = vpow2.f32 %v2241_v38  ;;  %v7063_v41 = vsel %vm6600_vm2, %v4590_v35, -inf  ;;  %v1659_v36 = vpop.f32.mrb[49].mxu1 }
 0x35b   :  { %v7066_v14 = vpop.eup %5570  ;;  %v2106_v1 = vsel %vm1958_vm4, %v7063_v41, -inf  ;;  %v7072_v2 = vsel %vm6607_vm3, %v1659_v36, -inf  ;;  %v2245_v19 = vmul.f32 1.442695, %v2166_v10  ;;  %v5452_v10 = vunpack.i.l.bf16 %v6717_v26 }
 0x35c   :  { %v7074_v30 = vpop.eup %5572  ;;  %v2103_v27 = vsel %vm1958_vm4, %v7072_v2, -inf  ;;  %2107 = vmax.xlane.f32.xlu1 %v2106_v1  ;;  %v2003_v7 = vpop.xlane.xlu1 %2002  ;;  %4672 = vmatprep.mubr.msk.f32.mxu1 %vm1958_vm4, %v7066_v14 }
 0x35d   :  { %v7080_v16 = vpop.eup %5574  ;;  %v4593_v61 = vpop.f32.mrb[50].mxu1  ;;  %2104 = vmax.xlane.f32.xlu0 %v2103_v27  ;;  %v2165_v38 = vsub.f32 %v6786_v40, %v2003_v7  ;;  %4673 = vmatmul.mubr.msk.f32.vlgmr.msra.gmra.mrb[72].mxu1 %vm1958_vm4, %v7074_v30  ;;  %v5132_v7 = vpack.c.bf16 %v5448_v25, %v5447_v23  ;;  %v5463_v23 = vunpack.i.h.bf16 %v6732_v6 }
 0x35e   :  { %v7089_v35 = vsel %vm6618_vm5, %v4593_v61, -inf  ;;  %v1669_v36 = vpop.f32.mrb[51].mxu1  ;;  %5127 = vmatpush3.bf16.msra.mxu1 %v7030_v60  ;;  %4675 = vmatprep.mubr.msk.f32.mxu1 %vm1958_vm4, %v7080_v16  ;;  %v5453_v60 = vunpack.i.h.bf16 %v6717_v26 }
 0x35f   :  { %8043 = vst [vmem:[#allocation28_spill] sm:$0xff] %v7089_v35  ;;  %v7094_v31 = vpop.eup %5576  ;;  %v2112_v40 = vsel %vm1958_vm4, %v7089_v35, -inf  ;;  %v2243_v1 = vmul.f32 1.442695, %v2165_v38  ;;  %v7100_v49 = vsel %vm6637_vm6, %v1669_v36, -inf  ;;  %5129 = vmatprep.subr.bf16.mxu1 %v5128_v50 }
 0x360   :  { %8044 = vst [vmem:[#allocation29_spill] sm:$0xff] %v7100_v49  ;;  %v2109_v22 = vsel %vm1958_vm4, %v7100_v49, -inf  ;;  %2113 = vmax.xlane.f32.xlu1 %v2112_v40 }
 0x361   :  { %5582 = vpow2.f32 %v2243_v1  ;;  %v4596_v27 = vpop.f32.mrb[52].mxu1  ;;  %2110 = vmax.xlane.f32.xlu0 %v2109_v22  ;;  %4676 = vmatmul.mubr.msk.f32.gmra.mrb[74].mxu1 %vm1958_vm4, %v7094_v31  ;;  %v5136_v22 = vpack.c.bf16 %v5453_v60, %v5452_v10 }
 0x362   :  { %5584 = vpow2.f32 %v2245_v19  ;;  %v7110_v61 = vsel %vm6659_vm8, %v4596_v27, -inf  ;;  %v1679_v38 = vpop.f32.mrb[53].mxu1  ;;  %5131 = vmatpush3.bf16.msra.mxu1 %v5128_v50  ;;  %v5462_v50 = vunpack.i.l.bf16 %v6732_v6 }
 0x363   :  { %8045 = vst [vmem:[#allocation30_spill] sm:$0xff] %v7110_v61  ;;  %v7112_v36 = vpop.eup %5578  ;;  %v2118_v40 = vsel %vm1958_vm4, %v7110_v61, -inf  ;;  %v7118_v26 = vsel %vm6648_vm7, %v1679_v38, -inf  ;;  %5133 = vmatprep.subr.bf16.mxu1 %v5132_v7 }
 0x364   :  { %8046 = vst [vmem:[#allocation31_spill] sm:$0xff] %v7118_v26  ;;  %v7120_v1 = vpop.eup %5580  ;;  %v2115_v25 = vsel %vm1958_vm4, %v7118_v26, -inf  ;;  %2119 = vmax.xlane.f32.xlu1 %v2118_v40  ;;  %4678 = vmatprep.mubr.msk.f32.mxu1 %vm1958_vm4, %v7112_v36  ;;  %v5156_v60 = vpack.c.bf16 %v5463_v23, %v5462_v50 }
 0x365   :  { %v4599_v19 = vpop.f32.mrb[54].mxu1  ;;  %2116 = vmax.xlane.f32.xlu0 %v2115_v25  ;;  %4679 = vmatmul.mubr.msk.f32.gmra.mrb[76].mxu1 %vm1958_vm4, %v7120_v1 }
 0x366   :  { %v7132_v27 = vsel %vm6687_vm10, %v4599_v19, -inf  ;;  %v1689_v38 = vpop.f32.mrb[55].mxu1  ;;  %5135 = vmatpush3.bf16.msra.mxu1 %v5132_v7 }
 0x367   :  { %8047 = vst [vmem:[#allocation32_spill] sm:$0xff] %v7132_v27  ;;  %v2124_v40 = vsel %vm1958_vm4, %v7132_v27, -inf  ;;  %5137 = vmatprep.subr.bf16.mxu1 %v5136_v22  ;;  %v7138_v6 = vsel %vm6672_vm9, %v1689_v38, -inf }
 0x368   :  { %v2012_v26 = vpop.xlane.xlu0 %2011  ;;  %v2121_v27 = vsel %vm1958_vm4, %v7138_v6, -inf }
 0x369   :  { %2125 = vmax.xlane.f32.xlu0 %v2124_v40  ;;  %v2168_v25 = vsub.f32 %v6793_v37, %v2012_v26  ;;  %v2009_v61 = vpop.xlane.xlu1 %2008  ;;  %v5473_v40 = vunpack.i.h.bf16 %v6738_v45 }
 0x36a   :  { %v2167_v10 = vsub.f32 %v6797_v52, %v2009_v61  ;;  %5139 = vmatpush3.bf16.msra.mxu1 %v5136_v22 }
 0x36b   :  { %v7142_v19 = vpop.eup %5582  ;;  %v2249_v7 = vmul.f32 1.442695, %v2168_v25  ;;  %5157 = vmatprep.subr.bf16.mxu1 %v5156_v60  ;;  %v5472_v25 = vunpack.i.l.bf16 %v6738_v45 }
 0x36c   :  { %v7144_v49 = vpop.eup %5584  ;;  %v2247_v35 = vmul.f32 1.442695, %v2167_v10  ;;  %4681 = vmatprep.mubr.msk.f32.mxu1 %vm1958_vm4, %v7142_v19 }
 0x36d   :  { %2122 = vmax.xlane.f32.xlu0 %v2121_v27  ;;  %v2018_v37 = vpop.xlane.xlu1 %2017  ;;  %4682 = vmatmul.mubr.msk.f32.gmra.mrb[78].mxu1 %vm1958_vm4, %v7144_v49 }
 0x36e   :  { %5586 = vpow2.f32 %v2247_v35  ;;  %v2170_v52 = vsub.f32 %v6805_v55, %v2018_v37 }
 0x36f   :  { %5588 = vpow2.f32 %v2249_v7  ;;  %v5482_v7 = vunpack.i.l.bf16 %v6746_v13 }
 0x370   :  { %v2253_v23 = vmul.f32 1.442695, %v2170_v52 }
 0x371   :  { %v2015_v61 = vpop.xlane.xlu1 %2014 }
 0x372   :  { %v2169_v26 = vsub.f32 %v6811_v33, %v2015_v61  ;;  %v5483_v33 = vunpack.i.h.bf16 %v6746_v13 }
 0x374   :  { %v2251_v50 = vmul.f32 1.442695, %v2169_v26 }
 0x375   :  { %v2027_v22 = vpop.xlane.xlu0 %2026  ;;  %v2024_v38 = vpop.xlane.xlu1 %2023 }
 0x376   :  { %5590 = vpow2.f32 %v2251_v50  ;;  %v2172_v27 = vsub.f32 %v6817_v5, %v2024_v38  ;;  %v2173_v35 = vsub.f32 %v6821_v9, %v2027_v22  ;;  %v5160_v9 = vpack.c.bf16 %v5473_v40, %v5472_v25 }
 0x377   :  { %5592 = vpow2.f32 %v2253_v23  ;;  %v5164_v38 = vpack.c.bf16 %v5483_v33, %v5482_v7  ;;  %v5492_v40 = vunpack.i.l.bf16 %v6764_v8 }
 0x378   :  { %v7157_v10 = vpop.eup %5586  ;;  %v2257_v26 = vmul.f32 1.442695, %v2172_v27  ;;  %v2259_v23 = vmul.f32 1.442695, %v2173_v35 }
 0x379   :  { %v7160_v55 = vpop.eup %5588  ;;  %v4618_v37 = vpop.f32.mrb[56].mxu1  ;;  %4700 = vmatprep.mubr.msk.f32.mxu1 %vm1958_vm4, %v7157_v10 }
 0x37a   :  { %v2021_v52 = vpop.xlane.xlu1 %2020  ;;  %v7168_v45 = vsel %vm6600_vm2, %v4618_v37, -inf  ;;  %v1820_v61 = vpop.f32.mrb[57].mxu1  ;;  %4701 = vmatmul.mubr.msk.f32.vlgmr.msra.gmra.mrb[80].mxu1 %vm1958_vm4, %v7160_v55  ;;  %v5493_v37 = vunpack.i.h.bf16 %v6764_v8 }
 0x37b   :  { %8048 = vst [vmem:[#allocation33_spill] sm:$0xff] %v7168_v45  ;;  %v2171_v5 = vsub.f32 %v6829_v46, %v2021_v52  ;;  %v2130_v13 = vsel %vm1958_vm4, %v7168_v45, -inf  ;;  %5159 = vmatpush3.bf16.msra.mxu1 %v5156_v60  ;;  %v7177_v22 = vsel %vm6607_vm3, %v1820_v61, -inf  ;;  %v5502_v52 = vunpack.i.l.bf16 %v6891_v21 }
 0x37c   :  { %8049 = vst [vmem:[#allocation34_spill] sm:$0xff] %v7177_v22  ;;  %5161 = vmatprep.subr.bf16.mxu1 %v5160_v9  ;;  %2131 = vmax.xlane.f32.xlu1 %v2130_v13  ;;  %v2127_v60 = vsel %vm1958_vm4, %v7177_v22, -inf  ;;  %v5168_v61 = vpack.c.bf16 %v5493_v37, %v5492_v40  ;;  %v8073_v22 = vld [vmem:[#allocation23_spill] sm:$0xff] }
 0x37d   :  { %v2255_v50 = vmul.f32 1.442695, %v2171_v5  ;;  %v4621_v0 = vpop.f32.mrb[58].mxu1 }
 0x37e   :  { %v2030_v46 = vpop.xlane.xlu1 %2029  ;;  %v1830_v27 = vpop.f32.mrb[59].mxu1  ;;  %v7188_v35 = vsel %vm6618_vm5, %v4621_v0, -inf }
 0x37f   :  { %5594 = vpow2.f32 %v2255_v50  ;;  %v2174_v25 = vsub.f32 %v6835_v4, %v2030_v46  ;;  %5163 = vmatpush3.bf16.msra.mxu1 %v5160_v9  ;;  %8050 = vst [vmem:[#allocation35_spill] sm:$0xff] %v7188_v35  ;;  %v5503_v4 = vunpack.i.h.bf16 %v6891_v21  ;;  %v2136_v9 = vsel %vm1958_vm4, %v7188_v35, -inf }
 0x380   :  { %5596 = vpow2.f32 %v2257_v26  ;;  %v7184_v3 = vpop.eup %5590  ;;  %5165 = vmatprep.subr.bf16.mxu1 %v5164_v38  ;;  %2128 = vmax.xlane.f32.xlu1 %v2127_v60  ;;  %v7208_v21 = vsel %vm6637_vm6, %v1830_v27, -inf }
 0x381   :  { %5598 = vpow2.f32 %v2259_v23  ;;  %v2261_v33 = vmul.f32 1.442695, %v2174_v25  ;;  %v7190_v8 = vpop.eup %5592  ;;  %v4624_v7 = vpop.f32.mrb[60].mxu1  ;;  %4703 = vmatprep.mubr.msk.f32.mxu1 %vm1958_vm4, %v7184_v3  ;;  %8052 = vst [vmem:[#allocation37_spill] sm:$0xff] %v7208_v21  ;;  %v7214_v50 = vpack.c.bf16 %v5503_v4, %v5502_v52  ;;  %v2133_v0 = vsel %vm1958_vm4, %v7208_v21, -inf }
 0x382   :  { %v7198_v5 = vsel %vm6659_vm8, %v4624_v7, -inf  ;;  %v1840_v11 = vpop.f32.mrb[61].mxu1  ;;  %4704 = vmatmul.mubr.msk.f32.gmra.mrb[82].mxu1 %vm1958_vm4, %v7190_v8 }
 0x383   :  { %5600 = vpow2.f32 %v2261_v33  ;;  %8051 = vst [vmem:[#allocation36_spill] sm:$0xff] %v7198_v5  ;;  %v2142_v26 = vsel %vm1958_vm4, %v7198_v5, -inf  ;;  %5167 = vmatpush3.bf16.msra.mxu1 %v5164_v38  ;;  %v7212_v54 = vsel %vm6648_vm7, %v1840_v11, -inf  ;;  %v8072_v5 = vld [vmem:[#allocation18_spill] sm:$0xff] }
 0x384   :  { %5169 = vmatprep.subr.bf16.mxu1 %v5168_v61  ;;  %2137 = vmax.xlane.f32.xlu1 %v2136_v9  ;;  %8053 = vst [vmem:[#allocation38_spill] sm:$0xff] %v7212_v54  ;;  %v2139_v43 = vsel %vm1958_vm4, %v7212_v54, -inf }
 0x385   :  { %2143 = vmax.xlane.f32.xlu0 %v2142_v26  ;;  %v4627_v13 = vpop.f32.mrb[62].mxu1 }
 0x386   :  { %v1850_v23 = vpop.f32.mrb[63].mxu1  ;;  %v7227_v37 = vsel %vm6687_vm10, %v4627_v13, -inf }
 0x387   :  { %5171 = vmatpush3.bf16.msra.mxu1 %v5168_v61  ;;  %8054 = vst [vmem:[#allocation39_spill] sm:$0xff] %v7227_v37  ;;  %v7245_v52 = vsel %vm6672_vm9, %v1850_v23, -inf }
 0x388   :  { %5189 = vmatprep.subr.bf16.mxu1 %v7214_v50  ;;  %2134 = vmax.xlane.f32.xlu1 %v2133_v0  ;;  %v2036_v15 = vpop.xlane.xlu1 %2035  ;;  %8055 = vst [vmem:[#allocation40_spill] sm:$0xff] %v7245_v52  ;;  %v2145_v26 = vsel %vm1958_vm4, %v7245_v52, -inf }
 0x389   :  { %v7218_v46 = vpop.eup %5594  ;;  %2140 = vmax.xlane.f32.xlu0 %v2139_v43  ;;  %v2176_v40 = vsub.f32 %v6841_v12, %v2036_v15  ;;  %v2033_v25 = vpop.xlane.xlu0 %2032  ;;  %v2148_v12 = vsel %vm1958_vm4, %v7227_v37, -inf }
 0x38a   :  { %v7223_v38 = vpop.eup %5596  ;;  %4706 = vmatprep.mubr.msk.f32.mxu1 %vm1958_vm4, %v7218_v46  ;;  %v2175_v60 = vsub.f32 %v6845_v39, %v2033_v25 }
 0x38b   :  { %v7232_v27 = vpop.eup %5598  ;;  %4707 = vmatmul.mubr.msk.f32.gmra.mrb[84].mxu1 %vm1958_vm4, %v7223_v38  ;;  %v2265_v33 = vmul.f32 1.442695, %v2176_v40 }
 0x38c   :  { %4709 = vmatprep.mubr.msk.f32.mxu1 %vm1958_vm4, %v7232_v27  ;;  %v2263_v4 = vmul.f32 1.442695, %v2175_v60  ;;  %v2042_v7 = vpop.xlane.xlu1 %2041  ;;  %v8058_v60 = vld [vmem:[#allocation8_spill] sm:$0xff] }
 0x38d   :  { %v7239_v63 = vpop.eup %5600  ;;  %2149 = vmax.xlane.f32.xlu0 %v2148_v12  ;;  %v2178_v39 = vsub.f32 %v6853_v18, %v2042_v7  ;;  %v2039_v11 = vpop.xlane.xlu0 %2038  ;;  %v8057_v18 = vld [vmem:[#allocation7_spill] sm:$0xff] }
 0x38e   :  { %5602 = vpow2.f32 %v2263_v4  ;;  %v2177_v61 = vsub.f32 %v6857_v32, %v2039_v11  ;;  %v8059_v4 = vld [vmem:[#allocation10_spill] sm:$0xff]  ;;  %v8060_v11 = vld [vmem:[#allocation9_spill] sm:$0xff] }
 0x38f   :  { %4710 = vmatmul.mubr.msk.f32.gmra.mrb[86].mxu1 %vm1958_vm4, %v7239_v63  ;;  %5604 = vpow2.f32 %v2265_v33  ;;  %v2269_v9 = vmul.f32 1.442695, %v2178_v39  ;;  %v5508_v7 = vunpack.i.h.bf16 %v8059_v4  ;;  %v5507_v39 = vunpack.i.l.bf16 %v8059_v4 }
 0x390   :  { %v2267_v13 = vmul.f32 1.442695, %v2177_v61  ;;  %v2048_v0 = vpop.xlane.xlu1 %2047 }
 0x391   :  { %2146 = vmax.xlane.f32.xlu0 %v2145_v26  ;;  %v2180_v23 = vsub.f32 %v8056_v53, %v2048_v0  ;;  %v2045_v43 = vpop.xlane.xlu0 %2044 }
 0x392   :  { %5606 = vpow2.f32 %v2267_v13  ;;  %v2179_v15 = vsub.f32 %v8057_v18, %v2045_v43 }
 0x393   :  { %5608 = vpow2.f32 %v2269_v9  ;;  %v2273_v40 = vmul.f32 1.442695, %v2180_v23  ;;  %v8061_v9 = vld [vmem:[#allocation20_spill] sm:$0xff]  ;;  %v8062_v23 = vld [vmem:[#allocation11_spill] sm:$0xff] }
 0x394   :  { %v2271_v32 = vmul.f32 1.442695, %v2179_v15  ;;  %v2054_v25 = vpop.xlane.xlu1 %2053  ;;  %v5518_v43 = vunpack.i.h.bf16 %v8062_v23  ;;  %v5517_v18 = vunpack.i.l.bf16 %v8062_v23  ;;  %v5176_v15 = vpack.c.bf16 %v5508_v7, %v5507_v39 }
 0x395   :  { %v2182_v12 = vsub.f32 %v8058_v60, %v2054_v25  ;;  %v2051_v33 = vpop.xlane.xlu0 %2050  ;;  %v8064_v60 = vld [vmem:[#allocation12_spill] sm:$0xff] }
 0x396   :  { %5610 = vpow2.f32 %v2271_v32  ;;  %v2181_v61 = vsub.f32 %v8060_v11, %v2051_v33  ;;  %v5527_v33 = vunpack.i.l.bf16 %v8064_v60  ;;  %v5180_v4 = vpack.c.bf16 %v5518_v43, %v5517_v18  ;;  %v8066_v11 = vld [vmem:[#allocation17_spill] sm:$0xff]  ;;  %v8068_v18 = vld [vmem:[#allocation19_spill] sm:$0xff] }
 0x397   :  { %5612 = vpow2.f32 %v2273_v40  ;;  %v2277_v26 = vmul.f32 1.442695, %v2182_v12  ;;  %v8063_v40 = vld [vmem:[#allocation6_spill] sm:$0xff]  ;;  %v5528_v12 = vunpack.i.h.bf16 %v8064_v60 }
 0x398   :  { %v7259_v0 = vpop.eup %5602  ;;  %v2275_v13 = vmul.f32 1.442695, %v2181_v61  ;;  %v5538_v61 = vunpack.i.h.bf16 %v8066_v11 }
 0x399   :  { %v7261_v53 = vpop.eup %5604  ;;  %5550 = vrot.lane.b32.xlu1 %v8061_v9, %s5839_s29  ;;  %4728 = vmatprep.mubr.msk.f32.mxu0 %vm1958_vm4, %v7259_v0 }
 0x39a   :  { %5614 = vpow2.f32 %v2275_v13  ;;  %4729 = vmatmul.mubr.msk.f32.vlgmr.msra.gmra.mrb[128].mxu0 %vm1958_vm4, %v7261_v53  ;;  %v5184_v13 = vpack.c.bf16 %v5528_v12, %v5527_v33  ;;  %v8070_v33 = vld [vmem:[#allocation15_spill] sm:$0xff] }
 0x39b   :  { %5616 = vpow2.f32 %v2277_v26  ;;  %5175 = vmatpush3.bf16.msra.mxu0 %v8063_v40  ;;  %v5537_v26 = vunpack.i.l.bf16 %v8066_v11  ;;  %v8069_v40 = vld [vmem:[#allocation14_spill] sm:$0xff] }
 0x39c   :  { %v7272_v32 = vpop.eup %5606  ;;  %5177 = vmatprep.subr.bf16.mxu0 %v5176_v15 }
 0x39d   :  { %v7274_v25 = vpop.eup %5608  ;;  %4731 = vmatprep.mubr.msk.f32.mxu0 %vm1958_vm4, %v7272_v32  ;;  %v7298_v43 = vpack.c.bf16 %v5538_v61, %v5537_v26  ;;  %v8071_v26 = vld [vmem:[#allocation16_spill] sm:$0xff] }
 0x39e   :  { %4732 = vmatmul.mubr.msk.f32.gmra.mrb[130].mxu0 %vm1958_vm4, %v7274_v25 }
 0x39f   :  { %5179 = vmatpush3.bf16.msra.mxu0 %v5176_v15 }
 0x3a0   :  { %v7282_v7 = vpop.eup %5610  ;;  %5181 = vmatprep.subr.bf16.mxu0 %v5180_v4 }
 0x3a1   :  { %v7284_v39 = vpop.eup %5612  ;;  %4734 = vmatprep.mubr.msk.f32.mxu0 %vm1958_vm4, %v7282_v7 }
 0x3a2   :  { %8065 = vst [vmem:[#allocation5_spill] sm:$0xff] %v7284_v39  ;;  %4735 = vmatmul.mubr.msk.f32.gmra.mrb[132].mxu0 %vm1958_vm4, %v7284_v39 }
 0x3a3   :  { %5183 = vmatpush3.bf16.msra.mxu0 %v5180_v4 }
 0x3a4   :  { %v7292_v9 = vpop.eup %5614  ;;  %5185 = vmatprep.subr.bf16.mxu0 %v5184_v13 }
 0x3a5   :  { %v7294_v23 = vpop.eup %5616  ;;  %4737 = vmatprep.mubr.msk.f32.mxu0 %vm1958_vm4, %v7292_v9 }
 0x3a6   :  { %8067 = vst [vmem:[#allocation7_spill] sm:$0xff] %v7294_v23  ;;  %4738 = vmatmul.mubr.msk.f32.gmra.mrb[134].mxu0 %vm1958_vm4, %v7294_v23 }
 0x3a7   :  { %5545 = vrot.lane.b32.xlu0 %v8068_v18, %s5839_s29  ;;  %5187 = vmatpush3.bf16.msra.mxu0 %v5184_v13 }
 0x3a8   :  { %5205 = vmatprep.subr.bf16.mxu0 %v7298_v43 }
 0x3a9   :  { %v2060_v15 = vpop.xlane.xlu1 %2059 }
 0x3aa   :  { %v2184_v60 = vsub.f32 %v8069_v40, %v2060_v15  ;;  %v2057_v12 = vpop.xlane.xlu0 %2056  ;;  %v8074_v40 = vld [vmem:[#allocation22_spill] sm:$0xff] }
 0x3ab   :  { %v2183_v4 = vsub.f32 %v8070_v33, %v2057_v12  ;;  %v8075_v33 = vld [vmem:[#allocation13_spill] sm:$0xff] }
 0x3ac   :  { %v2281_v11 = vmul.f32 1.442695, %v2184_v60 }
 0x3ad   :  { %v2279_v37 = vmul.f32 1.442695, %v2183_v4  ;;  %v5513_v4 = vunpack.i.h.bf16 %v8075_v33 }
 0x3ae   :  { %v2066_v52 = vpop.xlane.xlu0 %2065  ;;  %v2063_v61 = vpop.xlane.xlu1 %2062 }
 0x3af   :  { %5618 = vpow2.f32 %v2279_v37  ;;  %v2186_v35 = vsub.f32 %v8071_v26, %v2066_v52  ;;  %v2185_v45 = vsub.f32 %v8072_v5, %v2063_v61  ;;  %v5512_v52 = vunpack.i.l.bf16 %v8075_v33  ;;  %v8076_v5 = vld [vmem:[#allocation26_spill] sm:$0xff]  ;;  %v8078_v26 = vld [vmem:[#allocation21_spill] sm:$0xff] }
 0x3b0   :  { %5620 = vpow2.f32 %v2281_v11 }
 0x3b1   :  { %v2285_v18 = vmul.f32 1.442695, %v2186_v35  ;;  %v2283_v13 = vmul.f32 1.442695, %v2185_v45  ;;  %v8077_v45 = vld [vmem:[#allocation27_spill] sm:$0xff] }
 0x3b2   :  { %v2069_v21 = vpop.xlane.xlu0 %2068  ;;  %v2072_v54 = vpop.xlane.xlu1 %2071 }
 0x3b3   :  { %5622 = vpow2.f32 %v2285_v18  ;;  %v2187_v15 = vsub.f32 %v8073_v22, %v2069_v21  ;;  %v2188_v23 = vsub.f32 %v8074_v40, %v2072_v54  ;;  %v5523_v18 = vunpack.i.h.bf16 %v8078_v26 }
 0x3b4   :  { %5624 = vpow2.f32 %v2283_v13  ;;  %v5522_v13 = vunpack.i.l.bf16 %v8078_v26  ;;  %v2352_v26 = vsel %vm1958_vm4, %v6994_v47, 0.0  ;;  %v2385_v47 = vsel %vm1958_vm4, %v7142_v19, 0.0 }
 0x3b5   :  { %v2287_v60 = vmul.f32 1.442695, %v2187_v15  ;;  %v2289_v12 = vmul.f32 1.442695, %v2188_v23  ;;  %v5192_v23 = vpack.c.bf16 %v5513_v4, %v5512_v52 }
 0x3b6   :  { %v2078_v37 = vpop.xlane.xlu0 %2077  ;;  %v2075_v39 = vpop.xlane.xlu1 %2074 }
 0x3b7   :  { %5626 = vpow2.f32 %v2287_v60  ;;  %v2190_v35 = vsub.f32 %v8076_v5, %v2078_v37  ;;  %v2189_v11 = vsub.f32 %v8077_v45, %v2075_v39  ;;  %v2346_v39 = vsel %vm1958_vm4, %v6965_v48, 0.0  ;;  %v8079_v60 = vld [vmem:[#allocation25_spill] sm:$0xff] }
 0x3b8   :  { %5628 = vpow2.f32 %v2289_v12  ;;  %v5533_v12 = vunpack.i.h.bf16 %v8079_v60  ;;  %v5532_v33 = vunpack.i.l.bf16 %v8079_v60  ;;  %v2355_v48 = vsel %vm1958_vm4, %v7002_v51, 0.0 }
 0x3b9   :  { %v7315_v61 = vpop.eup %5618  ;;  %v2293_v22 = vmul.f32 1.442695, %v2190_v35  ;;  %v2291_v21 = vmul.f32 1.442695, %v2189_v11  ;;  %v2361_v5 = vsel %vm1958_vm4, %v7024_v58, 0.0  ;;  %v2343_v51 = vsel %vm1958_vm4, %v6962_v56, 0.0 }
 0x3ba   :  { %v7317_v54 = vpop.eup %5620  ;;  %4756 = vmatprep.mubr.msk.f32.mxu1 %vm1958_vm4, %v7315_v61  ;;  %v5200_v52 = vpack.c.bf16 %v5533_v12, %v5532_v33  ;;  %v2367_v58 = vsel %vm1958_vm4, %v7066_v14, 0.0  ;;  %v2364_v60 = vsel %vm1958_vm4, %v7032_v24, 0.0 }
 0x3bb   :  { %5630 = vpow2.f32 %v2293_v22  ;;  %4757 = vmatmul.mubr.msk.f32.vlgmr.msra.gmra.mrb[88].mxu1 %vm1958_vm4, %v7317_v54  ;;  %v2349_v22 = vsel %vm1958_vm4, %v6992_v29, 0.0  ;;  %v2379_v29 = vsel %vm1958_vm4, %v7112_v36, 0.0 }
 0x3bc   :  { %5632 = vpow2.f32 %v2291_v21  ;;  %5191 = vmatpush3.bf16.msra.mxu1 %v7214_v50  ;;  %v5196_v50 = vpack.c.bf16 %v5523_v18, %v5522_v13  ;;  %v2373_v21 = vsel %vm1958_vm4, %v7080_v16, 0.0 }
 0x3bd   :  { %v7328_v15 = vpop.eup %5622  ;;  %5193 = vmatprep.subr.bf16.mxu1 %v5192_v23  ;;  %2347 = vadd.xlane.f32.xlu1 %v2346_v39 }
 0x3be   :  { %v7330_v40 = vpop.eup %5624 }
 0x3bf   :  { %4759 = vmatprep.mubr.msk.f32.mxu1 %vm1958_vm4, %v7330_v40 }
 0x3c0   :  { %4760 = vmatmul.mubr.msk.f32.gmra.mrb[90].mxu1 %vm1958_vm4, %v7328_v15 }
 0x3c1   :  { %v7340_v4 = vpop.eup %5626  ;;  %5195 = vmatpush3.bf16.msra.mxu1 %v5192_v23  ;;  %2356 = vadd.xlane.f32.xlu1 %v2355_v48  ;;  %v8080_v48 = vld [vmem:[#allocation24_spill] sm:$0xff] }
 0x3c2   :  { %v7342_v37 = vpop.eup %5628  ;;  %5197 = vmatprep.subr.bf16.mxu1 %v5196_v50  ;;  %4762 = vmatprep.mubr.msk.f32.mxu1 %vm1958_vm4, %v7340_v4  ;;  %v5543_v19 = vunpack.i.h.bf16 %v8080_v48 }
 0x3c4   :  { %4763 = vmatmul.mubr.msk.f32.gmra.mrb[92].mxu1 %vm1958_vm4, %v7342_v37 }
 0x3c5   :  { %v7350_v35 = vpop.eup %5630  ;;  %5199 = vmatpush3.bf16.msra.mxu1 %v5196_v50  ;;  %2362 = vadd.xlane.f32.xlu1 %v2361_v5 }
 0x3c6   :  { %v7354_v45 = vpop.eup %5632  ;;  %5201 = vmatprep.subr.bf16.mxu1 %v5200_v52  ;;  %2344 = vadd.xlane.f32.xlu0 %v2343_v51 }
 0x3c7   :  { %4765 = vmatprep.mubr.msk.f32.mxu1 %vm1958_vm4, %v7354_v45 }
 0x3c8   :  { %4766 = vmatmul.mubr.msk.f32.gmra.mrb[94].mxu1 %vm1958_vm4, %v7350_v35 }
 0x3c9   :  { %5203 = vmatpush3.bf16.msra.mxu1 %v5200_v52  ;;  %v2084_v11 = vpop.xlane.xlu0 %2083  ;;  %2368 = vadd.xlane.f32.xlu1 %v2367_v58  ;;  %v5542_v52 = vunpack.i.l.bf16 %v8080_v48 }
 0x3ca   :  { %5220 = vmatprep.subr.bf16.mxu1 %v7298_v43  ;;  %2350 = vadd.xlane.f32.xlu0 %v2349_v22  ;;  %v2192_v56 = vsub.f32 %v6970_v59, %v2084_v11  ;;  %v2358_v59 = vsel %vm1958_vm4, %v7010_v44, 0.0  ;;  %v2391_v44 = vsel %vm1958_vm4, %v7157_v10, 0.0  ;;  %v2397_v10 = vsel %vm1958_vm4, %v7184_v3, 0.0 }
 0x3cb   :  { %v7398_v11 = vpack.c.bf16 %v5543_v19, %v5542_v52  ;;  %v2406_v19 = vsel %vm1958_vm4, %v7223_v38, 0.0  ;;  %v8083_v52 = vld [vmem:[#allocation30_spill] sm:$0xff]  ;;  %v2412_v38 = vsel %vm1958_vm4, %v7239_v63, 0.0 }
 0x3cc   :  { %v2297_v18 = vmul.f32 1.442695, %v2192_v56 }
 0x3cd   :  { %v2081_v23 = vpop.xlane.xlu0 %2080  ;;  %2374 = vadd.xlane.f32.xlu1 %v2373_v21  ;;  %v2403_v21 = vsel %vm1958_vm4, %v7218_v46, 0.0 }
 0x3ce   :  { %v2191_v14 = vsub.f32 %v6981_v20, %v2081_v23  ;;  %2353 = vadd.xlane.f32.xlu0 %v2352_v26 }
 0x3d0   :  { %v2295_v13 = vmul.f32 1.442695, %v2191_v14 }
 0x3d1   :  { %v2090_v39 = vpop.xlane.xlu0 %2089  ;;  %2380 = vadd.xlane.f32.xlu1 %v2379_v29 }
 0x3d2   :  { %5634 = vpow2.f32 %v2295_v13  ;;  %2359 = vadd.xlane.f32.xlu0 %v2358_v59  ;;  %v2194_v16 = vsub.f32 %v6990_v42, %v2090_v39  ;;  %v2370_v42 = vsel %vm1958_vm4, %v7074_v30, 0.0  ;;  %v2376_v30 = vsel %vm1958_vm4, %v7094_v31, 0.0 }
 0x3d3   :  { %5636 = vpow2.f32 %v2297_v18  ;;  %v2409_v18 = vsel %vm1958_vm4, %v7232_v27, 0.0  ;;  %v2394_v27 = vsel %vm1958_vm4, %v7160_v55, 0.0  ;;  %v8081_v55 = vld [vmem:[#allocation28_spill] sm:$0xff] }
 0x3d4   :  { %v2301_v12 = vmul.f32 1.442695, %v2194_v16 }
 0x3d5   :  { %v2087_v20 = vpop.xlane.xlu0 %2086  ;;  %2386 = vadd.xlane.f32.xlu1 %v2385_v47  ;;  %v2421_v47 = vsel %vm1958_vm4, %v7272_v32, 0.0  ;;  %v8082_v32 = vld [vmem:[#allocation29_spill] sm:$0xff] }
 0x3d6   :  { %v2193_v36 = vsub.f32 %v7008_v62, %v2087_v20  ;;  %2365 = vadd.xlane.f32.xlu0 %v2364_v60  ;;  %v2102_v5 = vpop.xlane.xlu1 %2101 }
 0x3d7   :  { %v2198_v3 = vsub.f32 %v7016_v28, %v2102_v5 }
 0x3d8   :  { %v2299_v33 = vmul.f32 1.442695, %v2193_v36 }
 0x3d9   :  { %v2096_v50 = vpop.xlane.xlu0 %2095  ;;  %2392 = vadd.xlane.f32.xlu1 %v2391_v44  ;;  %v2309_v26 = vmul.f32 1.442695, %v2198_v3 }
 0x3da   :  { %5638 = vpow2.f32 %v2299_v33  ;;  %2371 = vadd.xlane.f32.xlu0 %v2370_v42  ;;  %v2196_v62 = vsub.f32 %v7028_v57, %v2096_v50  ;;  %v2427_v50 = vsel %vm1958_vm4, %v7282_v7, 0.0  ;;  %v8084_v7 = vld [vmem:[#allocation31_spill] sm:$0xff] }
 0x3db   :  { %5640 = vpow2.f32 %v2301_v12 }
 0x3dc   :  { %v7388_v24 = vpop.eup %5634  ;;  %v2305_v22 = vmul.f32 1.442695, %v2196_v62 }
 0x3dd   :  { %v7392_v51 = vpop.eup %5636  ;;  %v2093_v58 = vpop.xlane.xlu0 %2092  ;;  %4784 = vmatprep.mubr.msk.f32.mxu0 %vm1958_vm4, %v7388_v24  ;;  %2398 = vadd.xlane.f32.xlu1 %v2397_v10 }
 0x3de   :  { %v2195_v57 = vsub.f32 %v7044_v17, %v2093_v58  ;;  %2377 = vadd.xlane.f32.xlu0 %v2376_v30  ;;  %4785 = vmatmul.mubr.msk.f32.vlgmr.msra.gmra.mrb[136].mxu0 %vm1958_vm4, %v7392_v51  ;;  %v2382_v17 = vsel %vm1958_vm4, %v7120_v1, 0.0  ;;  %v2415_v1 = vsel %vm1958_vm4, %v7259_v0, 0.0  ;;  %v2433_v30 = vsel %vm1958_vm4, %v7292_v9, 0.0 }
 0x3df   :  { %5207 = vmatpush3.bf16.msra.mxu0 %v7298_v43  ;;  %v2418_v9 = vsel %vm1958_vm4, %v7261_v53, 0.0 }
 0x3e0   :  { %v2303_v56 = vmul.f32 1.442695, %v2195_v57  ;;  %5209 = vmatprep.subr.bf16.mxu0 %v7398_v11 }
 0x3e1   :  { %v2099_v31 = vpop.xlane.xlu0 %2098  ;;  %2404 = vadd.xlane.f32.xlu1 %v2403_v21  ;;  %v2439_v21 = vsel %vm1958_vm4, %v7315_v61, 0.0  ;;  %v2445_v61 = vsel %vm1958_vm4, %v7330_v40, 0.0 }
 0x3e2   :  { %5642 = vpow2.f32 %v2303_v56  ;;  %v2197_v23 = vsub.f32 %v7052_v34, %v2099_v31  ;;  %2383 = vadd.xlane.f32.xlu0 %v2382_v17  ;;  %v2388_v34 = vsel %vm1958_vm4, %v7144_v49, 0.0 }
 0x3e3   :  { %5644 = vpow2.f32 %v2305_v22  ;;  %5211 = vmatpush3.bf16.msra.mxu0 %v7398_v11  ;;  %v8085_v22 = vld [vmem:[#allocation32_spill] sm:$0xff] }
 0x3e4   :  { %v7412_v28 = vpop.eup %5638  ;;  %v2307_v14 = vmul.f32 1.442695, %v2197_v23 }
 0x3e5   :  { %v7416_v46 = vpop.eup %5640  ;;  %4787 = vmatprep.mubr.msk.f32.mxu0 %vm1958_vm4, %v7412_v28  ;;  %2410 = vadd.xlane.f32.xlu1 %v2409_v18  ;;  %v2424_v18 = vsel %vm1958_vm4, %v7274_v25, 0.0  ;;  %v8086_v25 = vld [vmem:[#allocation5_spill] sm:$0xff] }
 0x3e6   :  { %5646 = vpow2.f32 %v2307_v14  ;;  %2389 = vadd.xlane.f32.xlu0 %v2388_v34  ;;  %4788 = vmatmul.mubr.msk.f32.gmra.mrb[138].mxu0 %vm1958_vm4, %v7416_v46  ;;  %v2430_v40 = vsel %vm1958_vm4, %v8086_v25, 0.0 }
 0x3e7   :  { %5648 = vpow2.f32 %v2309_v26 }
 0x3e9   :  { %v2108_v13 = vpop.xlane.xlu1 %2107  ;;  %2416 = vadd.xlane.f32.xlu1 %v2415_v1 }
 0x3ea   :  { %v2200_v29 = vsub.f32 %v7063_v41, %v2108_v13  ;;  %2395 = vadd.xlane.f32.xlu0 %v2394_v27  ;;  %v2105_v39 = vpop.xlane.xlu0 %2104  ;;  %v2400_v41 = vsel %vm1958_vm4, %v7190_v8, 0.0  ;;  %v2463_v27 = vsel %vm1958_vm4, %v7388_v24, 0.0 }
 0x3eb   :  { %v2199_v49 = vsub.f32 %v7072_v2, %v2105_v39 }
 0x3ec   :  { %v7430_v59 = vpop.eup %5642  ;;  %v2313_v16 = vmul.f32 1.442695, %v2200_v29 }
 0x3ed   :  { %v7434_v20 = vpop.eup %5644  ;;  %v2311_v0 = vmul.f32 1.442695, %v2199_v49  ;;  %v2114_v60 = vpop.xlane.xlu1 %2113  ;;  %4790 = vmatprep.mubr.msk.f32.mxu0 %vm1958_vm4, %v7430_v59  ;;  %2422 = vadd.xlane.f32.xlu1 %v2421_v47  ;;  %v2442_v49 = vsel %vm1958_vm4, %v7317_v54, 0.0  ;;  %v2448_v47 = vsel %vm1958_vm4, %v7328_v15, 0.0 }
 0x3ee   :  { %v2202_v36 = vsub.f32 %v8081_v55, %v2114_v60  ;;  %2401 = vadd.xlane.f32.xlu0 %v2400_v41  ;;  %v2111_v2 = vpop.xlane.xlu0 %2110  ;;  %4791 = vmatmul.mubr.msk.f32.gmra.mrb[140].mxu0 %vm1958_vm4, %v7434_v20 }
 0x3ef   :  { %5650 = vpow2.f32 %v2311_v0  ;;  %v2201_v12 = vsub.f32 %v8082_v32, %v2111_v2  ;;  %v8088_v0 = vld [vmem:[#allocation34_spill] sm:$0xff] }
 0x3f0   :  { %v7444_v33 = vpop.eup %5646  ;;  %5652 = vpow2.f32 %v2313_v16  ;;  %v2317_v44 = vmul.f32 1.442695, %v2202_v36  ;;  %v2475_v36 = vsel %vm1958_vm4, %v7430_v59, 0.0  ;;  %v8089_v59 = vld [vmem:[#allocation38_spill] sm:$0xff] }
 0x3f1   :  { %v7448_v42 = vpop.eup %5648  ;;  %v2315_v8 = vmul.f32 1.442695, %v2201_v12  ;;  %v2120_v48 = vpop.xlane.xlu1 %2119  ;;  %4793 = vmatprep.mubr.msk.f32.mxu0 %vm1958_vm4, %v7444_v33  ;;  %2428 = vadd.xlane.f32.xlu1 %v2427_v50  ;;  %v2481_v15 = vsel %vm1958_vm4, %v7444_v33, 0.0  ;;  %v2466_v33 = vsel %vm1958_vm4, %v7392_v51, 0.0  ;;  %v2472_v51 = vsel %vm1958_vm4, %v7416_v46, 0.0 }
 0x3f2   :  { %v2204_v62 = vsub.f32 %v8083_v52, %v2120_v48  ;;  %2407 = vadd.xlane.f32.xlu0 %v2406_v19  ;;  %v2117_v5 = vpop.xlane.xlu0 %2116  ;;  %4794 = vmatmul.mubr.msk.f32.gmra.mrb[142].mxu0 %vm1958_vm4, %v7448_v42 }
 0x3f3   :  { %5654 = vpow2.f32 %v2315_v8  ;;  %v2203_v10 = vsub.f32 %v8084_v7, %v2117_v5  ;;  %v8091_v7 = vld [vmem:[#allocation33_spill] sm:$0xff] }
 0x3f4   :  { %5656 = vpow2.f32 %v2317_v44  ;;  %v2321_v58 = vmul.f32 1.442695, %v2204_v62  ;;  %v2460_v44 = vsel %vm1958_vm4, %v7350_v35, 0.0 }
 0x3f5   :  { %v2319_v57 = vmul.f32 1.442695, %v2203_v10  ;;  %2434 = vadd.xlane.f32.xlu1 %v2433_v30 }
 0x3f6   :  { %2413 = vadd.xlane.f32.xlu0 %v2412_v38  ;;  %v2126_v3 = vpop.xlane.xlu0 %2125  ;;  %v8092_v38 = vld [vmem:[#allocation36_spill] sm:$0xff] }
 0x3f7   :  { %5658 = vpow2.f32 %v2319_v57  ;;  %v2206_v56 = vsub.f32 %v8085_v22, %v2126_v3 }
 0x3f8   :  { %5660 = vpow2.f32 %v2321_v58 }
 0x3f9   :  { %v7465_v31 = vpop.eup %5650  ;;  %2440 = vadd.xlane.f32.xlu1 %v2439_v21  ;;  %v2325_v26 = vmul.f32 1.442695, %v2206_v56 }
 0x3fa   :  { %v7469_v17 = vpop.eup %5652  ;;  %2419 = vadd.xlane.f32.xlu0 %v2418_v9  ;;  %v2123_v23 = vpop.xlane.xlu0 %2122  ;;  %4812 = vmatprep.mubr.msk.f32.mxu1 %vm1958_vm4, %v7465_v31  ;;  %v2487_v62 = vsel %vm1958_vm4, %v7465_v31, 0.0  ;;  %v8093_v31 = vld [vmem:[#allocation35_spill] sm:$0xff] }
 0x3fb   :  { %v2205_v63 = vsub.f32 %v7138_v6, %v2123_v23  ;;  %4813 = vmatmul.mubr.msk.f32.vlgmr.msra.gmra.mrb[96].mxu1 %vm1958_vm4, %v7469_v17  ;;  %v2451_v6 = vsel %vm1958_vm4, %v7340_v4, 0.0  ;;  %v8087_v4 = vld [vmem:[#allocation7_spill] sm:$0xff] }
 0x3fc   :  { %5224 = vmatpush3.bf16.msra.mxu1 %v7298_v43  ;;  %v2436_v13 = vsel %vm1958_vm4, %v8087_v4, 0.0 }
 0x3fd   :  { %v7479_v14 = vpop.eup %5654  ;;  %v2323_v53 = vmul.f32 1.442695, %v2205_v63  ;;  %5221 = vmatprep.subr.bf16.mxu1 %v7398_v11  ;;  %2446 = vadd.xlane.f32.xlu1 %v2445_v61 }
 0x3fe   :  { %v7484_v34 = vpop.eup %5656  ;;  %2425 = vadd.xlane.f32.xlu0 %v2424_v18  ;;  %4815 = vmatprep.mubr.msk.f32.mxu1 %vm1958_vm4, %v7479_v14  ;;  %v2493_v56 = vsel %vm1958_vm4, %v7479_v14, 0.0 }
 0x3ff   :  { %5662 = vpow2.f32 %v2323_v53  ;;  %4816 = vmatmul.mubr.msk.f32.gmra.mrb[98].mxu1 %vm1958_vm4, %v7484_v34 }
 0x400   :  { %5664 = vpow2.f32 %v2325_v26  ;;  %5225 = vmatpush3.bf16.msra.mxu1 %v7398_v11  ;;  %v2457_v11 = vsel %vm1958_vm4, %v7354_v45, 0.0  ;;  %v2469_v45 = vsel %vm1958_vm4, %v7412_v28, 0.0  ;;  %v2454_v28 = vsel %vm1958_vm4, %v7342_v37, 0.0  ;;  %v8090_v37 = vld [vmem:[#allocation37_spill] sm:$0xff]  ;;  %v8094_v26 = vld [vmem:[#allocation40_spill] sm:$0xff] }
 0x401   :  { %v7493_v43 = vpop.eup %5658  ;;  %2452 = vadd.xlane.f32.xlu1 %v2451_v6  ;;  %v8095_v6 = vld [vmem:[#allocation39_spill] sm:$0xff] }
 0x402   :  { %v7497_v1 = vpop.eup %5660  ;;  %2431 = vadd.xlane.f32.xlu0 %v2430_v40  ;;  %4818 = vmatprep.mubr.msk.f32.mxu1 %vm1958_vm4, %v7493_v43  ;;  %v2499_v40 = vsel %vm1958_vm4, %v7493_v43, 0.0 }
 0x403   :  { %4819 = vmatmul.mubr.msk.f32.gmra.mrb[100].mxu1 %vm1958_vm4, %v7497_v1 }
 0x405   :  { %2458 = vadd.xlane.f32.xlu1 %v2457_v11  ;;  %v2478_v11 = vsel %vm1958_vm4, %v7434_v20, 0.0  ;;  %v2484_v20 = vsel %vm1958_vm4, %v7448_v42, 0.0 }
 0x406   :  { %2437 = vadd.xlane.f32.xlu0 %v2436_v13 }
 0x409   :  { %v7509_v29 = vpop.eup %5662  ;;  %v2132_v39 = vpop.xlane.xlu1 %2131  ;;  %2464 = vadd.xlane.f32.xlu1 %v2463_v27 }
 0x40a   :  { %v7513_v16 = vpop.eup %5664  ;;  %2443 = vadd.xlane.f32.xlu0 %v2442_v49  ;;  %4821 = vmatprep.mubr.msk.f32.mxu1 %vm1958_vm4, %v7509_v29  ;;  %v2208_v35 = vsub.f32 %v8091_v7, %v2132_v39 }
 0x40b   :  { %4822 = vmatmul.mubr.msk.f32.gmra.mrb[102].mxu1 %vm1958_vm4, %v7513_v16 }
 0x40c   :  { %v2329_v21 = vmul.f32 1.442695, %v2208_v35 }
 0x40d   :  { %v2129_v24 = vpop.xlane.xlu1 %2128  ;;  %2470 = vadd.xlane.f32.xlu1 %v2469_v45 }
 0x40e   :  { %v2207_v60 = vsub.f32 %v8088_v0, %v2129_v24  ;;  %2449 = vadd.xlane.f32.xlu0 %v2448_v47  ;;  %v7524_v54 = vpop.f32.mrb[64].mxu1  ;;  %v2505_v47 = vsel %vm1958_vm4, %v7509_v29, 0.0 }
 0x40f   :  { %v7526_v41 = vpop.f32.mrb[65].mxu1 }
 0x410   :  { %v2327_v55 = vmul.f32 1.442695, %v2207_v60 }
 0x411   :  { %v2138_v2 = vpop.xlane.xlu1 %2137  ;;  %2476 = vadd.xlane.f32.xlu1 %v2475_v36 }
 0x412   :  { %5666 = vpow2.f32 %v2327_v55  ;;  %v2144_v32 = vpop.xlane.xlu0 %2143  ;;  %2455 = vadd.xlane.f32.xlu0 %v2454_v28  ;;  %v2210_v9 = vsub.f32 %v8093_v31, %v2138_v2  ;;  %v2490_v55 = vsel %vm1958_vm4, %v7469_v17, 0.0  ;;  %v2496_v28 = vsel %vm1958_vm4, %v7484_v34, 0.0 }
 0x413   :  { %v2212_v3 = vsub.f32 %v8092_v38, %v2144_v32  ;;  %v2502_v34 = vsel %vm1958_vm4, %v7497_v1, 0.0 }
 0x414   :  { %v2333_v4 = vmul.f32 1.442695, %v2210_v9 }
 0x415   :  { %2482 = vadd.xlane.f32.xlu1 %v2481_v15  ;;  %v2135_v12 = vpop.xlane.xlu1 %2134  ;;  %v2337_v18 = vmul.f32 1.442695, %v2212_v3 }
 0x416   :  { %v2141_v50 = vpop.xlane.xlu0 %2140  ;;  %2461 = vadd.xlane.f32.xlu0 %v2460_v44  ;;  %v7536_v8 = vpop.f32.mrb[66].mxu1  ;;  %v2209_v52 = vsub.f32 %v8090_v37, %v2135_v12  ;;  %v2508_v37 = vsel %vm1958_vm4, %v7513_v16, 0.0 }
 0x417   :  { %v2211_v48 = vsub.f32 %v8089_v59, %v2141_v50  ;;  %v7539_v19 = vpop.f32.mrb[67].mxu1 }
 0x418   :  { %v2331_v22 = vmul.f32 1.442695, %v2209_v52 }
 0x419   :  { %v2335_v5 = vmul.f32 1.442695, %v2211_v48  ;;  %2488 = vadd.xlane.f32.xlu1 %v2487_v62  ;;  %v5551_v14 = vpop.permute.xlu1 %5550 }
 0x41a   :  { %v2150_v10 = vpop.xlane.xlu0 %2149  ;;  %2467 = vadd.xlane.f32.xlu0 %v2466_v33  ;;  %v7547_v58 = vpop.f32.mrb[68].mxu1  ;;  %v5553_v27 = vunpack.i.h.bf16 %v5551_v14  ;;  %v5552_v39 = vunpack.i.l.bf16 %v5551_v14 }
 0x41b   :  { %5668 = vpow2.f32 %v2335_v5  ;;  %v7549_v30 = vpop.f32.mrb[69].mxu1  ;;  %v2214_v25 = vsub.f32 %v8095_v6, %v2150_v10 }
 0x41c   :  { %v5667_v57 = vpop.eup %5666  ;;  %5670 = vpow2.f32 %v2331_v22  ;;  %v5216_v60 = vpack.c.bf16 %v5553_v27, %v5552_v39 }
 0x41d   :  { %4840 = vmatprep.mubr.msk.f32.mxu0 %vm1958_vm4, %v5667_v57  ;;  %2494 = vadd.xlane.f32.xlu1 %v2493_v56  ;;  %5672 = vpow2.f32 %v2329_v21  ;;  %v2341_v24 = vmul.f32 1.442695, %v2214_v25  ;;  %v2511_v29 = vsel %vm1958_vm4, %v5667_v57, 0.0 }
 0x41e   :  { %2473 = vadd.xlane.f32.xlu0 %v2472_v51  ;;  %v2147_v23 = vpop.xlane.xlu0 %2146  ;;  %v7558_v63 = vpop.f32.mrb[70].mxu1  ;;  %5674 = vpow2.f32 %v2337_v18 }
 0x41f   :  { %v2213_v61 = vsub.f32 %v8094_v26, %v2147_v23  ;;  %v7561_v53 = vpop.f32.mrb[71].mxu1 }
 0x421   :  { %v2339_v46 = vmul.f32 1.442695, %v2213_v61  ;;  %2500 = vadd.xlane.f32.xlu1 %v2499_v40 }
 0x422   :  { %2479 = vadd.xlane.f32.xlu0 %v2478_v11  ;;  %v5546_v13 = vpop.permute.xlu0 %5545 }
 0x423   :  { %v5548_v49 = vunpack.i.h.bf16 %v5546_v13  ;;  %v5547_v45 = vunpack.i.l.bf16 %v5546_v13  ;;  %5676 = vpow2.f32 %v2339_v46 }
 0x424   :  { %5678 = vpow2.f32 %v2333_v4 }
 0x425   :  { %v5669_v0 = vpop.eup %5668  ;;  %v5212_v43 = vpack.c.bf16 %v5548_v49, %v5547_v45  ;;  %2506 = vadd.xlane.f32.xlu1 %v2505_v47  ;;  %5680 = vpow2.f32 %v2341_v24 }
 0x426   :  { %4846 = vmatprep.mubr.msk.f32.mxu1 %vm1958_vm4, %v5669_v0  ;;  %2485 = vadd.xlane.f32.xlu0 %v2484_v20  ;;  %v5671_v36 = vpop.eup %5670  ;;  %v2523_v44 = vsel %vm1958_vm4, %v5669_v0, 0.0 }
 0x427   :  { %5213 = vmatprep.subr.bf16.mxu0 %v5212_v43  ;;  %5222 = vmatprep.subr.bf16.mxu1 %v5212_v43  ;;  %v5673_v42 = vpop.eup %5672  ;;  %v2517_v2 = vsel %vm1958_vm4, %v5671_v36, 0.0 }
 0x428   :  { %5215 = vmatpush3.bf16.msra.mxu0 %v5212_v43  ;;  %5226 = vmatpush3.bf16.msra.mxu1 %v5212_v43  ;;  %v5675_v32 = vpop.eup %5674  ;;  %v2514_v5 = vsel %vm1958_vm4, %v5673_v42, 0.0 }
 0x429   :  { %5217 = vmatprep.subr.bf16.mxu0 %v5216_v60  ;;  %5223 = vmatprep.subr.bf16.mxu1 %v5216_v60  ;;  %v2526_v16 = vsel %vm1958_vm4, %v5675_v32, 0.0 }
 0x42a   :  { %2512 = vadd.xlane.f32.xlu1 %v2511_v29  ;;  %2491 = vadd.xlane.f32.xlu0 %v2490_v55 }
 0x42c   :  { %5219 = vmatpush3.bf16.msra.mxu0 %v5216_v60  ;;  %5227 = vmatpush3.bf16.msra.mxu1 %v5216_v60 }
 0x42d   :  { %v5677_v15 = vpop.eup %5676 }
 0x42e   :  { %2518 = vadd.xlane.f32.xlu1 %v2517_v2  ;;  %2497 = vadd.xlane.f32.xlu0 %v2496_v28  ;;  %v5679_v12 = vpop.eup %5678  ;;  %v2529_v52 = vsel %vm1958_vm4, %v5677_v15, 0.0 }
 0x42f   :  { %4841 = vmatmul.mubr.msk.f32.vlgmr.msra.gmra.mrb[144].mxu0 %vm1958_vm4, %v5673_v42  ;;  %4847 = vmatmul.mubr.msk.f32.vlgmr.msra.gmra.mrb[104].mxu1 %vm1958_vm4, %v5675_v32  ;;  %v5681_v59 = vpop.eup %5680  ;;  %v2520_v7 = vsel %vm1958_vm4, %v5679_v12, 0.0 }
 0x430   :  { %4843 = vmatprep.mubr.msk.f32.mxu0 %vm1958_vm4, %v5671_v36  ;;  %4849 = vmatprep.mubr.msk.f32.mxu1 %vm1958_vm4, %v5677_v15  ;;  %v7583_v17 = vpop.f32.mrb[72].mxu1  ;;  %v2532_v57 = vsel %vm1958_vm4, %v5681_v59, 0.0 }
 0x431   :  { %v7588_v50 = vpop.f32.mrb[73].mxu1 }
 0x432   :  { %2524 = vadd.xlane.f32.xlu1 %v2523_v44  ;;  %2503 = vadd.xlane.f32.xlu0 %v2502_v34 }
 0x433   :  { %4844 = vmatmul.mubr.msk.f32.gmra.mrb[146].mxu0 %vm1958_vm4, %v5679_v12  ;;  %4850 = vmatmul.mubr.msk.f32.gmra.mrb[106].mxu1 %vm1958_vm4, %v5681_v59 }
 0x434   :  { %v7592_v48 = vpop.f32.mrb[74].mxu1 }
 0x435   :  { %v7597_v62 = vpop.f32.mrb[75].mxu1 }
 0x436   :  { %2509 = vadd.xlane.f32.xlu0 %v2508_v37  ;;  %2530 = vadd.xlane.f32.xlu1 %v2529_v52 }
 0x438   :  { %v7599_v1 = vpop.f32.mrb[76].mxu1 }
 0x439   :  { %v7602_v33 = vpop.f32.mrb[77].mxu1 }
 0x43a   :  { %2515 = vadd.xlane.f32.xlu0 %v2514_v5 }
 0x43e   :  { %2521 = vadd.xlane.f32.xlu0 %v2520_v7 }
 0x440   :  { %v7605_v35 = vpop.f32.mrb[78].mxu1 }
 0x441   :  { %v7608_v10 = vpop.f32.mrb[79].mxu1 }
 0x442   :  { %2527 = vadd.xlane.f32.xlu0 %v2526_v16 }
 0x446   :  { %2533 = vadd.xlane.f32.xlu0 %v2532_v57 }
 0x44a   :  { %v2348_v38 = vpop.xlane.xlu1 %2347 }
 0x44b   :  { %5682 = vrcp.f32 %v2348_v38 }
 0x44d   :  { %v7611_v3 = vpop.f32.mrb[80].mxu1 }
 0x44e   :  { %v2357_v22 = vpop.xlane.xlu1 %2356  ;;  %v7613_v56 = vpop.f32.mrb[81].mxu1 }
 0x44f   :  { %5684 = vrcp.f32 %v2357_v22 }
 0x452   :  { %v2363_v51 = vpop.xlane.xlu1 %2362 }
 0x453   :  { %5686 = vrcp.f32 %v2363_v51  ;;  %v2345_v21 = vpop.xlane.xlu0 %2344 }
 0x454   :  { %5688 = vrcp.f32 %v2345_v21 }
 0x455   :  { %v5683_v31 = vpop.eup %5682  ;;  %v7615_v9 = vpop.f32.mrb[82].mxu1 }
 0x456   :  { %v3762_v23 = vmul.f32 %v5683_v31, %v7524_v54  ;;  %v2369_v26 = vpop.xlane.xlu1 %2368  ;;  %v7618_v61 = vpop.f32.mrb[83].mxu1 }
 0x457   :  { %5690 = vrcp.f32 %v2369_v26  ;;  %v2351_v18 = vpop.xlane.xlu0 %2350 }
 0x458   :  { %3888 = vst.msk [vmem:[%s7921_s2 + $0x8] sm:$0xff] %vm594_vm0, %v3762_v23  ;;  %5692 = vrcp.f32 %v2351_v18 }
 0x459   :  { %v5685_v14 = vpop.eup %5684 }
 0x45a   :  { %v3768_v6 = vmul.f32 %v5685_v14, %v7549_v30  ;;  %v2375_v25 = vpop.xlane.xlu1 %2374 }
 0x45b   :  { %5694 = vrcp.f32 %v2375_v25  ;;  %v2354_v40 = vpop.xlane.xlu0 %2353 }
 0x45c   :  { %3891 = vst.msk [vmem:[%s7921_s2 + $0x20] sm:$0xff] %vm594_vm0, %v3768_v6  ;;  %5696 = vrcp.f32 %v2354_v40 }
 0x45d   :  { %v5687_v54 = vpop.eup %5686 }
 0x45e   :  { %v7629_v46 = vpop.f32.mrb[84].mxu1  ;;  %v5689_v11 = vpop.eup %5688  ;;  %v3772_v4 = vmul.f32 %v5687_v54, %v7561_v53 }
 0x45f   :  { %v2381_v13 = vpop.xlane.xlu1 %2380  ;;  %v7632_v27 = vpop.f32.mrb[85].mxu1  ;;  %v3760_v30 = vmul.f32 %v5689_v11, %v7526_v41 }
 0x460   :  { %5698 = vrcp.f32 %v2381_v13  ;;  %v2360_v39 = vpop.xlane.xlu0 %2359  ;;  %3893 = vst.msk [vmem:[%s7921_s2 + $0x30] sm:$0xff] %vm594_vm0, %v3772_v4 }
 0x461   :  { %5700 = vrcp.f32 %v2360_v39  ;;  %v5691_v49 = vpop.eup %5690  ;;  %3887 = vst.msk [vmem:[%s7921_s2] sm:$0xff] %vm594_vm0, %v3760_v30 }
 0x462   :  { %v7643_v53 = vpop.f32.mrb[86].mxu1  ;;  %v5693_v45 = vpop.eup %5692  ;;  %v3776_v24 = vmul.f32 %v5691_v49, %v7588_v50 }
 0x463   :  { %v2387_v41 = vpop.xlane.xlu1 %2386  ;;  %v7646_v47 = vpop.f32.mrb[87].mxu1  ;;  %v3764_v0 = vmul.f32 %v5693_v45, %v7539_v19 }
 0x464   :  { %5702 = vrcp.f32 %v2387_v41  ;;  %v2366_v43 = vpop.xlane.xlu0 %2365  ;;  %3895 = vst.msk [vmem:[%s7921_s2 + $0x40] sm:$0xff] %vm594_vm0, %v3776_v24 }
 0x465   :  { %5704 = vrcp.f32 %v2366_v43  ;;  %v5695_v20 = vpop.eup %5694  ;;  %3889 = vst.msk [vmem:[%s7921_s2 + $0x10] sm:$0xff] %vm594_vm0, %v3764_v0 }
 0x466   :  { %v5697_v60 = vpop.eup %5696  ;;  %v3780_v29 = vmul.f32 %v5695_v20, %v7597_v62 }
 0x467   :  { %v2393_v55 = vpop.xlane.xlu1 %2392  ;;  %v3766_v19 = vmul.f32 %v5697_v60, %v7536_v8 }
 0x468   :  { %5706 = vrcp.f32 %v2393_v55  ;;  %v2372_v36 = vpop.xlane.xlu0 %2371  ;;  %3897 = vst.msk [vmem:[%s7921_s2 + $0x50] sm:$0xff] %vm594_vm0, %v3780_v29 }
 0x469   :  { %5708 = vrcp.f32 %v2372_v36  ;;  %3890 = vst.msk [vmem:[%s7921_s2 + $0x18] sm:$0xff] %vm594_vm0, %v3766_v19 }
 0x46a   :  { %v5699_v42 = vpop.eup %5698 }
 0x46b   :  { %v5701_v2 = vpop.eup %5700  ;;  %v3784_v28 = vmul.f32 %v5699_v42, %v7602_v33  ;;  %v2399_v32 = vpop.xlane.xlu1 %2398 }
 0x46c   :  { %v3770_v8 = vmul.f32 %v5701_v2, %v7547_v58  ;;  %5710 = vrcp.f32 %v2399_v32  ;;  %v2378_v15 = vpop.xlane.xlu0 %2377 }
 0x46d   :  { %3899 = vst.msk [vmem:[%s7921_s2 + $0x60] sm:$0xff] %vm594_vm0, %v3784_v28  ;;  %5712 = vrcp.f32 %v2378_v15  ;;  %v7677_v44 = vpop.f32.mrb[128].mxu0 }
 0x46e   :  { %v5703_v12 = vpop.eup %5702  ;;  %3892 = vst.msk [vmem:[%s7921_s2 + $0x28] sm:$0xff] %vm594_vm0, %v3770_v8  ;;  %v3108_v59 = vpop.f32.mrb[129].mxu0 }
 0x46f   :  { %v5705_v34 = vpop.eup %5704  ;;  %v3788_v50 = vmul.f32 %v5703_v12, %v7608_v10  ;;  %v2405_v58 = vpop.xlane.xlu1 %2404 }
 0x470   :  { %v3774_v37 = vmul.f32 %v5705_v34, %v7558_v63  ;;  %5714 = vrcp.f32 %v2405_v58  ;;  %v2384_v52 = vpop.xlane.xlu0 %2383 }
 0x471   :  { %3901 = vst.msk [vmem:[%s7921_s2 + $0x70] sm:$0xff] %vm594_vm0, %v3788_v50  ;;  %5716 = vrcp.f32 %v2384_v52  ;;  %v7689_v5 = vpop.f32.mrb[130].mxu0 }
 0x472   :  { %v5707_v62 = vpop.eup %5706  ;;  %3894 = vst.msk [vmem:[%s7921_s2 + $0x38] sm:$0xff] %vm594_vm0, %v3774_v37  ;;  %v3118_v16 = vpop.f32.mrb[131].mxu0 }
 0x473   :  { %v5709_v33 = vpop.eup %5708  ;;  %v3792_v7 = vmul.f32 %v5707_v62, %v7613_v56  ;;  %v2411_v63 = vpop.xlane.xlu1 %2410 }
 0x474   :  { %v3778_v10 = vmul.f32 %v5709_v33, %v7583_v17  ;;  %5718 = vrcp.f32 %v2411_v63  ;;  %v2390_v57 = vpop.xlane.xlu0 %2389 }
 0x475   :  { %3903 = vst.msk [vmem:[%s7921_s2 + $0x80] sm:$0xff] %vm594_vm0, %v3792_v7  ;;  %5720 = vrcp.f32 %v2390_v57  ;;  %v7701_v22 = vpop.f32.mrb[132].mxu0 }
 0x476   :  { %v5711_v38 = vpop.eup %5710  ;;  %3896 = vst.msk [vmem:[%s7921_s2 + $0x48] sm:$0xff] %vm594_vm0, %v3778_v10  ;;  %v3128_v21 = vpop.f32.mrb[133].mxu0 }
 0x477   :  { %v5713_v56 = vpop.eup %5712  ;;  %v3796_v51 = vmul.f32 %v5711_v38, %v7618_v61  ;;  %v2417_v17 = vpop.xlane.xlu1 %2416 }
 0x478   :  { %v3782_v31 = vmul.f32 %v5713_v56, %v7592_v48  ;;  %5722 = vrcp.f32 %v2417_v17  ;;  %v2396_v23 = vpop.xlane.xlu0 %2395 }
 0x479   :  { %3905 = vst.msk [vmem:[%s7921_s2 + $0x90] sm:$0xff] %vm594_vm0, %v3796_v51  ;;  %5724 = vrcp.f32 %v2396_v23  ;;  %v7713_v18 = vpop.f32.mrb[134].mxu0 }
 0x47a   :  { %v5715_v26 = vpop.eup %5714  ;;  %3898 = vst.msk [vmem:[%s7921_s2 + $0x58] sm:$0xff] %vm594_vm0, %v3782_v31  ;;  %v3138_v6 = vpop.f32.mrb[135].mxu0 }
 0x47b   :  { %v5717_v61 = vpop.eup %5716  ;;  %v3800_v14 = vmul.f32 %v5715_v26, %v7632_v27  ;;  %v2423_v48 = vpop.xlane.xlu1 %2422 }
 0x47c   :  { %v3786_v25 = vmul.f32 %v5717_v61, %v7599_v1  ;;  %5726 = vrcp.f32 %v2423_v48  ;;  %v2402_v40 = vpop.xlane.xlu0 %2401 }
 0x47d   :  { %3907 = vst.msk [vmem:[%s7921_s2 + $0xa0] sm:$0xff] %vm594_vm0, %v3800_v14  ;;  %5728 = vrcp.f32 %v2402_v40 }
 0x47e   :  { %v5719_v54 = vpop.eup %5718  ;;  %3900 = vst.msk [vmem:[%s7921_s2 + $0x68] sm:$0xff] %vm594_vm0, %v3786_v25 }
 0x47f   :  { %v5721_v11 = vpop.eup %5720  ;;  %v3804_v4 = vmul.f32 %v5719_v54, %v7646_v47  ;;  %v2429_v13 = vpop.xlane.xlu1 %2428 }
 0x480   :  { %v3790_v1 = vmul.f32 %v5721_v11, %v7605_v35  ;;  %5730 = vrcp.f32 %v2429_v13  ;;  %v2408_v27 = vpop.xlane.xlu0 %2407 }
 0x481   :  { %3909 = vst.msk [vmem:[%s7921_s2 + $0xb0] sm:$0xff] %vm594_vm0, %v3804_v4  ;;  %5732 = vrcp.f32 %v2408_v27 }
 0x482   :  { %v5723_v30 = vpop.eup %5722  ;;  %3902 = vst.msk [vmem:[%s7921_s2 + $0x78] sm:$0xff] %vm594_vm0, %v3790_v1 }
 0x483   :  { %v5725_v39 = vpop.eup %5724  ;;  %v3808_v49 = vmul.f32 %v5723_v30, %v3108_v59  ;;  %v2435_v45 = vpop.xlane.xlu1 %2434 }
 0x484   :  { %v3794_v24 = vmul.f32 %v5725_v39, %v7611_v3  ;;  %5734 = vrcp.f32 %v2435_v45  ;;  %v2414_v35 = vpop.xlane.xlu0 %2413 }
 0x485   :  { %3911 = vst.msk [vmem:[%s7921_s2 + $0xc0] sm:$0xff] %vm594_vm0, %v3808_v49  ;;  %5736 = vrcp.f32 %v2414_v35 }
 0x486   :  { %v5727_v41 = vpop.eup %5726  ;;  %3904 = vst.msk [vmem:[%s7921_s2 + $0x88] sm:$0xff] %vm594_vm0, %v3794_v24 }
 0x487   :  { %v5729_v47 = vpop.eup %5728  ;;  %v3812_v0 = vmul.f32 %v5727_v41, %v3118_v16  ;;  %v2441_v43 = vpop.xlane.xlu1 %2440 }
 0x488   :  { %v3798_v20 = vmul.f32 %v5729_v47, %v7615_v9  ;;  %5738 = vrcp.f32 %v2441_v43  ;;  %v2420_v3 = vpop.xlane.xlu0 %2419 }
 0x489   :  { %3913 = vst.msk [vmem:[%s7921_s2 + $0xd0] sm:$0xff] %vm594_vm0, %v3812_v0  ;;  %5740 = vrcp.f32 %v2420_v3 }
 0x48a   :  { %v5731_v60 = vpop.eup %5730  ;;  %3906 = vst.msk [vmem:[%s7921_s2 + $0x98] sm:$0xff] %vm594_vm0, %v3798_v20 }
 0x48b   :  { %v5733_v29 = vpop.eup %5732  ;;  %v3816_v55 = vmul.f32 %v5731_v60, %v3128_v21  ;;  %v2447_v19 = vpop.xlane.xlu1 %2446 }
 0x48c   :  { %v3802_v36 = vmul.f32 %v5733_v29, %v7629_v46  ;;  %5742 = vrcp.f32 %v2447_v19  ;;  %v2426_v9 = vpop.xlane.xlu0 %2425 }
 0x48d   :  { %3915 = vst.msk [vmem:[%s7921_s2 + $0xe0] sm:$0xff] %vm594_vm0, %v3816_v55  ;;  %5744 = vrcp.f32 %v2426_v9 }
 0x48e   :  { %v5735_v42 = vpop.eup %5734  ;;  %3908 = vst.msk [vmem:[%s7921_s2 + $0xa8] sm:$0xff] %vm594_vm0, %v3802_v36  ;;  %v4758_v8 = vpop.f32.mrb[88].mxu1 }
 0x48f   :  { %v5737_v2 = vpop.eup %5736  ;;  %v3820_v28 = vmul.f32 %v5735_v42, %v3138_v6  ;;  %v2453_v32 = vpop.xlane.xlu1 %2452 }
 0x490   :  { %v3806_v46 = vmul.f32 %v5737_v2, %v7643_v53  ;;  %5746 = vrcp.f32 %v2453_v32  ;;  %v2432_v15 = vpop.xlane.xlu0 %2431  ;;  %v3261_v12 = vpop.f32.mrb[89].mxu1 }
 0x491   :  { %3917 = vst.msk [vmem:[%s7921_s2 + $0xf0] sm:$0xff] %vm594_vm0, %v3820_v28  ;;  %5748 = vrcp.f32 %v2432_v15 }
 0x492   :  { %v5739_v34 = vpop.eup %5738  ;;  %3910 = vst.msk [vmem:[%s7921_s2 + $0xb8] sm:$0xff] %vm594_vm0, %v3806_v46 }
 0x493   :  { %v5741_v50 = vpop.eup %5740  ;;  %v3824_v58 = vmul.f32 %v5739_v34, %v3261_v12  ;;  %v2459_v59 = vpop.xlane.xlu1 %2458 }
 0x494   :  { %v3810_v53 = vmul.f32 %v5741_v50, %v7677_v44  ;;  %5750 = vrcp.f32 %v2459_v59  ;;  %v4761_v37 = vpop.f32.mrb[90].mxu1  ;;  %v2438_v52 = vpop.xlane.xlu0 %2437 }
 0x495   :  { %3919 = vst.msk [vmem:[%s7921_s2 + $0x100] sm:$0xff] %vm594_vm0, %v3824_v58  ;;  %5752 = vrcp.f32 %v2438_v52  ;;  %v3271_v62 = vpop.f32.mrb[91].mxu1 }
 0x496   :  { %v5743_v33 = vpop.eup %5742  ;;  %3912 = vst.msk [vmem:[%s7921_s2 + $0xc8] sm:$0xff] %vm594_vm0, %v3810_v53 }
 0x497   :  { %v5745_v7 = vpop.eup %5744  ;;  %v3828_v63 = vmul.f32 %v5743_v33, %v3271_v62  ;;  %v4764_v16 = vpop.f32.mrb[92].mxu1 }
 0x498   :  { %v3814_v44 = vmul.f32 %v5745_v7, %v7689_v5  ;;  %v2444_v10 = vpop.xlane.xlu0 %2443  ;;  %v3281_v57 = vpop.f32.mrb[93].mxu1 }
 0x499   :  { %3921 = vst.msk [vmem:[%s7921_s2 + $0x110] sm:$0xff] %vm594_vm0, %v3828_v63  ;;  %5754 = vrcp.f32 %v2444_v10  ;;  %v2465_v40 = vpop.xlane.xlu1 %2464 }
 0x49a   :  { %v5747_v38 = vpop.eup %5746  ;;  %3914 = vst.msk [vmem:[%s7921_s2 + $0xd8] sm:$0xff] %vm594_vm0, %v3814_v44 }
 0x49b   :  { %v5749_v56 = vpop.eup %5748  ;;  %v3832_v51 = vmul.f32 %v5747_v38, %v3281_v57  ;;  %v4767_v5 = vpop.f32.mrb[94].mxu1 }
 0x49c   :  { %v3818_v17 = vmul.f32 %v5749_v56, %v7701_v22  ;;  %v2450_v21 = vpop.xlane.xlu0 %2449  ;;  %v3291_v31 = vpop.f32.mrb[95].mxu1 }
 0x49d   :  { %3923 = vst.msk [vmem:[%s7921_s2 + $0x120] sm:$0xff] %vm594_vm0, %v3832_v51  ;;  %5756 = vrcp.f32 %v2450_v21  ;;  %v2471_v27 = vpop.xlane.xlu1 %2470 }
 0x49e   :  { %v5751_v23 = vpop.eup %5750  ;;  %3916 = vst.msk [vmem:[%s7921_s2 + $0xe8] sm:$0xff] %vm594_vm0, %v3818_v17 }
 0x49f   :  { %v5753_v26 = vpop.eup %5752  ;;  %v3836_v61 = vmul.f32 %v5751_v23, %v3291_v31 }
 0x4a0   :  { %v3822_v14 = vmul.f32 %v5753_v26, %v7713_v18  ;;  %v2456_v22 = vpop.xlane.xlu0 %2455 }
 0x4a1   :  { %3925 = vst.msk [vmem:[%s7921_s2 + $0x130] sm:$0xff] %vm594_vm0, %v3836_v61  ;;  %5758 = vrcp.f32 %v2456_v22  ;;  %v2477_v41 = vpop.xlane.xlu1 %2476 }
 0x4a2   :  { %3918 = vst.msk [vmem:[%s7921_s2 + $0xf8] sm:$0xff] %vm594_vm0, %v3822_v14 }
 0x4a3   :  { %v5755_v48 = vpop.eup %5754 }
 0x4a4   :  { %v3826_v6 = vmul.f32 %v5755_v48, %v4758_v8  ;;  %v2462_v25 = vpop.xlane.xlu0 %2461 }
 0x4a5   :  { %5760 = vrcp.f32 %v2462_v25  ;;  %v2483_v3 = vpop.xlane.xlu1 %2482 }
 0x4a6   :  { %3920 = vst.msk [vmem:[%s7921_s2 + $0x108] sm:$0xff] %vm594_vm0, %v3826_v6  ;;  %5762 = vrcp.f32 %v2465_v40 }
 0x4a7   :  { %v5757_v18 = vpop.eup %5756 }
 0x4a8   :  { %v3830_v54 = vmul.f32 %v5757_v18, %v4761_v37  ;;  %v2468_v11 = vpop.xlane.xlu0 %2467 }
 0x4a9   :  { %5764 = vrcp.f32 %v2468_v11  ;;  %v2489_v2 = vpop.xlane.xlu1 %2488 }
 0x4aa   :  { %3922 = vst.msk [vmem:[%s7921_s2 + $0x118] sm:$0xff] %vm594_vm0, %v3830_v54 }
 0x4ab   :  { %v5759_v4 = vpop.eup %5758 }
 0x4ac   :  { %v3834_v13 = vmul.f32 %v5759_v4, %v4764_v16  ;;  %v2474_v1 = vpop.xlane.xlu0 %2473 }
 0x4ad   :  { %5766 = vrcp.f32 %v2474_v1  ;;  %v2495_v50 = vpop.xlane.xlu1 %2494 }
 0x4ae   :  { %3924 = vst.msk [vmem:[%s7921_s2 + $0x128] sm:$0xff] %vm594_vm0, %v3834_v13  ;;  %5768 = vrcp.f32 %v2471_v27 }
 0x4af   :  { %v5761_v30 = vpop.eup %5760 }
 0x4b0   :  { %v3838_v39 = vmul.f32 %v5761_v30, %v4767_v5  ;;  %v5763_v49 = vpop.eup %5762  ;;  %v2480_v45 = vpop.xlane.xlu0 %2479 }
 0x4b1   :  { %v4786_v24 = vpop.f32.mrb[136].mxu0  ;;  %5770 = vrcp.f32 %v2480_v45  ;;  %v2501_v7 = vpop.xlane.xlu1 %2500 }
 0x4b2   :  { %3926 = vst.msk [vmem:[%s7921_s2 + $0x138] sm:$0xff] %vm594_vm0, %v3838_v39  ;;  %v3414_v47 = vpop.f32.mrb[137].mxu0  ;;  %5772 = vrcp.f32 %v2477_v41 }
 0x4b3   :  { %v5765_v35 = vpop.eup %5764  ;;  %v3840_v43 = vmul.f32 %v5763_v49, %v3414_v47 }
 0x4b4   :  { %v3842_v0 = vmul.f32 %v5765_v35, %v4786_v24  ;;  %v2486_v20 = vpop.xlane.xlu0 %2485 }
 0x4b5   :  { %3927 = vst.msk [vmem:[%s7921_s2 + $0x140] sm:$0xff] %vm594_vm0, %v3840_v43  ;;  %5774 = vrcp.f32 %v2486_v20  ;;  %v2507_v17 = vpop.xlane.xlu1 %2506 }
 0x4b6   :  { %3928 = vst.msk [vmem:[%s7921_s2 + $0x148] sm:$0xff] %vm594_vm0, %v3842_v0  ;;  %5776 = vrcp.f32 %v2483_v3 }
 0x4b7   :  { %v5767_v60 = vpop.eup %5766 }
 0x4b8   :  { %v5769_v55 = vpop.eup %5768  ;;  %v2492_v42 = vpop.xlane.xlu0 %2491 }
 0x4b9   :  { %v4789_v29 = vpop.f32.mrb[138].mxu0  ;;  %5778 = vrcp.f32 %v2492_v42  ;;  %v2513_v27 = vpop.xlane.xlu1 %2512 }
 0x4ba   :  { %v3846_v19 = vmul.f32 %v5767_v60, %v4789_v29  ;;  %v3424_v36 = vpop.f32.mrb[139].mxu0  ;;  %5780 = vrcp.f32 %v2489_v2 }
 0x4bb   :  { %v3844_v9 = vmul.f32 %v5769_v55, %v3424_v36  ;;  %v5771_v28 = vpop.eup %5770 }
 0x4bc   :  { %3930 = vst.msk [vmem:[%s7921_s2 + $0x158] sm:$0xff] %vm594_vm0, %v3846_v19  ;;  %v5773_v8 = vpop.eup %5772  ;;  %v2498_v12 = vpop.xlane.xlu0 %2497 }
 0x4bd   :  { %3929 = vst.msk [vmem:[%s7921_s2 + $0x150] sm:$0xff] %vm594_vm0, %v3844_v9  ;;  %5782 = vrcp.f32 %v2498_v12  ;;  %v2519_v39 = vpop.xlane.xlu1 %2518 }
 0x4be   :  { %5784 = vrcp.f32 %v2495_v50 }
 0x4bf   :  { %v5775_v58 = vpop.eup %5774 }
 0x4c0   :  { %v5777_v53 = vpop.eup %5776  ;;  %v2504_v33 = vpop.xlane.xlu0 %2503 }
 0x4c1   :  { %v4792_v32 = vpop.f32.mrb[140].mxu0  ;;  %5786 = vrcp.f32 %v2504_v33  ;;  %v2525_v45 = vpop.xlane.xlu1 %2524 }
 0x4c2   :  { %v3850_v46 = vmul.f32 %v5771_v28, %v4792_v32  ;;  %v3434_v15 = vpop.f32.mrb[141].mxu0  ;;  %5788 = vrcp.f32 %v2501_v7 }
 0x4c3   :  { %v3848_v34 = vmul.f32 %v5773_v8, %v3434_v15  ;;  %v5779_v63 = vpop.eup %5778 }
 0x4c4   :  { %3932 = vst.msk [vmem:[%s7921_s2 + $0x168] sm:$0xff] %vm594_vm0, %v3850_v46  ;;  %v5781_v16 = vpop.eup %5780  ;;  %v2510_v56 = vpop.xlane.xlu0 %2509 }
 0x4c5   :  { %3931 = vst.msk [vmem:[%s7921_s2 + $0x160] sm:$0xff] %vm594_vm0, %v3848_v34  ;;  %v4795_v59 = vpop.f32.mrb[142].mxu0  ;;  %5790 = vrcp.f32 %v2510_v56  ;;  %v2531_v35 = vpop.xlane.xlu1 %2530 }
 0x4c6   :  { %v3854_v37 = vmul.f32 %v5775_v58, %v4795_v59  ;;  %v3444_v52 = vpop.f32.mrb[143].mxu0  ;;  %5792 = vrcp.f32 %v2507_v17 }
 0x4c7   :  { %v3852_v62 = vmul.f32 %v5777_v53, %v3444_v52  ;;  %v5783_v51 = vpop.eup %5782  ;;  %5794 = vrcp.f32 %v2513_v27 }
 0x4c8   :  { %3934 = vst.msk [vmem:[%s7921_s2 + $0x178] sm:$0xff] %vm594_vm0, %v3854_v37  ;;  %v5785_v21 = vpop.eup %5784  ;;  %v2516_v1 = vpop.xlane.xlu0 %2515 }
 0x4c9   :  { %3933 = vst.msk [vmem:[%s7921_s2 + $0x170] sm:$0xff] %vm594_vm0, %v3852_v62  ;;  %5796 = vrcp.f32 %v2516_v1 }
 0x4cb   :  { %v5787_v61 = vpop.eup %5786 }
 0x4cc   :  { %v5789_v22 = vpop.eup %5788  ;;  %v2522_v30 = vpop.xlane.xlu0 %2521 }
 0x4ce   :  { %v4814_v44 = vpop.f32.mrb[96].mxu1 }
 0x4cf   :  { %v3858_v10 = vmul.f32 %v5779_v63, %v4814_v44  ;;  %v3567_v57 = vpop.f32.mrb[97].mxu1  ;;  %v5791_v40 = vpop.eup %5790 }
 0x4d0   :  { %v3856_v38 = vmul.f32 %v5781_v16, %v3567_v57  ;;  %v5793_v54 = vpop.eup %5792  ;;  %v2528_v49 = vpop.xlane.xlu0 %2527 }
 0x4d1   :  { %3936 = vst.msk [vmem:[%s7921_s2 + $0x188] sm:$0xff] %vm594_vm0, %v3858_v10  ;;  %5798 = vrcp.f32 %v2528_v49  ;;  %v5795_v41 = vpop.eup %5794 }
 0x4d2   :  { %3935 = vst.msk [vmem:[%s7921_s2 + $0x180] sm:$0xff] %vm594_vm0, %v3856_v38  ;;  %v4817_v5 = vpop.f32.mrb[98].mxu1  ;;  %5800 = vrcp.f32 %v2525_v45 }
 0x4d3   :  { %v3862_v31 = vmul.f32 %v5783_v51, %v4817_v5  ;;  %v3577_v23 = vpop.f32.mrb[99].mxu1  ;;  %5802 = vrcp.f32 %v2519_v39  ;;  %v5797_v47 = vpop.eup %5796 }
 0x4d4   :  { %v3860_v26 = vmul.f32 %v5785_v21, %v3577_v23  ;;  %v2534_v24 = vpop.xlane.xlu0 %2533  ;;  %5804 = vrcp.f32 %v2522_v30 }
 0x4d5   :  { %3938 = vst.msk [vmem:[%s7921_s2 + $0x198] sm:$0xff] %vm594_vm0, %v3862_v31  ;;  %5806 = vrcp.f32 %v2534_v24 }
 0x4d6   :  { %3937 = vst.msk [vmem:[%s7921_s2 + $0x190] sm:$0xff] %vm594_vm0, %v3860_v26  ;;  %v4820_v14 = vpop.f32.mrb[100].mxu1  ;;  %5808 = vrcp.f32 %v2531_v35 }
 0x4d7   :  { %v3866_v48 = vmul.f32 %v5787_v61, %v4820_v14  ;;  %v3587_v6 = vpop.f32.mrb[101].mxu1 }
 0x4d8   :  { %v3864_v25 = vmul.f32 %v5789_v22, %v3587_v6 }
 0x4d9   :  { %3940 = vst.msk [vmem:[%s7921_s2 + $0x1a8] sm:$0xff] %vm594_vm0, %v3866_v48 }
 0x4da   :  { %3939 = vst.msk [vmem:[%s7921_s2 + $0x1a0] sm:$0xff] %vm594_vm0, %v3864_v25 }
 0x4db   :  { %v5799_v0 = vpop.eup %5798 }
 0x4dc   :  { %v5801_v3 = vpop.eup %5800 }
 0x4dd   :  { %v5803_v36 = vpop.eup %5802 }
 0x4de   :  { %v4823_v18 = vpop.f32.mrb[102].mxu1  ;;  %v5805_v2 = vpop.eup %5804 }
 0x4df   :  { %v3870_v11 = vmul.f32 %v5791_v40, %v4823_v18  ;;  %v3597_v4 = vpop.f32.mrb[103].mxu1  ;;  %v5807_v28 = vpop.eup %5806 }
 0x4e0   :  { %v3868_v13 = vmul.f32 %v5793_v54, %v3597_v4  ;;  %v5809_v46 = vpop.eup %5808 }
 0x4e1   :  { %3942 = vst.msk [vmem:[%s7921_s2 + $0x1b8] sm:$0xff] %vm594_vm0, %v3870_v11 }
 0x4e2   :  { %3941 = vst.msk [vmem:[%s7921_s2 + $0x1b0] sm:$0xff] %vm594_vm0, %v3868_v13 }
 0x502   :  { %v4842_v43 = vpop.f32.mrb[144].mxu0  ;;  %v4848_v20 = vpop.f32.mrb[104].mxu1 }
 0x503   :  { %v3874_v60 = vmul.f32 %v5797_v47, %v4842_v43  ;;  %v3882_v29 = vmul.f32 %v5799_v0, %v4848_v20  ;;  %v3720_v55 = vpop.f32.mrb[145].mxu0  ;;  %v3740_v19 = vpop.f32.mrb[105].mxu1 }
 0x504   :  { %v3872_v9 = vmul.f32 %v5795_v41, %v3720_v55  ;;  %v3880_v42 = vmul.f32 %v5801_v3, %v3740_v19 }
 0x505   :  { %3944 = vst.msk [vmem:[%s7921_s2 + $0x1c8] sm:$0xff] %vm594_vm0, %v3874_v60  ;;  %3948 = vst.msk [vmem:[%s7921_s2 + $0x1e8] sm:$0xff] %vm594_vm0, %v3882_v29 }
 0x506   :  { %3943 = vst.msk [vmem:[%s7921_s2 + $0x1c0] sm:$0xff] %vm594_vm0, %v3872_v9  ;;  %3947 = vst.msk [vmem:[%s7921_s2 + $0x1e0] sm:$0xff] %vm594_vm0, %v3880_v42  ;;  %v4845_v32 = vpop.f32.mrb[146].mxu0  ;;  %v4851_v8 = vpop.f32.mrb[106].mxu1 }
 0x507   :  { %v3878_v15 = vmul.f32 %v5805_v2, %v4845_v32  ;;  %v3886_v12 = vmul.f32 %v5807_v28, %v4851_v8  ;;  %v3730_v34 = vpop.f32.mrb[147].mxu0  ;;  %v3750_v50 = vpop.f32.mrb[107].mxu1 }
 0x508   :  { %v3876_v58 = vmul.f32 %v5803_v36, %v3730_v34  ;;  %v3884_v59 = vmul.f32 %v5809_v46, %v3750_v50 }
 0x509   :  { %3946 = vst.msk [vmem:[%s7921_s2 + $0x1d8] sm:$0xff] %vm594_vm0, %v3878_v15  ;;  %3950 = vst.msk [vmem:[%s7921_s2 + $0x1f8] sm:$0xff] %vm594_vm0, %v3886_v12 }
 0x50a   :  { %3945 = vst.msk [vmem:[%s7921_s2 + $0x1d0] sm:$0xff] %vm594_vm0, %v3876_v58  ;;  %3949 = vst.msk [vmem:[%s7921_s2 + $0x1f0] sm:$0xff] %vm594_vm0, %v3884_v59 }
 0x50b   :  { %3955 = vsyncpa [#allocation3], 1 }

</bundles_post_ra>
